<compile_context>
chip_gen: v7x
topology: tpu7x:2x2x1
jax: 0.10.0
libtpu: 0.0.40
codegen_flags: <defaults>
</compile_context>

<pallas_src>
import functools

import jax
import jax.numpy as jnp
import numpy as np
from jax import lax
from jax.experimental import pallas as pl
from jax.experimental.pallas import tpu as pltpu

_LANES = 128          # f32 vreg lane width
_SUBLANES = 8         # f32 vreg sublane count
_VMEM_LIMIT = 48 * 1024 * 1024   # < v7x 64 MiB physical, > all default scoped limits


def _round_up(x, m):
    return ((x + m - 1) // m) * m


def _pick_time_chunk(T, cap):
    tc = max(1, min(T, cap))
    while T % tc:
        tc -= 1
    return tc


# ---------------------------------------------------------------------------
# Pallas kernels
# ---------------------------------------------------------------------------
def _lstm_chunk_kernel(*refs, tc, bp, hp, fused_input):
    """One time-chunk of one LSTM layer.

    grid=(T/Tc,) iterates sequentially over chunks; h/c persist in VMEM scratch.
    fused_input=False : layer 0, gates_x chunk is given directly (table gather).
    fused_input=True  : layers>=1, gates_x is computed here as ONE batched
                        (Tc*Bp, Hp) x (Hp, 4Hp) matmul (hoisted out of the
                        per-step recurrence), stored in VMEM scratch.
    """
    if fused_input:
        hin_ref, whh_ref, wih_ref, b_ref, out_ref, h_scr, c_scr, gx_scr = refs
    else:
        gx_in_ref, whh_ref, out_ref, h_scr, c_scr = refs

    @pl.when(pl.program_id(0) == 0)
    def _init():                       # zero initial state, first chunk only
        h_scr[...] = jnp.zeros_like(h_scr)
        c_scr[...] = jnp.zeros_like(c_scr)

    if fused_input:
        gx_scr[...] = (
            jnp.dot(hin_ref[...].astype(wih_ref.dtype), wih_ref[...],
                    preferred_element_type=jnp.float32)
            + b_ref[...])
        gx_ref = gx_scr
    else:
        gx_ref = gx_in_ref

    mxu_dtype = whh_ref.dtype

    def step(t, carry):
        row = pl.multiple_of(t * bp, bp)            # sublane-aligned row offset
        h_prev = h_scr[...]
        c_prev = c_scr[...]
        # per-step serial work: only the recurrent matmul + elementwise gates (f32)
        gates = gx_ref[pl.ds(row, bp), :] + jnp.dot(
            h_prev.astype(mxu_dtype), whh_ref[...],
            preferred_element_type=jnp.float32)      # (bp, 4*hp)

        i_g = jax.nn.sigmoid(gates[:, 0 * hp:1 * hp])   # 128-aligned gate slices
        f_g = jax.nn.sigmoid(gates[:, 1 * hp:2 * hp])
        g_g = jnp.tanh(gates[:, 2 * hp:3 * hp])
        o_g = jax.nn.sigmoid(gates[:, 3 * hp:4 * hp])

        c_new = f_g * c_prev + i_g * g_g
        h_new = o_g * jnp.tanh(c_new)

        c_scr[...] = c_new
        h_scr[...] = h_new
        out_ref[pl.ds(row, bp), :] = h_new.astype(out_ref.dtype)  # lane-dense store
        return carry

    lax.fori_loop(0, tc, step, 0, unroll=True)


def _matmul_bias_kernel(x_ref, w_ref, b_ref, o_ref):
    """Row-tiled linear: (tn, D) @ (D, O) + b."""
    o_ref[...] = (
        jnp.dot(x_ref[...].astype(w_ref.dtype), w_ref[...],
                preferred_element_type=jnp.float32)
        + b_ref[...]).astype(o_ref.dtype)


# ---------------------------------------------------------------------------
# Wrappers
# ---------------------------------------------------------------------------
def _lstm_layer(x, whh, wih=None, bias=None, *, batch_p, time_chunk=16):
    """x: (T*Bp, 4Hp) precomputed gates (layer 0, wih=None)
          or (T*Bp, Hp) previous-layer hidden states (layers >= 1).
    Returns (T*Bp, Hp) float32."""
    n_rows = x.shape[0]
    Hp = whh.shape[0]
    T = n_rows // batch_p
    tc = _pick_time_chunk(T, time_chunk)
    rows_per_chunk = tc * batch_p
    fused = wih is not None

    in_specs = [pl.BlockSpec((rows_per_chunk, x.shape[1]), lambda c: (c, 0)),
                pl.BlockSpec((Hp, 4 * Hp), lambda c: (0, 0))]
    args = [x, whh]
    scratch = [pltpu.VMEM((batch_p, Hp), jnp.float32),   # h state
               pltpu.VMEM((batch_p, Hp), jnp.float32)]   # c state
    if fused:
        in_specs += [pl.BlockSpec((Hp, 4 * Hp), lambda c: (0, 0)),
                     pl.BlockSpec((1, 4 * Hp), lambda c: (0, 0))]
        args += [wih, bias]
        scratch += [pltpu.VMEM((rows_per_chunk, 4 * Hp), jnp.float32)]  # gates_x chunk

    # NOTE: at production sizes (H ~ 1024) the constant-index weight specs should
    # additionally use pipeline_mode=pl.Buffered(1) to avoid redundant double
    # buffering against v7x's 64 MiB VMEM; irrelevant at these shapes.
    kernel = functools.partial(_lstm_chunk_kernel, tc=tc, bp=batch_p, hp=Hp,
                               fused_input=fused)
    return pl.pallas_call(
        kernel,
        out_shape=jax.ShapeDtypeStruct((n_rows, Hp), jnp.float32),
        grid_spec=pltpu.PrefetchScalarGridSpec(
            num_scalar_prefetch=0,
            grid=(T // tc,),
            in_specs=in_specs,
            out_specs=pl.BlockSpec((rows_per_chunk, Hp), lambda c: (c, 0)),
            scratch_shapes=scratch),
        compiler_params=pltpu.CompilerParams(
            dimension_semantics=("arbitrary",),          # sequential recurrence
            vmem_limit_bytes=_VMEM_LIMIT),
    )(*args)


def _linear(x, w, b, *, block_rows=512):
    """x: (N, D) @ w: (D, O) + b -> (N, O), tiled over rows."""
    n, d = x.shape
    o = w.shape[1]
    tn = min(block_rows, n)                              # n is a multiple of 8
    return pl.pallas_call(
        _matmul_bias_kernel,
        out_shape=jax.ShapeDtypeStruct((n, o), jnp.float32),
        grid_spec=pltpu.PrefetchScalarGridSpec(
            num_scalar_prefetch=0,
            grid=(pl.cdiv(n, tn),),
            in_specs=[pl.BlockSpec((tn, d), lambda i: (i, 0)),
                      pl.BlockSpec((d, o), lambda i: (0, 0)),
                      pl.BlockSpec((1, o), lambda i: (0, 0))],
            out_specs=pl.BlockSpec((tn, o), lambda i: (i, 0))),
        compiler_params=pltpu.CompilerParams(
            dimension_semantics=("parallel",),           # v7x: both TCs split rows
            vmem_limit_bytes=_VMEM_LIMIT),
    )(x, w, b)


@functools.partial(jax.jit, static_argnames=("output_size", "mxu_dtype"))
def next_character_lstm_forward(tokens, kp, *, output_size,
                                mxu_dtype=jnp.bfloat16):
    """tokens: (B, T) int32 -> (B, output_size, T) float32."""
    B, T = tokens.shape
    Bp = _round_up(max(B, 1), _SUBLANES)                 # sublane-dense batch
    tokens_p = jnp.pad(tokens, ((0, Bp - B), (0, 0)))

    # Layer 0: embedding + input projection fused into a table; gates_x for the
    # whole sequence is a single gather in time-major, row-flattened layout.
    gx0 = jnp.take(kp["table0"], tokens_p.T.reshape(-1), axis=0)   # (T*Bp, 4Hp) f32

    h = _lstm_layer(gx0, kp["whh"][0].astype(mxu_dtype), batch_p=Bp)
    for l in range(1, len(kp["whh"])):
        h = _lstm_layer(h, kp["whh"][l].astype(mxu_dtype),
                        wih=kp["wih"][l].astype(mxu_dtype),
                        bias=kp["bias"][l], batch_p=Bp)

    logits = _linear(h, kp["w_dec"].astype(mxu_dtype), kp["b_dec"])  # (T*Bp, Op)
    Op = logits.shape[-1]
    logits = logits.reshape(T, Bp, Op)
    # Final permute to PyTorch's (B, output_size, T); tiny tensor -> XLA glue.
    return jnp.transpose(logits, (1, 2, 0))[:B, :output_size, :]


# ---------------------------------------------------------------------------
# Parameter construction (PyTorch layout + kernel-ready padded/fused layout)
# ---------------------------------------------------------------------------
def _pad_gates_T(w, H, Hp, d, dp):
    """PyTorch gate-stacked (4H, d) -> zero-padded, transposed (dp, 4Hp).
    Each gate block (i,f,g,o) is padded independently so that padded hidden
    units get zero pre-activations and therefore stay exactly zero."""
    w4 = w.reshape(4, H, d)
    w4 = jnp.pad(w4, ((0, 0), (0, Hp - H), (0, dp - d)))
    return w4.reshape(4 * Hp, dp).T


def _pad_gate_bias(b, H, Hp):
    return jnp.pad(b.reshape(4, H), ((0, 0), (0, Hp - H))).reshape(1, 4 * Hp)


def init_params(key, input_size, embed_size, hidden_size, output_size, n_layers):
    H, Hp = hidden_size, _round_up(hidden_size, _LANES)
    O, Op = output_size, _round_up(output_size, _LANES)
    scale = 1.0 / np.sqrt(hidden_size)

    ks = jax.random.split(key, 4 * n_layers + 3)
    kit = iter(ks)

    emb = jax.random.normal(next(kit), (input_size, embed_size), jnp.float32)

    raw = {"embedding": emb, "lstm": []}
    kp = {"table0": None, "whh": [], "wih": [], "bias": []}

    for l in range(n_layers):
        d_in = embed_size if l == 0 else H
        w_ih = jax.random.uniform(next(kit), (4 * H, d_in), jnp.float32, -scale, scale)
        w_hh = jax.random.uniform(next(kit), (4 * H, H), jnp.float32, -scale, scale)
        b_ih = jax.random.uniform(next(kit), (4 * H,), jnp.float32, -scale, scale)
        b_hh = jax.random.uniform(next(kit), (4 * H,), jnp.float32, -scale, scale)
        bias = b_ih + b_hh
        raw["lstm"].append({"w_ih": w_ih, "w_hh": w_hh, "bias": bias})

        kp["whh"].append(_pad_gates_T(w_hh, H, Hp, H, Hp))             # (Hp, 4Hp)
        if l == 0:
            # Fuse embedding with layer-0 W_ih (+ bias): (vocab, 4Hp) gather table.
            w_ih0_T = _pad_gates_T(w_ih, H, Hp, embed_size, embed_size)  # (E, 4Hp)
            kp["table0"] = emb @ w_ih0_T + _pad_gate_bias(bias, H, Hp)   # (V, 4Hp)
            kp["wih"].append(None)
            kp["bias"].append(None)
        else:
            kp["wih"].append(_pad_gates_T(w_ih, H, Hp, H, Hp))         # (Hp, 4Hp)
            kp["bias"].append(_pad_gate_bias(bias, H, Hp))             # (1, 4Hp)

    w_dec = jax.random.uniform(next(kit), (O, H), jnp.float32, -scale, scale)
    b_dec = jax.random.uniform(next(kit), (O,), jnp.float32, -scale, scale)
    raw["w_dec"] = w_dec
    raw["b_dec"] = b_dec
    kp["w_dec"] = jnp.pad(w_dec, ((0, Op - O), (0, Hp - H))).T          # (Hp, Op)
    kp["b_dec"] = jnp.pad(b_dec, (0, Op - O)).reshape(1, Op)            # (1, Op)
    return kp, raw


# ---------------------------------------------------------------------------
# Pure-JAX reference (unpadded, PyTorch semantics) for correctness checks
# ---------------------------------------------------------------------------
def reference_forward(tokens, raw):
    x = jnp.take(raw["embedding"], tokens, axis=0)      # (B, T, E)
    x = jnp.transpose(x, (1, 0, 2)).astype(jnp.float32)  # (T, B, E)
    for layer in raw["lstm"]:
        w_ih, w_hh, b = layer["w_ih"], layer["w_hh"], layer["bias"]
        H = w_hh.shape[1]
        B = x.shape[1]

        def step(carry, x_t, w_ih=w_ih, w_hh=w_hh, b=b, H=H):
            h, c = carry
            gates = x_t @ w_ih.T + h @ w_hh.T + b
            i = jax.nn.sigmoid(gates[:, 0 * H:1 * H])
            f = jax.nn.sigmoid(gates[:, 1 * H:2 * H])
            g = jnp.tanh(gates[:, 2 * H:3 * H])
            o = jax.nn.sigmoid(gates[:, 3 * H:4 * H])
            c = f * c + i * g
            h = o * jnp.tanh(c)
            return (h, c), h

        init = (jnp.zeros((B, H), jnp.float32), jnp.zeros((B, H), jnp.float32))
        _, x = lax.scan(step, init, x)
    logits = x @ raw["w_dec"].T + raw["b_dec"]          # (T, B, O)
    return jnp.transpose(logits, (1, 2, 0))             # (B, O, T)


# ---------------------------------------------------------------------------
if __name__ == "__main__":
    B, T = 2, 8
    input_size = 32      # vocab
    embed_size = 32
    hidden_size = 32
    output_size = 32
    n_layers = 2

    key = jax.random.PRNGKey(0)
    k_tok, k_par = jax.random.split(key)
    tokens = jax.random.randint(k_tok, (B, T), 0, input_size, dtype=jnp.int32)
    kp, raw = init_params(k_par, input_size, embed_size, hidden_size,
                          output_size, n_layers)

    ref = jax.block_until_ready(reference_forward(tokens, raw))

    # f32 MXU path: tight correctness check against the pure-JAX reference.
    out_f32 = jax.block_until_ready(
        next_character_lstm_forward(tokens, kp, output_size=output_size,
                                    mxu_dtype=jnp.float32))
    assert out_f32.shape == (B, output_size, T), out_f32.shape
    np.testing.assert_allclose(np.asarray(out_f32), np.asarray(ref),
                               rtol=1e-4, atol=1e-4)

    # bf16 MXU-operand path (recommended on v6e/v7x); f32 state & accumulation,
    # so only a looser tolerance is expected.
    out_bf16 = jax.block_until_ready(
        next_character_lstm_forward(tokens, kp, output_size=output_size,
                                    mxu_dtype=jnp.bfloat16))
    assert out_bf16.shape == (B, output_size, T), out_bf16.shape
    np.testing.assert_allclose(np.asarray(out_bf16), np.asarray(ref),
                               rtol=5e-2, atol=5e-2)

    print("KERNEL_OK")
</pallas_src>

<mosaic_0001>
module attributes {stable_mosaic.version = 11 : i64} {
  func.func @_lstm_chunk_kernel(%arg0: i32, %arg1: memref<64x512xf32, #tpu.memory_space<vmem>>, %arg2: memref<128x512xf32, #tpu.memory_space<vmem>>, %arg3: memref<64x128xf32, #tpu.memory_space<vmem>>, %arg4: memref<8x128xf32, #tpu.memory_space<vmem>>, %arg5: memref<8x128xf32, #tpu.memory_space<vmem>>) attributes {dimension_semantics = [#tpu.dimension_semantics<arbitrary>], iteration_bounds = array<i64: 1>, scalar_prefetch = 0 : i64, scratch_operands = 2 : i64, tpu.core_type = #tpu.core_type<tc>, window_params = [{transform_indices = @transform_0, window_bounds = array<i64: 64, 512>}, {pipeline_mode = #tpu.pipeline_mode<synchronous>, transform_indices = @transform_1, window_bounds = array<i64: 128, 512>}, {transform_indices = @transform_2, window_bounds = array<i64: 64, 128>}]} {
    %c0_i32 = arith.constant 0 : i32
    %0 = arith.cmpi eq, %arg0, %c0_i32 : i32
    %1 = arith.extui %0 : i1 to i32
    %c0_i32_0 = arith.constant 0 : i32
    %2 = arith.cmpi ne, %1, %c0_i32_0 : i32
    scf.if %2 {
      %cst_136 = arith.constant 0.000000e+00 : f32
      %307 = vector.broadcast %cst_136 : f32 to vector<8x128xf32>
      %c0_137 = arith.constant 0 : index
      %c0_138 = arith.constant 0 : index
      %308 = vector.load %arg4[%c0_137, %c0_138] : memref<8x128xf32, #tpu.memory_space<vmem>>, vector<8x128xf32>
      tpu.vector_store %arg4[%c0_137, %c0_138], %307 {strides = array<i32>} : memref<8x128xf32, #tpu.memory_space<vmem>>, vector<8x128xf32>,
      %cst_139 = arith.constant 0.000000e+00 : f32
      %309 = vector.broadcast %cst_139 : f32 to vector<8x128xf32>
      %c0_140 = arith.constant 0 : index
      %c0_141 = arith.constant 0 : index
      %310 = vector.load %arg5[%c0_140, %c0_141] : memref<8x128xf32, #tpu.memory_space<vmem>>, vector<8x128xf32>
      tpu.vector_store %arg5[%c0_140, %c0_141], %309 {strides = array<i32>} : memref<8x128xf32, #tpu.memory_space<vmem>>, vector<8x128xf32>,
    } else {
    }
    %c0_i32_1 = arith.constant 0 : i32
    %c8_i32 = arith.constant 8 : i32
    %3 = arith.muli %c0_i32_1, %c8_i32 : i32
    %4 = tpu.assume_multiple %3, 8 : i32
    %c0 = arith.constant 0 : index
    %c0_2 = arith.constant 0 : index
    %5 = vector.load %arg4[%c0, %c0_2] : memref<8x128xf32, #tpu.memory_space<vmem>>, vector<8x128xf32>
    %c0_3 = arith.constant 0 : index
    %c0_4 = arith.constant 0 : index
    %6 = vector.load %arg5[%c0_3, %c0_4] : memref<8x128xf32, #tpu.memory_space<vmem>>, vector<8x128xf32>
    %7 = arith.index_cast %4 : i32 to index
    %c0_5 = arith.constant 0 : index
    %8 = vector.load %arg1[%7, %c0_5] : memref<64x512xf32, #tpu.memory_space<vmem>>, vector<8x512xf32>
    %c0_6 = arith.constant 0 : index
    %c0_7 = arith.constant 0 : index
    %9 = vector.load %arg2[%c0_6, %c0_7] : memref<128x512xf32, #tpu.memory_space<vmem>>, vector<128x512xf32>
    %cst = arith.constant dense<0.000000e+00> : vector<8x512xf32>
    %10 = tpu.matmul %5, %9, %cst {dimension_numbers = #tpu.dot_dimension_numbers<[1], [0], [0], [1], [0, 0, 1, 1], [], []>} : vector<8x128xf32>, vector<128x512xf32>, vector<8x512xf32> -> vector<8x512xf32>
    %11 = arith.addf %8, %10 : vector<8x512xf32>
    %12 = vector.extract_strided_slice %11 {offsets = [0, 0], sizes = [8, 128], strides = [1, 1]} : vector<8x512xf32> to vector<8x128xf32>
    %13 = arith.negf %12 : vector<8x128xf32>
    %14 = math.exp %13 : vector<8x128xf32>
    %cst_8 = arith.constant 1.000000e+00 : f32
    %15 = vector.broadcast %cst_8 : f32 to vector<8x128xf32>
    %16 = arith.addf %15, %14 : vector<8x128xf32>
    %17 = arith.divf %15, %16 : vector<8x128xf32>
    %18 = vector.extract_strided_slice %11 {offsets = [0, 128], sizes = [8, 128], strides = [1, 1]} : vector<8x512xf32> to vector<8x128xf32>
    %19 = arith.negf %18 : vector<8x128xf32>
    %20 = math.exp %19 : vector<8x128xf32>
    %cst_9 = arith.constant 1.000000e+00 : f32
    %21 = vector.broadcast %cst_9 : f32 to vector<8x128xf32>
    %22 = arith.addf %21, %20 : vector<8x128xf32>
    %23 = arith.divf %21, %22 : vector<8x128xf32>
    %24 = vector.extract_strided_slice %11 {offsets = [0, 256], sizes = [8, 128], strides = [1, 1]} : vector<8x512xf32> to vector<8x128xf32>
    %25 = math.tanh %24 : vector<8x128xf32>
    %26 = vector.extract_strided_slice %11 {offsets = [0, 384], sizes = [8, 128], strides = [1, 1]} : vector<8x512xf32> to vector<8x128xf32>
    %27 = arith.negf %26 : vector<8x128xf32>
    %28 = math.exp %27 : vector<8x128xf32>
    %cst_10 = arith.constant 1.000000e+00 : f32
    %29 = vector.broadcast %cst_10 : f32 to vector<8x128xf32>
    %30 = arith.addf %29, %28 : vector<8x128xf32>
    %31 = arith.divf %29, %30 : vector<8x128xf32>
    %32 = arith.mulf %23, %6 : vector<8x128xf32>
    %33 = arith.mulf %17, %25 : vector<8x128xf32>
    %34 = arith.addf %32, %33 : vector<8x128xf32>
    %35 = math.tanh %34 : vector<8x128xf32>
    %36 = arith.mulf %31, %35 : vector<8x128xf32>
    %c0_11 = arith.constant 0 : index
    %c0_12 = arith.constant 0 : index
    %37 = vector.load %arg5[%c0_11, %c0_12] : memref<8x128xf32, #tpu.memory_space<vmem>>, vector<8x128xf32>
    tpu.vector_store %arg5[%c0_11, %c0_12], %34 {strides = array<i32>} : memref<8x128xf32, #tpu.memory_space<vmem>>, vector<8x128xf32>,
    %c0_13 = arith.constant 0 : index
    %c0_14 = arith.constant 0 : index
    %38 = vector.load %arg4[%c0_13, %c0_14] : memref<8x128xf32, #tpu.memory_space<vmem>>, vector<8x128xf32>
    tpu.vector_store %arg4[%c0_13, %c0_14], %36 {strides = array<i32>} : memref<8x128xf32, #tpu.memory_space<vmem>>, vector<8x128xf32>,
    %39 = arith.index_cast %4 : i32 to index
    %c0_15 = arith.constant 0 : index
    %40 = vector.load %arg3[%39, %c0_15] : memref<64x128xf32, #tpu.memory_space<vmem>>, vector<8x128xf32>
    tpu.vector_store %arg3[%39, %c0_15], %36 {strides = array<i32>} : memref<64x128xf32, #tpu.memory_space<vmem>>, vector<8x128xf32>,
    %c1_i32 = arith.constant 1 : i32
    %c8_i32_16 = arith.constant 8 : i32
    %41 = arith.muli %c1_i32, %c8_i32_16 : i32
    %42 = tpu.assume_multiple %41, 8 : i32
    %c0_17 = arith.constant 0 : index
    %c0_18 = arith.constant 0 : index
    %43 = vector.load %arg4[%c0_17, %c0_18] : memref<8x128xf32, #tpu.memory_space<vmem>>, vector<8x128xf32>
    %c0_19 = arith.constant 0 : index
    %c0_20 = arith.constant 0 : index
    %44 = vector.load %arg5[%c0_19, %c0_20] : memref<8x128xf32, #tpu.memory_space<vmem>>, vector<8x128xf32>
    %45 = arith.index_cast %42 : i32 to index
    %c0_21 = arith.constant 0 : index
    %46 = vector.load %arg1[%45, %c0_21] : memref<64x512xf32, #tpu.memory_space<vmem>>, vector<8x512xf32>
    %c0_22 = arith.constant 0 : index
    %c0_23 = arith.constant 0 : index
    %47 = vector.load %arg2[%c0_22, %c0_23] : memref<128x512xf32, #tpu.memory_space<vmem>>, vector<128x512xf32>
    %cst_24 = arith.constant dense<0.000000e+00> : vector<8x512xf32>
    %48 = tpu.matmul %43, %47, %cst_24 {dimension_numbers = #tpu.dot_dimension_numbers<[1], [0], [0], [1], [0, 0, 1, 1], [], []>} : vector<8x128xf32>, vector<128x512xf32>, vector<8x512xf32> -> vector<8x512xf32>
    %49 = arith.addf %46, %48 : vector<8x512xf32>
    %50 = vector.extract_strided_slice %49 {offsets = [0, 0], sizes = [8, 128], strides = [1, 1]} : vector<8x512xf32> to vector<8x128xf32>
    %51 = arith.negf %50 : vector<8x128xf32>
    %52 = math.exp %51 : vector<8x128xf32>
    %cst_25 = arith.constant 1.000000e+00 : f32
    %53 = vector.broadcast %cst_25 : f32 to vector<8x128xf32>
    %54 = arith.addf %53, %52 : vector<8x128xf32>
    %55 = arith.divf %53, %54 : vector<8x128xf32>
    %56 = vector.extract_strided_slice %49 {offsets = [0, 128], sizes = [8, 128], strides = [1, 1]} : vector<8x512xf32> to vector<8x128xf32>
    %57 = arith.negf %56 : vector<8x128xf32>
    %58 = math.exp %57 : vector<8x128xf32>
    %cst_26 = arith.constant 1.000000e+00 : f32
    %59 = vector.broadcast %cst_26 : f32 to vector<8x128xf32>
    %60 = arith.addf %59, %58 : vector<8x128xf32>
    %61 = arith.divf %59, %60 : vector<8x128xf32>
    %62 = vector.extract_strided_slice %49 {offsets = [0, 256], sizes = [8, 128], strides = [1, 1]} : vector<8x512xf32> to vector<8x128xf32>
    %63 = math.tanh %62 : vector<8x128xf32>
    %64 = vector.extract_strided_slice %49 {offsets = [0, 384], sizes = [8, 128], strides = [1, 1]} : vector<8x512xf32> to vector<8x128xf32>
    %65 = arith.negf %64 : vector<8x128xf32>
    %66 = math.exp %65 : vector<8x128xf32>
    %cst_27 = arith.constant 1.000000e+00 : f32
    %67 = vector.broadcast %cst_27 : f32 to vector<8x128xf32>
    %68 = arith.addf %67, %66 : vector<8x128xf32>
    %69 = arith.divf %67, %68 : vector<8x128xf32>
    %70 = arith.mulf %61, %44 : vector<8x128xf32>
    %71 = arith.mulf %55, %63 : vector<8x128xf32>
    %72 = arith.addf %70, %71 : vector<8x128xf32>
    %73 = math.tanh %72 : vector<8x128xf32>
    %74 = arith.mulf %69, %73 : vector<8x128xf32>
    %c0_28 = arith.constant 0 : index
    %c0_29 = arith.constant 0 : index
    %75 = vector.load %arg5[%c0_28, %c0_29] : memref<8x128xf32, #tpu.memory_space<vmem>>, vector<8x128xf32>
    tpu.vector_store %arg5[%c0_28, %c0_29], %72 {strides = array<i32>} : memref<8x128xf32, #tpu.memory_space<vmem>>, vector<8x128xf32>,
    %c0_30 = arith.constant 0 : index
    %c0_31 = arith.constant 0 : index
    %76 = vector.load %arg4[%c0_30, %c0_31] : memref<8x128xf32, #tpu.memory_space<vmem>>, vector<8x128xf32>
    tpu.vector_store %arg4[%c0_30, %c0_31], %74 {strides = array<i32>} : memref<8x128xf32, #tpu.memory_space<vmem>>, vector<8x128xf32>,
    %77 = arith.index_cast %42 : i32 to index
    %c0_32 = arith.constant 0 : index
    %78 = vector.load %arg3[%77, %c0_32] : memref<64x128xf32, #tpu.memory_space<vmem>>, vector<8x128xf32>
    tpu.vector_store %arg3[%77, %c0_32], %74 {strides = array<i32>} : memref<64x128xf32, #tpu.memory_space<vmem>>, vector<8x128xf32>,
    %c2_i32 = arith.constant 2 : i32
    %c8_i32_33 = arith.constant 8 : i32
    %79 = arith.muli %c2_i32, %c8_i32_33 : i32
    %80 = tpu.assume_multiple %79, 8 : i32
    %c0_34 = arith.constant 0 : index
    %c0_35 = arith.constant 0 : index
    %81 = vector.load %arg4[%c0_34, %c0_35] : memref<8x128xf32, #tpu.memory_space<vmem>>, vector<8x128xf32>
    %c0_36 = arith.constant 0 : index
    %c0_37 = arith.constant 0 : index
    %82 = vector.load %arg5[%c0_36, %c0_37] : memref<8x128xf32, #tpu.memory_space<vmem>>, vector<8x128xf32>
    %83 = arith.index_cast %80 : i32 to index
    %c0_38 = arith.constant 0 : index
    %84 = vector.load %arg1[%83, %c0_38] : memref<64x512xf32, #tpu.memory_space<vmem>>, vector<8x512xf32>
    %c0_39 = arith.constant 0 : index
    %c0_40 = arith.constant 0 : index
    %85 = vector.load %arg2[%c0_39, %c0_40] : memref<128x512xf32, #tpu.memory_space<vmem>>, vector<128x512xf32>
    %cst_41 = arith.constant dense<0.000000e+00> : vector<8x512xf32>
    %86 = tpu.matmul %81, %85, %cst_41 {dimension_numbers = #tpu.dot_dimension_numbers<[1], [0], [0], [1], [0, 0, 1, 1], [], []>} : vector<8x128xf32>, vector<128x512xf32>, vector<8x512xf32> -> vector<8x512xf32>
    %87 = arith.addf %84, %86 : vector<8x512xf32>
    %88 = vector.extract_strided_slice %87 {offsets = [0, 0], sizes = [8, 128], strides = [1, 1]} : vector<8x512xf32> to vector<8x128xf32>
    %89 = arith.negf %88 : vector<8x128xf32>
    %90 = math.exp %89 : vector<8x128xf32>
    %cst_42 = arith.constant 1.000000e+00 : f32
    %91 = vector.broadcast %cst_42 : f32 to vector<8x128xf32>
    %92 = arith.addf %91, %90 : vector<8x128xf32>
    %93 = arith.divf %91, %92 : vector<8x128xf32>
    %94 = vector.extract_strided_slice %87 {offsets = [0, 128], sizes = [8, 128], strides = [1, 1]} : vector<8x512xf32> to vector<8x128xf32>
    %95 = arith.negf %94 : vector<8x128xf32>
    %96 = math.exp %95 : vector<8x128xf32>
    %cst_43 = arith.constant 1.000000e+00 : f32
    %97 = vector.broadcast %cst_43 : f32 to vector<8x128xf32>
    %98 = arith.addf %97, %96 : vector<8x128xf32>
    %99 = arith.divf %97, %98 : vector<8x128xf32>
    %100 = vector.extract_strided_slice %87 {offsets = [0, 256], sizes = [8, 128], strides = [1, 1]} : vector<8x512xf32> to vector<8x128xf32>
    %101 = math.tanh %100 : vector<8x128xf32>
    %102 = vector.extract_strided_slice %87 {offsets = [0, 384], sizes = [8, 128], strides = [1, 1]} : vector<8x512xf32> to vector<8x128xf32>
    %103 = arith.negf %102 : vector<8x128xf32>
    %104 = math.exp %103 : vector<8x128xf32>
    %cst_44 = arith.constant 1.000000e+00 : f32
    %105 = vector.broadcast %cst_44 : f32 to vector<8x128xf32>
    %106 = arith.addf %105, %104 : vector<8x128xf32>
    %107 = arith.divf %105, %106 : vector<8x128xf32>
    %108 = arith.mulf %99, %82 : vector<8x128xf32>
    %109 = arith.mulf %93, %101 : vector<8x128xf32>
    %110 = arith.addf %108, %109 : vector<8x128xf32>
    %111 = math.tanh %110 : vector<8x128xf32>
    %112 = arith.mulf %107, %111 : vector<8x128xf32>
    %c0_45 = arith.constant 0 : index
    %c0_46 = arith.constant 0 : index
    %113 = vector.load %arg5[%c0_45, %c0_46] : memref<8x128xf32, #tpu.memory_space<vmem>>, vector<8x128xf32>
    tpu.vector_store %arg5[%c0_45, %c0_46], %110 {strides = array<i32>} : memref<8x128xf32, #tpu.memory_space<vmem>>, vector<8x128xf32>,
    %c0_47 = arith.constant 0 : index
    %c0_48 = arith.constant 0 : index
    %114 = vector.load %arg4[%c0_47, %c0_48] : memref<8x128xf32, #tpu.memory_space<vmem>>, vector<8x128xf32>
    tpu.vector_store %arg4[%c0_47, %c0_48], %112 {strides = array<i32>} : memref<8x128xf32, #tpu.memory_space<vmem>>, vector<8x128xf32>,
    %115 = arith.index_cast %80 : i32 to index
    %c0_49 = arith.constant 0 : index
    %116 = vector.load %arg3[%115, %c0_49] : memref<64x128xf32, #tpu.memory_space<vmem>>, vector<8x128xf32>
    tpu.vector_store %arg3[%115, %c0_49], %112 {strides = array<i32>} : memref<64x128xf32, #tpu.memory_space<vmem>>, vector<8x128xf32>,
    %c3_i32 = arith.constant 3 : i32
    %c8_i32_50 = arith.constant 8 : i32
    %117 = arith.muli %c3_i32, %c8_i32_50 : i32
    %118 = tpu.assume_multiple %117, 8 : i32
    %c0_51 = arith.constant 0 : index
    %c0_52 = arith.constant 0 : index
    %119 = vector.load %arg4[%c0_51, %c0_52] : memref<8x128xf32, #tpu.memory_space<vmem>>, vector<8x128xf32>
    %c0_53 = arith.constant 0 : index
    %c0_54 = arith.constant 0 : index
    %120 = vector.load %arg5[%c0_53, %c0_54] : memref<8x128xf32, #tpu.memory_space<vmem>>, vector<8x128xf32>
    %121 = arith.index_cast %118 : i32 to index
    %c0_55 = arith.constant 0 : index
    %122 = vector.load %arg1[%121, %c0_55] : memref<64x512xf32, #tpu.memory_space<vmem>>, vector<8x512xf32>
    %c0_56 = arith.constant 0 : index
    %c0_57 = arith.constant 0 : index
    %123 = vector.load %arg2[%c0_56, %c0_57] : memref<128x512xf32, #tpu.memory_space<vmem>>, vector<128x512xf32>
    %cst_58 = arith.constant dense<0.000000e+00> : vector<8x512xf32>
    %124 = tpu.matmul %119, %123, %cst_58 {dimension_numbers = #tpu.dot_dimension_numbers<[1], [0], [0], [1], [0, 0, 1, 1], [], []>} : vector<8x128xf32>, vector<128x512xf32>, vector<8x512xf32> -> vector<8x512xf32>
    %125 = arith.addf %122, %124 : vector<8x512xf32>
    %126 = vector.extract_strided_slice %125 {offsets = [0, 0], sizes = [8, 128], strides = [1, 1]} : vector<8x512xf32> to vector<8x128xf32>
    %127 = arith.negf %126 : vector<8x128xf32>
    %128 = math.exp %127 : vector<8x128xf32>
    %cst_59 = arith.constant 1.000000e+00 : f32
    %129 = vector.broadcast %cst_59 : f32 to vector<8x128xf32>
    %130 = arith.addf %129, %128 : vector<8x128xf32>
    %131 = arith.divf %129, %130 : vector<8x128xf32>
    %132 = vector.extract_strided_slice %125 {offsets = [0, 128], sizes = [8, 128], strides = [1, 1]} : vector<8x512xf32> to vector<8x128xf32>
    %133 = arith.negf %132 : vector<8x128xf32>
    %134 = math.exp %133 : vector<8x128xf32>
    %cst_60 = arith.constant 1.000000e+00 : f32
    %135 = vector.broadcast %cst_60 : f32 to vector<8x128xf32>
    %136 = arith.addf %135, %134 : vector<8x128xf32>
    %137 = arith.divf %135, %136 : vector<8x128xf32>
    %138 = vector.extract_strided_slice %125 {offsets = [0, 256], sizes = [8, 128], strides = [1, 1]} : vector<8x512xf32> to vector<8x128xf32>
    %139 = math.tanh %138 : vector<8x128xf32>
    %140 = vector.extract_strided_slice %125 {offsets = [0, 384], sizes = [8, 128], strides = [1, 1]} : vector<8x512xf32> to vector<8x128xf32>
    %141 = arith.negf %140 : vector<8x128xf32>
    %142 = math.exp %141 : vector<8x128xf32>
    %cst_61 = arith.constant 1.000000e+00 : f32
    %143 = vector.broadcast %cst_61 : f32 to vector<8x128xf32>
    %144 = arith.addf %143, %142 : vector<8x128xf32>
    %145 = arith.divf %143, %144 : vector<8x128xf32>
    %146 = arith.mulf %137, %120 : vector<8x128xf32>
    %147 = arith.mulf %131, %139 : vector<8x128xf32>
    %148 = arith.addf %146, %147 : vector<8x128xf32>
    %149 = math.tanh %148 : vector<8x128xf32>
    %150 = arith.mulf %145, %149 : vector<8x128xf32>
    %c0_62 = arith.constant 0 : index
    %c0_63 = arith.constant 0 : index
    %151 = vector.load %arg5[%c0_62, %c0_63] : memref<8x128xf32, #tpu.memory_space<vmem>>, vector<8x128xf32>
    tpu.vector_store %arg5[%c0_62, %c0_63], %148 {strides = array<i32>} : memref<8x128xf32, #tpu.memory_space<vmem>>, vector<8x128xf32>,
    %c0_64 = arith.constant 0 : index
    %c0_65 = arith.constant 0 : index
    %152 = vector.load %arg4[%c0_64, %c0_65] : memref<8x128xf32, #tpu.memory_space<vmem>>, vector<8x128xf32>
    tpu.vector_store %arg4[%c0_64, %c0_65], %150 {strides = array<i32>} : memref<8x128xf32, #tpu.memory_space<vmem>>, vector<8x128xf32>,
    %153 = arith.index_cast %118 : i32 to index
    %c0_66 = arith.constant 0 : index
    %154 = vector.load %arg3[%153, %c0_66] : memref<64x128xf32, #tpu.memory_space<vmem>>, vector<8x128xf32>
    tpu.vector_store %arg3[%153, %c0_66], %150 {strides = array<i32>} : memref<64x128xf32, #tpu.memory_space<vmem>>, vector<8x128xf32>,
    %c4_i32 = arith.constant 4 : i32
    %c8_i32_67 = arith.constant 8 : i32
    %155 = arith.muli %c4_i32, %c8_i32_67 : i32
    %156 = tpu.assume_multiple %155, 8 : i32
    %c0_68 = arith.constant 0 : index
    %c0_69 = arith.constant 0 : index
    %157 = vector.load %arg4[%c0_68, %c0_69] : memref<8x128xf32, #tpu.memory_space<vmem>>, vector<8x128xf32>
    %c0_70 = arith.constant 0 : index
    %c0_71 = arith.constant 0 : index
    %158 = vector.load %arg5[%c0_70, %c0_71] : memref<8x128xf32, #tpu.memory_space<vmem>>, vector<8x128xf32>
    %159 = arith.index_cast %156 : i32 to index
    %c0_72 = arith.constant 0 : index
    %160 = vector.load %arg1[%159, %c0_72] : memref<64x512xf32, #tpu.memory_space<vmem>>, vector<8x512xf32>
    %c0_73 = arith.constant 0 : index
    %c0_74 = arith.constant 0 : index
    %161 = vector.load %arg2[%c0_73, %c0_74] : memref<128x512xf32, #tpu.memory_space<vmem>>, vector<128x512xf32>
    %cst_75 = arith.constant dense<0.000000e+00> : vector<8x512xf32>
    %162 = tpu.matmul %157, %161, %cst_75 {dimension_numbers = #tpu.dot_dimension_numbers<[1], [0], [0], [1], [0, 0, 1, 1], [], []>} : vector<8x128xf32>, vector<128x512xf32>, vector<8x512xf32> -> vector<8x512xf32>
    %163 = arith.addf %160, %162 : vector<8x512xf32>
    %164 = vector.extract_strided_slice %163 {offsets = [0, 0], sizes = [8, 128], strides = [1, 1]} : vector<8x512xf32> to vector<8x128xf32>
    %165 = arith.negf %164 : vector<8x128xf32>
    %166 = math.exp %165 : vector<8x128xf32>
    %cst_76 = arith.constant 1.000000e+00 : f32
    %167 = vector.broadcast %cst_76 : f32 to vector<8x128xf32>
    %168 = arith.addf %167, %166 : vector<8x128xf32>
    %169 = arith.divf %167, %168 : vector<8x128xf32>
    %170 = vector.extract_strided_slice %163 {offsets = [0, 128], sizes = [8, 128], strides = [1, 1]} : vector<8x512xf32> to vector<8x128xf32>
    %171 = arith.negf %170 : vector<8x128xf32>
    %172 = math.exp %171 : vector<8x128xf32>
    %cst_77 = arith.constant 1.000000e+00 : f32
    %173 = vector.broadcast %cst_77 : f32 to vector<8x128xf32>
    %174 = arith.addf %173, %172 : vector<8x128xf32>
    %175 = arith.divf %173, %174 : vector<8x128xf32>
    %176 = vector.extract_strided_slice %163 {offsets = [0, 256], sizes = [8, 128], strides = [1, 1]} : vector<8x512xf32> to vector<8x128xf32>
    %177 = math.tanh %176 : vector<8x128xf32>
    %178 = vector.extract_strided_slice %163 {offsets = [0, 384], sizes = [8, 128], strides = [1, 1]} : vector<8x512xf32> to vector<8x128xf32>
    %179 = arith.negf %178 : vector<8x128xf32>
    %180 = math.exp %179 : vector<8x128xf32>
    %cst_78 = arith.constant 1.000000e+00 : f32
    %181 = vector.broadcast %cst_78 : f32 to vector<8x128xf32>
    %182 = arith.addf %181, %180 : vector<8x128xf32>
    %183 = arith.divf %181, %182 : vector<8x128xf32>
    %184 = arith.mulf %175, %158 : vector<8x128xf32>
    %185 = arith.mulf %169, %177 : vector<8x128xf32>
    %186 = arith.addf %184, %185 : vector<8x128xf32>
    %187 = math.tanh %186 : vector<8x128xf32>
    %188 = arith.mulf %183, %187 : vector<8x128xf32>
    %c0_79 = arith.constant 0 : index
    %c0_80 = arith.constant 0 : index
    %189 = vector.load %arg5[%c0_79, %c0_80] : memref<8x128xf32, #tpu.memory_space<vmem>>, vector<8x128xf32>
    tpu.vector_store %arg5[%c0_79, %c0_80], %186 {strides = array<i32>} : memref<8x128xf32, #tpu.memory_space<vmem>>, vector<8x128xf32>,
    %c0_81 = arith.constant 0 : index
    %c0_82 = arith.constant 0 : index
    %190 = vector.load %arg4[%c0_81, %c0_82] : memref<8x128xf32, #tpu.memory_space<vmem>>, vector<8x128xf32>
    tpu.vector_store %arg4[%c0_81, %c0_82], %188 {strides = array<i32>} : memref<8x128xf32, #tpu.memory_space<vmem>>, vector<8x128xf32>,
    %191 = arith.index_cast %156 : i32 to index
    %c0_83 = arith.constant 0 : index
    %192 = vector.load %arg3[%191, %c0_83] : memref<64x128xf32, #tpu.memory_space<vmem>>, vector<8x128xf32>
    tpu.vector_store %arg3[%191, %c0_83], %188 {strides = array<i32>} : memref<64x128xf32, #tpu.memory_space<vmem>>, vector<8x128xf32>,
    %c5_i32 = arith.constant 5 : i32
    %c8_i32_84 = arith.constant 8 : i32
    %193 = arith.muli %c5_i32, %c8_i32_84 : i32
    %194 = tpu.assume_multiple %193, 8 : i32
    %c0_85 = arith.constant 0 : index
    %c0_86 = arith.constant 0 : index
    %195 = vector.load %arg4[%c0_85, %c0_86] : memref<8x128xf32, #tpu.memory_space<vmem>>, vector<8x128xf32>
    %c0_87 = arith.constant 0 : index
    %c0_88 = arith.constant 0 : index
    %196 = vector.load %arg5[%c0_87, %c0_88] : memref<8x128xf32, #tpu.memory_space<vmem>>, vector<8x128xf32>
    %197 = arith.index_cast %194 : i32 to index
    %c0_89 = arith.constant 0 : index
    %198 = vector.load %arg1[%197, %c0_89] : memref<64x512xf32, #tpu.memory_space<vmem>>, vector<8x512xf32>
    %c0_90 = arith.constant 0 : index
    %c0_91 = arith.constant 0 : index
    %199 = vector.load %arg2[%c0_90, %c0_91] : memref<128x512xf32, #tpu.memory_space<vmem>>, vector<128x512xf32>
    %cst_92 = arith.constant dense<0.000000e+00> : vector<8x512xf32>
    %200 = tpu.matmul %195, %199, %cst_92 {dimension_numbers = #tpu.dot_dimension_numbers<[1], [0], [0], [1], [0, 0, 1, 1], [], []>} : vector<8x128xf32>, vector<128x512xf32>, vector<8x512xf32> -> vector<8x512xf32>
    %201 = arith.addf %198, %200 : vector<8x512xf32>
    %202 = vector.extract_strided_slice %201 {offsets = [0, 0], sizes = [8, 128], strides = [1, 1]} : vector<8x512xf32> to vector<8x128xf32>
    %203 = arith.negf %202 : vector<8x128xf32>
    %204 = math.exp %203 : vector<8x128xf32>
    %cst_93 = arith.constant 1.000000e+00 : f32
    %205 = vector.broadcast %cst_93 : f32 to vector<8x128xf32>
    %206 = arith.addf %205, %204 : vector<8x128xf32>
    %207 = arith.divf %205, %206 : vector<8x128xf32>
    %208 = vector.extract_strided_slice %201 {offsets = [0, 128], sizes = [8, 128], strides = [1, 1]} : vector<8x512xf32> to vector<8x128xf32>
    %209 = arith.negf %208 : vector<8x128xf32>
    %210 = math.exp %209 : vector<8x128xf32>
    %cst_94 = arith.constant 1.000000e+00 : f32
    %211 = vector.broadcast %cst_94 : f32 to vector<8x128xf32>
    %212 = arith.addf %211, %210 : vector<8x128xf32>
    %213 = arith.divf %211, %212 : vector<8x128xf32>
    %214 = vector.extract_strided_slice %201 {offsets = [0, 256], sizes = [8, 128], strides = [1, 1]} : vector<8x512xf32> to vector<8x128xf32>
    %215 = math.tanh %214 : vector<8x128xf32>
    %216 = vector.extract_strided_slice %201 {offsets = [0, 384], sizes = [8, 128], strides = [1, 1]} : vector<8x512xf32> to vector<8x128xf32>
    %217 = arith.negf %216 : vector<8x128xf32>
    %218 = math.exp %217 : vector<8x128xf32>
    %cst_95 = arith.constant 1.000000e+00 : f32
    %219 = vector.broadcast %cst_95 : f32 to vector<8x128xf32>
    %220 = arith.addf %219, %218 : vector<8x128xf32>
    %221 = arith.divf %219, %220 : vector<8x128xf32>
    %222 = arith.mulf %213, %196 : vector<8x128xf32>
    %223 = arith.mulf %207, %215 : vector<8x128xf32>
    %224 = arith.addf %222, %223 : vector<8x128xf32>
    %225 = math.tanh %224 : vector<8x128xf32>
    %226 = arith.mulf %221, %225 : vector<8x128xf32>
    %c0_96 = arith.constant 0 : index
    %c0_97 = arith.constant 0 : index
    %227 = vector.load %arg5[%c0_96, %c0_97] : memref<8x128xf32, #tpu.memory_space<vmem>>, vector<8x128xf32>
    tpu.vector_store %arg5[%c0_96, %c0_97], %224 {strides = array<i32>} : memref<8x128xf32, #tpu.memory_space<vmem>>, vector<8x128xf32>,
    %c0_98 = arith.constant 0 : index
    %c0_99 = arith.constant 0 : index
    %228 = vector.load %arg4[%c0_98, %c0_99] : memref<8x128xf32, #tpu.memory_space<vmem>>, vector<8x128xf32>
    tpu.vector_store %arg4[%c0_98, %c0_99], %226 {strides = array<i32>} : memref<8x128xf32, #tpu.memory_space<vmem>>, vector<8x128xf32>,
    %229 = arith.index_cast %194 : i32 to index
    %c0_100 = arith.constant 0 : index
    %230 = vector.load %arg3[%229, %c0_100] : memref<64x128xf32, #tpu.memory_space<vmem>>, vector<8x128xf32>
    tpu.vector_store %arg3[%229, %c0_100], %226 {strides = array<i32>} : memref<64x128xf32, #tpu.memory_space<vmem>>, vector<8x128xf32>,
    %c6_i32 = arith.constant 6 : i32
    %c8_i32_101 = arith.constant 8 : i32
    %231 = arith.muli %c6_i32, %c8_i32_101 : i32
    %232 = tpu.assume_multiple %231, 8 : i32
    %c0_102 = arith.constant 0 : index
    %c0_103 = arith.constant 0 : index
    %233 = vector.load %arg4[%c0_102, %c0_103] : memref<8x128xf32, #tpu.memory_space<vmem>>, vector<8x128xf32>
    %c0_104 = arith.constant 0 : index
    %c0_105 = arith.constant 0 : index
    %234 = vector.load %arg5[%c0_104, %c0_105] : memref<8x128xf32, #tpu.memory_space<vmem>>, vector<8x128xf32>
    %235 = arith.index_cast %232 : i32 to index
    %c0_106 = arith.constant 0 : index
    %236 = vector.load %arg1[%235, %c0_106] : memref<64x512xf32, #tpu.memory_space<vmem>>, vector<8x512xf32>
    %c0_107 = arith.constant 0 : index
    %c0_108 = arith.constant 0 : index
    %237 = vector.load %arg2[%c0_107, %c0_108] : memref<128x512xf32, #tpu.memory_space<vmem>>, vector<128x512xf32>
    %cst_109 = arith.constant dense<0.000000e+00> : vector<8x512xf32>
    %238 = tpu.matmul %233, %237, %cst_109 {dimension_numbers = #tpu.dot_dimension_numbers<[1], [0], [0], [1], [0, 0, 1, 1], [], []>} : vector<8x128xf32>, vector<128x512xf32>, vector<8x512xf32> -> vector<8x512xf32>
    %239 = arith.addf %236, %238 : vector<8x512xf32>
    %240 = vector.extract_strided_slice %239 {offsets = [0, 0], sizes = [8, 128], strides = [1, 1]} : vector<8x512xf32> to vector<8x128xf32>
    %241 = arith.negf %240 : vector<8x128xf32>
    %242 = math.exp %241 : vector<8x128xf32>
    %cst_110 = arith.constant 1.000000e+00 : f32
    %243 = vector.broadcast %cst_110 : f32 to vector<8x128xf32>
    %244 = arith.addf %243, %242 : vector<8x128xf32>
    %245 = arith.divf %243, %244 : vector<8x128xf32>
    %246 = vector.extract_strided_slice %239 {offsets = [0, 128], sizes = [8, 128], strides = [1, 1]} : vector<8x512xf32> to vector<8x128xf32>
    %247 = arith.negf %246 : vector<8x128xf32>
    %248 = math.exp %247 : vector<8x128xf32>
    %cst_111 = arith.constant 1.000000e+00 : f32
    %249 = vector.broadcast %cst_111 : f32 to vector<8x128xf32>
    %250 = arith.addf %249, %248 : vector<8x128xf32>
    %251 = arith.divf %249, %250 : vector<8x128xf32>
    %252 = vector.extract_strided_slice %239 {offsets = [0, 256], sizes = [8, 128], strides = [1, 1]} : vector<8x512xf32> to vector<8x128xf32>
    %253 = math.tanh %252 : vector<8x128xf32>
    %254 = vector.extract_strided_slice %239 {offsets = [0, 384], sizes = [8, 128], strides = [1, 1]} : vector<8x512xf32> to vector<8x128xf32>
    %255 = arith.negf %254 : vector<8x128xf32>
    %256 = math.exp %255 : vector<8x128xf32>
    %cst_112 = arith.constant 1.000000e+00 : f32
    %257 = vector.broadcast %cst_112 : f32 to vector<8x128xf32>
    %258 = arith.addf %257, %256 : vector<8x128xf32>
    %259 = arith.divf %257, %258 : vector<8x128xf32>
    %260 = arith.mulf %251, %234 : vector<8x128xf32>
    %261 = arith.mulf %245, %253 : vector<8x128xf32>
    %262 = arith.addf %260, %261 : vector<8x128xf32>
    %263 = math.tanh %262 : vector<8x128xf32>
    %264 = arith.mulf %259, %263 : vector<8x128xf32>
    %c0_113 = arith.constant 0 : index
    %c0_114 = arith.constant 0 : index
    %265 = vector.load %arg5[%c0_113, %c0_114] : memref<8x128xf32, #tpu.memory_space<vmem>>, vector<8x128xf32>
    tpu.vector_store %arg5[%c0_113, %c0_114], %262 {strides = array<i32>} : memref<8x128xf32, #tpu.memory_space<vmem>>, vector<8x128xf32>,
    %c0_115 = arith.constant 0 : index
    %c0_116 = arith.constant 0 : index
    %266 = vector.load %arg4[%c0_115, %c0_116] : memref<8x128xf32, #tpu.memory_space<vmem>>, vector<8x128xf32>
    tpu.vector_store %arg4[%c0_115, %c0_116], %264 {strides = array<i32>} : memref<8x128xf32, #tpu.memory_space<vmem>>, vector<8x128xf32>,
    %267 = arith.index_cast %232 : i32 to index
    %c0_117 = arith.constant 0 : index
    %268 = vector.load %arg3[%267, %c0_117] : memref<64x128xf32, #tpu.memory_space<vmem>>, vector<8x128xf32>
    tpu.vector_store %arg3[%267, %c0_117], %264 {strides = array<i32>} : memref<64x128xf32, #tpu.memory_space<vmem>>, vector<8x128xf32>,
    %c7_i32 = arith.constant 7 : i32
    %c8_i32_118 = arith.constant 8 : i32
    %269 = arith.muli %c7_i32, %c8_i32_118 : i32
    %270 = tpu.assume_multiple %269, 8 : i32
    %c0_119 = arith.constant 0 : index
    %c0_120 = arith.constant 0 : index
    %271 = vector.load %arg4[%c0_119, %c0_120] : memref<8x128xf32, #tpu.memory_space<vmem>>, vector<8x128xf32>
    %c0_121 = arith.constant 0 : index
    %c0_122 = arith.constant 0 : index
    %272 = vector.load %arg5[%c0_121, %c0_122] : memref<8x128xf32, #tpu.memory_space<vmem>>, vector<8x128xf32>
    %273 = arith.index_cast %270 : i32 to index
    %c0_123 = arith.constant 0 : index
    %274 = vector.load %arg1[%273, %c0_123] : memref<64x512xf32, #tpu.memory_space<vmem>>, vector<8x512xf32>
    %c0_124 = arith.constant 0 : index
    %c0_125 = arith.constant 0 : index
    %275 = vector.load %arg2[%c0_124, %c0_125] : memref<128x512xf32, #tpu.memory_space<vmem>>, vector<128x512xf32>
    %cst_126 = arith.constant dense<0.000000e+00> : vector<8x512xf32>
    %276 = tpu.matmul %271, %275, %cst_126 {dimension_numbers = #tpu.dot_dimension_numbers<[1], [0], [0], [1], [0, 0, 1, 1], [], []>} : vector<8x128xf32>, vector<128x512xf32>, vector<8x512xf32> -> vector<8x512xf32>
    %277 = arith.addf %274, %276 : vector<8x512xf32>
    %278 = vector.extract_strided_slice %277 {offsets = [0, 0], sizes = [8, 128], strides = [1, 1]} : vector<8x512xf32> to vector<8x128xf32>
    %279 = arith.negf %278 : vector<8x128xf32>
    %280 = math.exp %279 : vector<8x128xf32>
    %cst_127 = arith.constant 1.000000e+00 : f32
    %281 = vector.broadcast %cst_127 : f32 to vector<8x128xf32>
    %282 = arith.addf %281, %280 : vector<8x128xf32>
    %283 = arith.divf %281, %282 : vector<8x128xf32>
    %284 = vector.extract_strided_slice %277 {offsets = [0, 128], sizes = [8, 128], strides = [1, 1]} : vector<8x512xf32> to vector<8x128xf32>
    %285 = arith.negf %284 : vector<8x128xf32>
    %286 = math.exp %285 : vector<8x128xf32>
    %cst_128 = arith.constant 1.000000e+00 : f32
    %287 = vector.broadcast %cst_128 : f32 to vector<8x128xf32>
    %288 = arith.addf %287, %286 : vector<8x128xf32>
    %289 = arith.divf %287, %288 : vector<8x128xf32>
    %290 = vector.extract_strided_slice %277 {offsets = [0, 256], sizes = [8, 128], strides = [1, 1]} : vector<8x512xf32> to vector<8x128xf32>
    %291 = math.tanh %290 : vector<8x128xf32>
    %292 = vector.extract_strided_slice %277 {offsets = [0, 384], sizes = [8, 128], strides = [1, 1]} : vector<8x512xf32> to vector<8x128xf32>
    %293 = arith.negf %292 : vector<8x128xf32>
    %294 = math.exp %293 : vector<8x128xf32>
    %cst_129 = arith.constant 1.000000e+00 : f32
    %295 = vector.broadcast %cst_129 : f32 to vector<8x128xf32>
    %296 = arith.addf %295, %294 : vector<8x128xf32>
    %297 = arith.divf %295, %296 : vector<8x128xf32>
    %298 = arith.mulf %289, %272 : vector<8x128xf32>
    %299 = arith.mulf %283, %291 : vector<8x128xf32>
    %300 = arith.addf %298, %299 : vector<8x128xf32>
    %301 = math.tanh %300 : vector<8x128xf32>
    %302 = arith.mulf %297, %301 : vector<8x128xf32>
    %c0_130 = arith.constant 0 : index
    %c0_131 = arith.constant 0 : index
    %303 = vector.load %arg5[%c0_130, %c0_131] : memref<8x128xf32, #tpu.memory_space<vmem>>, vector<8x128xf32>
    tpu.vector_store %arg5[%c0_130, %c0_131], %300 {strides = array<i32>} : memref<8x128xf32, #tpu.memory_space<vmem>>, vector<8x128xf32>,
    %c0_132 = arith.constant 0 : index
    %c0_133 = arith.constant 0 : index
    %304 = vector.load %arg4[%c0_132, %c0_133] : memref<8x128xf32, #tpu.memory_space<vmem>>, vector<8x128xf32>
    tpu.vector_store %arg4[%c0_132, %c0_133], %302 {strides = array<i32>} : memref<8x128xf32, #tpu.memory_space<vmem>>, vector<8x128xf32>,
    %305 = arith.index_cast %270 : i32 to index
    %c0_134 = arith.constant 0 : index
    %306 = vector.load %arg3[%305, %c0_134] : memref<64x128xf32, #tpu.memory_space<vmem>>, vector<8x128xf32>
    tpu.vector_store %arg3[%305, %c0_134], %302 {strides = array<i32>} : memref<64x128xf32, #tpu.memory_space<vmem>>, vector<8x128xf32>,
    %c8_i32_135 = arith.constant 8 : i32
    return
  }
  func.func @transform_0(%arg0: i32) -> (i32, i32) {
    %c0_i32 = arith.constant 0 : i32
    %c0_i32_0 = arith.constant 0 : i32
    return %arg0, %c0_i32 : i32, i32
  }
  func.func @transform_1(%arg0: i32) -> (i32, i32) {
    %c0_i32 = arith.constant 0 : i32
    %c0_i32_0 = arith.constant 0 : i32
    %c0_i32_1 = arith.constant 0 : i32
    return %c0_i32, %c0_i32_0 : i32, i32
  }
  func.func @transform_2(%arg0: i32) -> (i32, i32) {
    %c0_i32 = arith.constant 0 : i32
    %c0_i32_0 = arith.constant 0 : i32
    return %arg0, %c0_i32 : i32, i32
  }
}

module attributes {stable_mosaic.version = 11 : i64} {
  func.func @_matmul_bias_kernel(%arg0: i32, %arg1: memref<64x128xf32, #tpu.memory_space<vmem>>, %arg2: memref<128x128xf32, #tpu.memory_space<vmem>>, %arg3: memref<1x128xf32, #tpu.memory_space<vmem>>, %arg4: memref<64x128xf32, #tpu.memory_space<vmem>>) attributes {dimension_semantics = [#tpu.dimension_semantics<parallel>], iteration_bounds = array<i64: 1>, scalar_prefetch = 0 : i64, scratch_operands = 0 : i64, tpu.core_type = #tpu.core_type<tc>, window_params = [{transform_indices = @transform_0, window_bounds = array<i64: 64, 128>}, {pipeline_mode = #tpu.pipeline_mode<synchronous>, transform_indices = @transform_1, window_bounds = array<i64: 128, 128>}, {pipeline_mode = #tpu.pipeline_mode<synchronous>, transform_indices = @transform_2, window_bounds = array<i64: 1, 128>}, {transform_indices = @transform_3, window_bounds = array<i64: 64, 128>}]} {
    %c0 = arith.constant 0 : index
    %c0_0 = arith.constant 0 : index
    %0 = vector.load %arg1[%c0, %c0_0] : memref<64x128xf32, #tpu.memory_space<vmem>>, vector<64x128xf32>
    %c0_1 = arith.constant 0 : index
    %c0_2 = arith.constant 0 : index
    %1 = vector.load %arg2[%c0_1, %c0_2] : memref<128x128xf32, #tpu.memory_space<vmem>>, vector<128x128xf32>
    %cst = arith.constant dense<0.000000e+00> : vector<64x128xf32>
    %2 = tpu.matmul %0, %1, %cst {dimension_numbers = #tpu.dot_dimension_numbers<[1], [0], [0], [1], [0, 0, 1, 1], [], []>} : vector<64x128xf32>, vector<128x128xf32>, vector<64x128xf32> -> vector<64x128xf32>
    %c0_3 = arith.constant 0 : index
    %c0_4 = arith.constant 0 : index
    %3 = vector.load %arg3[%c0_3, %c0_4] : memref<1x128xf32, #tpu.memory_space<vmem>>, vector<1x128xf32>
    %4 = vector.broadcast %3 : vector<1x128xf32> to vector<64x128xf32>
    %5 = arith.addf %2, %4 : vector<64x128xf32>
    %c0_5 = arith.constant 0 : index
    %c0_6 = arith.constant 0 : index
    %6 = vector.load %arg4[%c0_5, %c0_6] : memref<64x128xf32, #tpu.memory_space<vmem>>, vector<64x128xf32>
    tpu.vector_store %arg4[%c0_5, %c0_6], %5 {strides = array<i32>} : memref<64x128xf32, #tpu.memory_space<vmem>>, vector<64x128xf32>,
    return
  }
  func.func @transform_0(%arg0: i32) -> (i32, i32) {
    %c0_i32 = arith.constant 0 : i32
    %c0_i32_0 = arith.constant 0 : i32
    return %arg0, %c0_i32 : i32, i32
  }
  func.func @transform_1(%arg0: i32) -> (i32, i32) {
    %c0_i32 = arith.constant 0 : i32
    %c0_i32_0 = arith.constant 0 : i32
    %c0_i32_1 = arith.constant 0 : i32
    return %c0_i32, %c0_i32_0 : i32, i32
  }
  func.func @transform_2(%arg0: i32) -> (i32, i32) {
    %c0_i32 = arith.constant 0 : i32
    %c0_i32_0 = arith.constant 0 : i32
    %c0_i32_1 = arith.constant 0 : i32
    return %c0_i32, %c0_i32_0 : i32, i32
  }
  func.func @transform_3(%arg0: i32) -> (i32, i32) {
    %c0_i32 = arith.constant 0 : i32
    %c0_i32_0 = arith.constant 0 : i32
    return %arg0, %c0_i32 : i32, i32
  }
}

module attributes {stable_mosaic.version = 11 : i64} {
  func.func @_lstm_chunk_kernel(%arg0: i32, %arg1: memref<64x128xf32, #tpu.memory_space<vmem>>, %arg2: memref<128x512xf32, #tpu.memory_space<vmem>>, %arg3: memref<128x512xf32, #tpu.memory_space<vmem>>, %arg4: memref<1x512xf32, #tpu.memory_space<vmem>>, %arg5: memref<64x128xf32, #tpu.memory_space<vmem>>, %arg6: memref<8x128xf32, #tpu.memory_space<vmem>>, %arg7: memref<8x128xf32, #tpu.memory_space<vmem>>, %arg8: memref<64x512xf32, #tpu.memory_space<vmem>>) attributes {dimension_semantics = [#tpu.dimension_semantics<arbitrary>], iteration_bounds = array<i64: 1>, scalar_prefetch = 0 : i64, scratch_operands = 3 : i64, tpu.core_type = #tpu.core_type<tc>, window_params = [{transform_indices = @transform_0, window_bounds = array<i64: 64, 128>}, {pipeline_mode = #tpu.pipeline_mode<synchronous>, transform_indices = @transform_1, window_bounds = array<i64: 128, 512>}, {pipeline_mode = #tpu.pipeline_mode<synchronous>, transform_indices = @transform_2, window_bounds = array<i64: 128, 512>}, {pipeline_mode = #tpu.pipeline_mode<synchronous>, transform_indices = @transform_3, window_bounds = array<i64: 1, 512>}, {transform_indices = @transform_4, window_bounds = array<i64: 64, 128>}]} {
    %c0_i32 = arith.constant 0 : i32
    %0 = arith.cmpi eq, %arg0, %c0_i32 : i32
    %1 = arith.extui %0 : i1 to i32
    %c0_i32_0 = arith.constant 0 : i32
    %2 = arith.cmpi ne, %1, %c0_i32_0 : i32
    scf.if %2 {
      %cst_145 = arith.constant 0.000000e+00 : f32
      %314 = vector.broadcast %cst_145 : f32 to vector<8x128xf32>
      %c0_146 = arith.constant 0 : index
      %c0_147 = arith.constant 0 : index
      %315 = vector.load %arg6[%c0_146, %c0_147] : memref<8x128xf32, #tpu.memory_space<vmem>>, vector<8x128xf32>
      tpu.vector_store %arg6[%c0_146, %c0_147], %314 {strides = array<i32>} : memref<8x128xf32, #tpu.memory_space<vmem>>, vector<8x128xf32>,
      %cst_148 = arith.constant 0.000000e+00 : f32
      %316 = vector.broadcast %cst_148 : f32 to vector<8x128xf32>
      %c0_149 = arith.constant 0 : index
      %c0_150 = arith.constant 0 : index
      %317 = vector.load %arg7[%c0_149, %c0_150] : memref<8x128xf32, #tpu.memory_space<vmem>>, vector<8x128xf32>
      tpu.vector_store %arg7[%c0_149, %c0_150], %316 {strides = array<i32>} : memref<8x128xf32, #tpu.memory_space<vmem>>, vector<8x128xf32>,
    } else {
    }
    %c0 = arith.constant 0 : index
    %c0_1 = arith.constant 0 : index
    %3 = vector.load %arg1[%c0, %c0_1] : memref<64x128xf32, #tpu.memory_space<vmem>>, vector<64x128xf32>
    %c0_2 = arith.constant 0 : index
    %c0_3 = arith.constant 0 : index
    %4 = vector.load %arg3[%c0_2, %c0_3] : memref<128x512xf32, #tpu.memory_space<vmem>>, vector<128x512xf32>
    %cst = arith.constant dense<0.000000e+00> : vector<64x512xf32>
    %5 = tpu.matmul %3, %4, %cst {dimension_numbers = #tpu.dot_dimension_numbers<[1], [0], [0], [1], [0, 0, 1, 1], [], []>} : vector<64x128xf32>, vector<128x512xf32>, vector<64x512xf32> -> vector<64x512xf32>
    %c0_4 = arith.constant 0 : index
    %c0_5 = arith.constant 0 : index
    %6 = vector.load %arg4[%c0_4, %c0_5] : memref<1x512xf32, #tpu.memory_space<vmem>>, vector<1x512xf32>
    %7 = vector.broadcast %6 : vector<1x512xf32> to vector<64x512xf32>
    %8 = arith.addf %5, %7 : vector<64x512xf32>
    %c0_6 = arith.constant 0 : index
    %c0_7 = arith.constant 0 : index
    %9 = vector.load %arg8[%c0_6, %c0_7] : memref<64x512xf32, #tpu.memory_space<vmem>>, vector<64x512xf32>
    tpu.vector_store %arg8[%c0_6, %c0_7], %8 {strides = array<i32>} : memref<64x512xf32, #tpu.memory_space<vmem>>, vector<64x512xf32>,
    %c0_i32_8 = arith.constant 0 : i32
    %c8_i32 = arith.constant 8 : i32
    %10 = arith.muli %c0_i32_8, %c8_i32 : i32
    %11 = tpu.assume_multiple %10, 8 : i32
    %c0_9 = arith.constant 0 : index
    %c0_10 = arith.constant 0 : index
    %12 = vector.load %arg6[%c0_9, %c0_10] : memref<8x128xf32, #tpu.memory_space<vmem>>, vector<8x128xf32>
    %c0_11 = arith.constant 0 : index
    %c0_12 = arith.constant 0 : index
    %13 = vector.load %arg7[%c0_11, %c0_12] : memref<8x128xf32, #tpu.memory_space<vmem>>, vector<8x128xf32>
    %14 = arith.index_cast %11 : i32 to index
    %c0_13 = arith.constant 0 : index
    %15 = vector.load %arg8[%14, %c0_13] : memref<64x512xf32, #tpu.memory_space<vmem>>, vector<8x512xf32>
    %c0_14 = arith.constant 0 : index
    %c0_15 = arith.constant 0 : index
    %16 = vector.load %arg2[%c0_14, %c0_15] : memref<128x512xf32, #tpu.memory_space<vmem>>, vector<128x512xf32>
    %cst_16 = arith.constant dense<0.000000e+00> : vector<8x512xf32>
    %17 = tpu.matmul %12, %16, %cst_16 {dimension_numbers = #tpu.dot_dimension_numbers<[1], [0], [0], [1], [0, 0, 1, 1], [], []>} : vector<8x128xf32>, vector<128x512xf32>, vector<8x512xf32> -> vector<8x512xf32>
    %18 = arith.addf %15, %17 : vector<8x512xf32>
    %19 = vector.extract_strided_slice %18 {offsets = [0, 0], sizes = [8, 128], strides = [1, 1]} : vector<8x512xf32> to vector<8x128xf32>
    %20 = arith.negf %19 : vector<8x128xf32>
    %21 = math.exp %20 : vector<8x128xf32>
    %cst_17 = arith.constant 1.000000e+00 : f32
    %22 = vector.broadcast %cst_17 : f32 to vector<8x128xf32>
    %23 = arith.addf %22, %21 : vector<8x128xf32>
    %24 = arith.divf %22, %23 : vector<8x128xf32>
    %25 = vector.extract_strided_slice %18 {offsets = [0, 128], sizes = [8, 128], strides = [1, 1]} : vector<8x512xf32> to vector<8x128xf32>
    %26 = arith.negf %25 : vector<8x128xf32>
    %27 = math.exp %26 : vector<8x128xf32>
    %cst_18 = arith.constant 1.000000e+00 : f32
    %28 = vector.broadcast %cst_18 : f32 to vector<8x128xf32>
    %29 = arith.addf %28, %27 : vector<8x128xf32>
    %30 = arith.divf %28, %29 : vector<8x128xf32>
    %31 = vector.extract_strided_slice %18 {offsets = [0, 256], sizes = [8, 128], strides = [1, 1]} : vector<8x512xf32> to vector<8x128xf32>
    %32 = math.tanh %31 : vector<8x128xf32>
    %33 = vector.extract_strided_slice %18 {offsets = [0, 384], sizes = [8, 128], strides = [1, 1]} : vector<8x512xf32> to vector<8x128xf32>
    %34 = arith.negf %33 : vector<8x128xf32>
    %35 = math.exp %34 : vector<8x128xf32>
    %cst_19 = arith.constant 1.000000e+00 : f32
    %36 = vector.broadcast %cst_19 : f32 to vector<8x128xf32>
    %37 = arith.addf %36, %35 : vector<8x128xf32>
    %38 = arith.divf %36, %37 : vector<8x128xf32>
    %39 = arith.mulf %30, %13 : vector<8x128xf32>
    %40 = arith.mulf %24, %32 : vector<8x128xf32>
    %41 = arith.addf %39, %40 : vector<8x128xf32>
    %42 = math.tanh %41 : vector<8x128xf32>
    %43 = arith.mulf %38, %42 : vector<8x128xf32>
    %c0_20 = arith.constant 0 : index
    %c0_21 = arith.constant 0 : index
    %44 = vector.load %arg7[%c0_20, %c0_21] : memref<8x128xf32, #tpu.memory_space<vmem>>, vector<8x128xf32>
    tpu.vector_store %arg7[%c0_20, %c0_21], %41 {strides = array<i32>} : memref<8x128xf32, #tpu.memory_space<vmem>>, vector<8x128xf32>,
    %c0_22 = arith.constant 0 : index
    %c0_23 = arith.constant 0 : index
    %45 = vector.load %arg6[%c0_22, %c0_23] : memref<8x128xf32, #tpu.memory_space<vmem>>, vector<8x128xf32>
    tpu.vector_store %arg6[%c0_22, %c0_23], %43 {strides = array<i32>} : memref<8x128xf32, #tpu.memory_space<vmem>>, vector<8x128xf32>,
    %46 = arith.index_cast %11 : i32 to index
    %c0_24 = arith.constant 0 : index
    %47 = vector.load %arg5[%46, %c0_24] : memref<64x128xf32, #tpu.memory_space<vmem>>, vector<8x128xf32>
    tpu.vector_store %arg5[%46, %c0_24], %43 {strides = array<i32>} : memref<64x128xf32, #tpu.memory_space<vmem>>, vector<8x128xf32>,
    %c1_i32 = arith.constant 1 : i32
    %c8_i32_25 = arith.constant 8 : i32
    %48 = arith.muli %c1_i32, %c8_i32_25 : i32
    %49 = tpu.assume_multiple %48, 8 : i32
    %c0_26 = arith.constant 0 : index
    %c0_27 = arith.constant 0 : index
    %50 = vector.load %arg6[%c0_26, %c0_27] : memref<8x128xf32, #tpu.memory_space<vmem>>, vector<8x128xf32>
    %c0_28 = arith.constant 0 : index
    %c0_29 = arith.constant 0 : index
    %51 = vector.load %arg7[%c0_28, %c0_29] : memref<8x128xf32, #tpu.memory_space<vmem>>, vector<8x128xf32>
    %52 = arith.index_cast %49 : i32 to index
    %c0_30 = arith.constant 0 : index
    %53 = vector.load %arg8[%52, %c0_30] : memref<64x512xf32, #tpu.memory_space<vmem>>, vector<8x512xf32>
    %c0_31 = arith.constant 0 : index
    %c0_32 = arith.constant 0 : index
    %54 = vector.load %arg2[%c0_31, %c0_32] : memref<128x512xf32, #tpu.memory_space<vmem>>, vector<128x512xf32>
    %cst_33 = arith.constant dense<0.000000e+00> : vector<8x512xf32>
    %55 = tpu.matmul %50, %54, %cst_33 {dimension_numbers = #tpu.dot_dimension_numbers<[1], [0], [0], [1], [0, 0, 1, 1], [], []>} : vector<8x128xf32>, vector<128x512xf32>, vector<8x512xf32> -> vector<8x512xf32>
    %56 = arith.addf %53, %55 : vector<8x512xf32>
    %57 = vector.extract_strided_slice %56 {offsets = [0, 0], sizes = [8, 128], strides = [1, 1]} : vector<8x512xf32> to vector<8x128xf32>
    %58 = arith.negf %57 : vector<8x128xf32>
    %59 = math.exp %58 : vector<8x128xf32>
    %cst_34 = arith.constant 1.000000e+00 : f32
    %60 = vector.broadcast %cst_34 : f32 to vector<8x128xf32>
    %61 = arith.addf %60, %59 : vector<8x128xf32>
    %62 = arith.divf %60, %61 : vector<8x128xf32>
    %63 = vector.extract_strided_slice %56 {offsets = [0, 128], sizes = [8, 128], strides = [1, 1]} : vector<8x512xf32> to vector<8x128xf32>
    %64 = arith.negf %63 : vector<8x128xf32>
    %65 = math.exp %64 : vector<8x128xf32>
    %cst_35 = arith.constant 1.000000e+00 : f32
    %66 = vector.broadcast %cst_35 : f32 to vector<8x128xf32>
    %67 = arith.addf %66, %65 : vector<8x128xf32>
    %68 = arith.divf %66, %67 : vector<8x128xf32>
    %69 = vector.extract_strided_slice %56 {offsets = [0, 256], sizes = [8, 128], strides = [1, 1]} : vector<8x512xf32> to vector<8x128xf32>
    %70 = math.tanh %69 : vector<8x128xf32>
    %71 = vector.extract_strided_slice %56 {offsets = [0, 384], sizes = [8, 128], strides = [1, 1]} : vector<8x512xf32> to vector<8x128xf32>
    %72 = arith.negf %71 : vector<8x128xf32>
    %73 = math.exp %72 : vector<8x128xf32>
    %cst_36 = arith.constant 1.000000e+00 : f32
    %74 = vector.broadcast %cst_36 : f32 to vector<8x128xf32>
    %75 = arith.addf %74, %73 : vector<8x128xf32>
    %76 = arith.divf %74, %75 : vector<8x128xf32>
    %77 = arith.mulf %68, %51 : vector<8x128xf32>
    %78 = arith.mulf %62, %70 : vector<8x128xf32>
    %79 = arith.addf %77, %78 : vector<8x128xf32>
    %80 = math.tanh %79 : vector<8x128xf32>
    %81 = arith.mulf %76, %80 : vector<8x128xf32>
    %c0_37 = arith.constant 0 : index
    %c0_38 = arith.constant 0 : index
    %82 = vector.load %arg7[%c0_37, %c0_38] : memref<8x128xf32, #tpu.memory_space<vmem>>, vector<8x128xf32>
    tpu.vector_store %arg7[%c0_37, %c0_38], %79 {strides = array<i32>} : memref<8x128xf32, #tpu.memory_space<vmem>>, vector<8x128xf32>,
    %c0_39 = arith.constant 0 : index
    %c0_40 = arith.constant 0 : index
    %83 = vector.load %arg6[%c0_39, %c0_40] : memref<8x128xf32, #tpu.memory_space<vmem>>, vector<8x128xf32>
    tpu.vector_store %arg6[%c0_39, %c0_40], %81 {strides = array<i32>} : memref<8x128xf32, #tpu.memory_space<vmem>>, vector<8x128xf32>,
    %84 = arith.index_cast %49 : i32 to index
    %c0_41 = arith.constant 0 : index
    %85 = vector.load %arg5[%84, %c0_41] : memref<64x128xf32, #tpu.memory_space<vmem>>, vector<8x128xf32>
    tpu.vector_store %arg5[%84, %c0_41], %81 {strides = array<i32>} : memref<64x128xf32, #tpu.memory_space<vmem>>, vector<8x128xf32>,
    %c2_i32 = arith.constant 2 : i32
    %c8_i32_42 = arith.constant 8 : i32
    %86 = arith.muli %c2_i32, %c8_i32_42 : i32
    %87 = tpu.assume_multiple %86, 8 : i32
    %c0_43 = arith.constant 0 : index
    %c0_44 = arith.constant 0 : index
    %88 = vector.load %arg6[%c0_43, %c0_44] : memref<8x128xf32, #tpu.memory_space<vmem>>, vector<8x128xf32>
    %c0_45 = arith.constant 0 : index
    %c0_46 = arith.constant 0 : index
    %89 = vector.load %arg7[%c0_45, %c0_46] : memref<8x128xf32, #tpu.memory_space<vmem>>, vector<8x128xf32>
    %90 = arith.index_cast %87 : i32 to index
    %c0_47 = arith.constant 0 : index
    %91 = vector.load %arg8[%90, %c0_47] : memref<64x512xf32, #tpu.memory_space<vmem>>, vector<8x512xf32>
    %c0_48 = arith.constant 0 : index
    %c0_49 = arith.constant 0 : index
    %92 = vector.load %arg2[%c0_48, %c0_49] : memref<128x512xf32, #tpu.memory_space<vmem>>, vector<128x512xf32>
    %cst_50 = arith.constant dense<0.000000e+00> : vector<8x512xf32>
    %93 = tpu.matmul %88, %92, %cst_50 {dimension_numbers = #tpu.dot_dimension_numbers<[1], [0], [0], [1], [0, 0, 1, 1], [], []>} : vector<8x128xf32>, vector<128x512xf32>, vector<8x512xf32> -> vector<8x512xf32>
    %94 = arith.addf %91, %93 : vector<8x512xf32>
    %95 = vector.extract_strided_slice %94 {offsets = [0, 0], sizes = [8, 128], strides = [1, 1]} : vector<8x512xf32> to vector<8x128xf32>
    %96 = arith.negf %95 : vector<8x128xf32>
    %97 = math.exp %96 : vector<8x128xf32>
    %cst_51 = arith.constant 1.000000e+00 : f32
    %98 = vector.broadcast %cst_51 : f32 to vector<8x128xf32>
    %99 = arith.addf %98, %97 : vector<8x128xf32>
    %100 = arith.divf %98, %99 : vector<8x128xf32>
    %101 = vector.extract_strided_slice %94 {offsets = [0, 128], sizes = [8, 128], strides = [1, 1]} : vector<8x512xf32> to vector<8x128xf32>
    %102 = arith.negf %101 : vector<8x128xf32>
    %103 = math.exp %102 : vector<8x128xf32>
    %cst_52 = arith.constant 1.000000e+00 : f32
    %104 = vector.broadcast %cst_52 : f32 to vector<8x128xf32>
    %105 = arith.addf %104, %103 : vector<8x128xf32>
    %106 = arith.divf %104, %105 : vector<8x128xf32>
    %107 = vector.extract_strided_slice %94 {offsets = [0, 256], sizes = [8, 128], strides = [1, 1]} : vector<8x512xf32> to vector<8x128xf32>
    %108 = math.tanh %107 : vector<8x128xf32>
    %109 = vector.extract_strided_slice %94 {offsets = [0, 384], sizes = [8, 128], strides = [1, 1]} : vector<8x512xf32> to vector<8x128xf32>
    %110 = arith.negf %109 : vector<8x128xf32>
    %111 = math.exp %110 : vector<8x128xf32>
    %cst_53 = arith.constant 1.000000e+00 : f32
    %112 = vector.broadcast %cst_53 : f32 to vector<8x128xf32>
    %113 = arith.addf %112, %111 : vector<8x128xf32>
    %114 = arith.divf %112, %113 : vector<8x128xf32>
    %115 = arith.mulf %106, %89 : vector<8x128xf32>
    %116 = arith.mulf %100, %108 : vector<8x128xf32>
    %117 = arith.addf %115, %116 : vector<8x128xf32>
    %118 = math.tanh %117 : vector<8x128xf32>
    %119 = arith.mulf %114, %118 : vector<8x128xf32>
    %c0_54 = arith.constant 0 : index
    %c0_55 = arith.constant 0 : index
    %120 = vector.load %arg7[%c0_54, %c0_55] : memref<8x128xf32, #tpu.memory_space<vmem>>, vector<8x128xf32>
    tpu.vector_store %arg7[%c0_54, %c0_55], %117 {strides = array<i32>} : memref<8x128xf32, #tpu.memory_space<vmem>>, vector<8x128xf32>,
    %c0_56 = arith.constant 0 : index
    %c0_57 = arith.constant 0 : index
    %121 = vector.load %arg6[%c0_56, %c0_57] : memref<8x128xf32, #tpu.memory_space<vmem>>, vector<8x128xf32>
    tpu.vector_store %arg6[%c0_56, %c0_57], %119 {strides = array<i32>} : memref<8x128xf32, #tpu.memory_space<vmem>>, vector<8x128xf32>,
    %122 = arith.index_cast %87 : i32 to index
    %c0_58 = arith.constant 0 : index
    %123 = vector.load %arg5[%122, %c0_58] : memref<64x128xf32, #tpu.memory_space<vmem>>, vector<8x128xf32>
    tpu.vector_store %arg5[%122, %c0_58], %119 {strides = array<i32>} : memref<64x128xf32, #tpu.memory_space<vmem>>, vector<8x128xf32>,
    %c3_i32 = arith.constant 3 : i32
    %c8_i32_59 = arith.constant 8 : i32
    %124 = arith.muli %c3_i32, %c8_i32_59 : i32
    %125 = tpu.assume_multiple %124, 8 : i32
    %c0_60 = arith.constant 0 : index
    %c0_61 = arith.constant 0 : index
    %126 = vector.load %arg6[%c0_60, %c0_61] : memref<8x128xf32, #tpu.memory_space<vmem>>, vector<8x128xf32>
    %c0_62 = arith.constant 0 : index
    %c0_63 = arith.constant 0 : index
    %127 = vector.load %arg7[%c0_62, %c0_63] : memref<8x128xf32, #tpu.memory_space<vmem>>, vector<8x128xf32>
    %128 = arith.index_cast %125 : i32 to index
    %c0_64 = arith.constant 0 : index
    %129 = vector.load %arg8[%128, %c0_64] : memref<64x512xf32, #tpu.memory_space<vmem>>, vector<8x512xf32>
    %c0_65 = arith.constant 0 : index
    %c0_66 = arith.constant 0 : index
    %130 = vector.load %arg2[%c0_65, %c0_66] : memref<128x512xf32, #tpu.memory_space<vmem>>, vector<128x512xf32>
    %cst_67 = arith.constant dense<0.000000e+00> : vector<8x512xf32>
    %131 = tpu.matmul %126, %130, %cst_67 {dimension_numbers = #tpu.dot_dimension_numbers<[1], [0], [0], [1], [0, 0, 1, 1], [], []>} : vector<8x128xf32>, vector<128x512xf32>, vector<8x512xf32> -> vector<8x512xf32>
    %132 = arith.addf %129, %131 : vector<8x512xf32>
    %133 = vector.extract_strided_slice %132 {offsets = [0, 0], sizes = [8, 128], strides = [1, 1]} : vector<8x512xf32> to vector<8x128xf32>
    %134 = arith.negf %133 : vector<8x128xf32>
    %135 = math.exp %134 : vector<8x128xf32>
    %cst_68 = arith.constant 1.000000e+00 : f32
    %136 = vector.broadcast %cst_68 : f32 to vector<8x128xf32>
    %137 = arith.addf %136, %135 : vector<8x128xf32>
    %138 = arith.divf %136, %137 : vector<8x128xf32>
    %139 = vector.extract_strided_slice %132 {offsets = [0, 128], sizes = [8, 128], strides = [1, 1]} : vector<8x512xf32> to vector<8x128xf32>
    %140 = arith.negf %139 : vector<8x128xf32>
    %141 = math.exp %140 : vector<8x128xf32>
    %cst_69 = arith.constant 1.000000e+00 : f32
    %142 = vector.broadcast %cst_69 : f32 to vector<8x128xf32>
    %143 = arith.addf %142, %141 : vector<8x128xf32>
    %144 = arith.divf %142, %143 : vector<8x128xf32>
    %145 = vector.extract_strided_slice %132 {offsets = [0, 256], sizes = [8, 128], strides = [1, 1]} : vector<8x512xf32> to vector<8x128xf32>
    %146 = math.tanh %145 : vector<8x128xf32>
    %147 = vector.extract_strided_slice %132 {offsets = [0, 384], sizes = [8, 128], strides = [1, 1]} : vector<8x512xf32> to vector<8x128xf32>
    %148 = arith.negf %147 : vector<8x128xf32>
    %149 = math.exp %148 : vector<8x128xf32>
    %cst_70 = arith.constant 1.000000e+00 : f32
    %150 = vector.broadcast %cst_70 : f32 to vector<8x128xf32>
    %151 = arith.addf %150, %149 : vector<8x128xf32>
    %152 = arith.divf %150, %151 : vector<8x128xf32>
    %153 = arith.mulf %144, %127 : vector<8x128xf32>
    %154 = arith.mulf %138, %146 : vector<8x128xf32>
    %155 = arith.addf %153, %154 : vector<8x128xf32>
    %156 = math.tanh %155 : vector<8x128xf32>
    %157 = arith.mulf %152, %156 : vector<8x128xf32>
    %c0_71 = arith.constant 0 : index
    %c0_72 = arith.constant 0 : index
    %158 = vector.load %arg7[%c0_71, %c0_72] : memref<8x128xf32, #tpu.memory_space<vmem>>, vector<8x128xf32>
    tpu.vector_store %arg7[%c0_71, %c0_72], %155 {strides = array<i32>} : memref<8x128xf32, #tpu.memory_space<vmem>>, vector<8x128xf32>,
    %c0_73 = arith.constant 0 : index
    %c0_74 = arith.constant 0 : index
    %159 = vector.load %arg6[%c0_73, %c0_74] : memref<8x128xf32, #tpu.memory_space<vmem>>, vector<8x128xf32>
    tpu.vector_store %arg6[%c0_73, %c0_74], %157 {strides = array<i32>} : memref<8x128xf32, #tpu.memory_space<vmem>>, vector<8x128xf32>,
    %160 = arith.index_cast %125 : i32 to index
    %c0_75 = arith.constant 0 : index
    %161 = vector.load %arg5[%160, %c0_75] : memref<64x128xf32, #tpu.memory_space<vmem>>, vector<8x128xf32>
    tpu.vector_store %arg5[%160, %c0_75], %157 {strides = array<i32>} : memref<64x128xf32, #tpu.memory_space<vmem>>, vector<8x128xf32>,
    %c4_i32 = arith.constant 4 : i32
    %c8_i32_76 = arith.constant 8 : i32
    %162 = arith.muli %c4_i32, %c8_i32_76 : i32
    %163 = tpu.assume_multiple %162, 8 : i32
    %c0_77 = arith.constant 0 : index
    %c0_78 = arith.constant 0 : index
    %164 = vector.load %arg6[%c0_77, %c0_78] : memref<8x128xf32, #tpu.memory_space<vmem>>, vector<8x128xf32>
    %c0_79 = arith.constant 0 : index
    %c0_80 = arith.constant 0 : index
    %165 = vector.load %arg7[%c0_79, %c0_80] : memref<8x128xf32, #tpu.memory_space<vmem>>, vector<8x128xf32>
    %166 = arith.index_cast %163 : i32 to index
    %c0_81 = arith.constant 0 : index
    %167 = vector.load %arg8[%166, %c0_81] : memref<64x512xf32, #tpu.memory_space<vmem>>, vector<8x512xf32>
    %c0_82 = arith.constant 0 : index
    %c0_83 = arith.constant 0 : index
    %168 = vector.load %arg2[%c0_82, %c0_83] : memref<128x512xf32, #tpu.memory_space<vmem>>, vector<128x512xf32>
    %cst_84 = arith.constant dense<0.000000e+00> : vector<8x512xf32>
    %169 = tpu.matmul %164, %168, %cst_84 {dimension_numbers = #tpu.dot_dimension_numbers<[1], [0], [0], [1], [0, 0, 1, 1], [], []>} : vector<8x128xf32>, vector<128x512xf32>, vector<8x512xf32> -> vector<8x512xf32>
    %170 = arith.addf %167, %169 : vector<8x512xf32>
    %171 = vector.extract_strided_slice %170 {offsets = [0, 0], sizes = [8, 128], strides = [1, 1]} : vector<8x512xf32> to vector<8x128xf32>
    %172 = arith.negf %171 : vector<8x128xf32>
    %173 = math.exp %172 : vector<8x128xf32>
    %cst_85 = arith.constant 1.000000e+00 : f32
    %174 = vector.broadcast %cst_85 : f32 to vector<8x128xf32>
    %175 = arith.addf %174, %173 : vector<8x128xf32>
    %176 = arith.divf %174, %175 : vector<8x128xf32>
    %177 = vector.extract_strided_slice %170 {offsets = [0, 128], sizes = [8, 128], strides = [1, 1]} : vector<8x512xf32> to vector<8x128xf32>
    %178 = arith.negf %177 : vector<8x128xf32>
    %179 = math.exp %178 : vector<8x128xf32>
    %cst_86 = arith.constant 1.000000e+00 : f32
    %180 = vector.broadcast %cst_86 : f32 to vector<8x128xf32>
    %181 = arith.addf %180, %179 : vector<8x128xf32>
    %182 = arith.divf %180, %181 : vector<8x128xf32>
    %183 = vector.extract_strided_slice %170 {offsets = [0, 256], sizes = [8, 128], strides = [1, 1]} : vector<8x512xf32> to vector<8x128xf32>
    %184 = math.tanh %183 : vector<8x128xf32>
    %185 = vector.extract_strided_slice %170 {offsets = [0, 384], sizes = [8, 128], strides = [1, 1]} : vector<8x512xf32> to vector<8x128xf32>
    %186 = arith.negf %185 : vector<8x128xf32>
    %187 = math.exp %186 : vector<8x128xf32>
    %cst_87 = arith.constant 1.000000e+00 : f32
    %188 = vector.broadcast %cst_87 : f32 to vector<8x128xf32>
    %189 = arith.addf %188, %187 : vector<8x128xf32>
    %190 = arith.divf %188, %189 : vector<8x128xf32>
    %191 = arith.mulf %182, %165 : vector<8x128xf32>
    %192 = arith.mulf %176, %184 : vector<8x128xf32>
    %193 = arith.addf %191, %192 : vector<8x128xf32>
    %194 = math.tanh %193 : vector<8x128xf32>
    %195 = arith.mulf %190, %194 : vector<8x128xf32>
    %c0_88 = arith.constant 0 : index
    %c0_89 = arith.constant 0 : index
    %196 = vector.load %arg7[%c0_88, %c0_89] : memref<8x128xf32, #tpu.memory_space<vmem>>, vector<8x128xf32>
    tpu.vector_store %arg7[%c0_88, %c0_89], %193 {strides = array<i32>} : memref<8x128xf32, #tpu.memory_space<vmem>>, vector<8x128xf32>,
    %c0_90 = arith.constant 0 : index
    %c0_91 = arith.constant 0 : index
    %197 = vector.load %arg6[%c0_90, %c0_91] : memref<8x128xf32, #tpu.memory_space<vmem>>, vector<8x128xf32>
    tpu.vector_store %arg6[%c0_90, %c0_91], %195 {strides = array<i32>} : memref<8x128xf32, #tpu.memory_space<vmem>>, vector<8x128xf32>,
    %198 = arith.index_cast %163 : i32 to index
    %c0_92 = arith.constant 0 : index
    %199 = vector.load %arg5[%198, %c0_92] : memref<64x128xf32, #tpu.memory_space<vmem>>, vector<8x128xf32>
    tpu.vector_store %arg5[%198, %c0_92], %195 {strides = array<i32>} : memref<64x128xf32, #tpu.memory_space<vmem>>, vector<8x128xf32>,
    %c5_i32 = arith.constant 5 : i32
    %c8_i32_93 = arith.constant 8 : i32
    %200 = arith.muli %c5_i32, %c8_i32_93 : i32
    %201 = tpu.assume_multiple %200, 8 : i32
    %c0_94 = arith.constant 0 : index
    %c0_95 = arith.constant 0 : index
    %202 = vector.load %arg6[%c0_94, %c0_95] : memref<8x128xf32, #tpu.memory_space<vmem>>, vector<8x128xf32>
    %c0_96 = arith.constant 0 : index
    %c0_97 = arith.constant 0 : index
    %203 = vector.load %arg7[%c0_96, %c0_97] : memref<8x128xf32, #tpu.memory_space<vmem>>, vector<8x128xf32>
    %204 = arith.index_cast %201 : i32 to index
    %c0_98 = arith.constant 0 : index
    %205 = vector.load %arg8[%204, %c0_98] : memref<64x512xf32, #tpu.memory_space<vmem>>, vector<8x512xf32>
    %c0_99 = arith.constant 0 : index
    %c0_100 = arith.constant 0 : index
    %206 = vector.load %arg2[%c0_99, %c0_100] : memref<128x512xf32, #tpu.memory_space<vmem>>, vector<128x512xf32>
    %cst_101 = arith.constant dense<0.000000e+00> : vector<8x512xf32>
    %207 = tpu.matmul %202, %206, %cst_101 {dimension_numbers = #tpu.dot_dimension_numbers<[1], [0], [0], [1], [0, 0, 1, 1], [], []>} : vector<8x128xf32>, vector<128x512xf32>, vector<8x512xf32> -> vector<8x512xf32>
    %208 = arith.addf %205, %207 : vector<8x512xf32>
    %209 = vector.extract_strided_slice %208 {offsets = [0, 0], sizes = [8, 128], strides = [1, 1]} : vector<8x512xf32> to vector<8x128xf32>
    %210 = arith.negf %209 : vector<8x128xf32>
    %211 = math.exp %210 : vector<8x128xf32>
    %cst_102 = arith.constant 1.000000e+00 : f32
    %212 = vector.broadcast %cst_102 : f32 to vector<8x128xf32>
    %213 = arith.addf %212, %211 : vector<8x128xf32>
    %214 = arith.divf %212, %213 : vector<8x128xf32>
    %215 = vector.extract_strided_slice %208 {offsets = [0, 128], sizes = [8, 128], strides = [1, 1]} : vector<8x512xf32> to vector<8x128xf32>
    %216 = arith.negf %215 : vector<8x128xf32>
    %217 = math.exp %216 : vector<8x128xf32>
    %cst_103 = arith.constant 1.000000e+00 : f32
    %218 = vector.broadcast %cst_103 : f32 to vector<8x128xf32>
    %219 = arith.addf %218, %217 : vector<8x128xf32>
    %220 = arith.divf %218, %219 : vector<8x128xf32>
    %221 = vector.extract_strided_slice %208 {offsets = [0, 256], sizes = [8, 128], strides = [1, 1]} : vector<8x512xf32> to vector<8x128xf32>
    %222 = math.tanh %221 : vector<8x128xf32>
    %223 = vector.extract_strided_slice %208 {offsets = [0, 384], sizes = [8, 128], strides = [1, 1]} : vector<8x512xf32> to vector<8x128xf32>
    %224 = arith.negf %223 : vector<8x128xf32>
    %225 = math.exp %224 : vector<8x128xf32>
    %cst_104 = arith.constant 1.000000e+00 : f32
    %226 = vector.broadcast %cst_104 : f32 to vector<8x128xf32>
    %227 = arith.addf %226, %225 : vector<8x128xf32>
    %228 = arith.divf %226, %227 : vector<8x128xf32>
    %229 = arith.mulf %220, %203 : vector<8x128xf32>
    %230 = arith.mulf %214, %222 : vector<8x128xf32>
    %231 = arith.addf %229, %230 : vector<8x128xf32>
    %232 = math.tanh %231 : vector<8x128xf32>
    %233 = arith.mulf %228, %232 : vector<8x128xf32>
    %c0_105 = arith.constant 0 : index
    %c0_106 = arith.constant 0 : index
    %234 = vector.load %arg7[%c0_105, %c0_106] : memref<8x128xf32, #tpu.memory_space<vmem>>, vector<8x128xf32>
    tpu.vector_store %arg7[%c0_105, %c0_106], %231 {strides = array<i32>} : memref<8x128xf32, #tpu.memory_space<vmem>>, vector<8x128xf32>,
    %c0_107 = arith.constant 0 : index
    %c0_108 = arith.constant 0 : index
    %235 = vector.load %arg6[%c0_107, %c0_108] : memref<8x128xf32, #tpu.memory_space<vmem>>, vector<8x128xf32>
    tpu.vector_store %arg6[%c0_107, %c0_108], %233 {strides = array<i32>} : memref<8x128xf32, #tpu.memory_space<vmem>>, vector<8x128xf32>,
    %236 = arith.index_cast %201 : i32 to index
    %c0_109 = arith.constant 0 : index
    %237 = vector.load %arg5[%236, %c0_109] : memref<64x128xf32, #tpu.memory_space<vmem>>, vector<8x128xf32>
    tpu.vector_store %arg5[%236, %c0_109], %233 {strides = array<i32>} : memref<64x128xf32, #tpu.memory_space<vmem>>, vector<8x128xf32>,
    %c6_i32 = arith.constant 6 : i32
    %c8_i32_110 = arith.constant 8 : i32
    %238 = arith.muli %c6_i32, %c8_i32_110 : i32
    %239 = tpu.assume_multiple %238, 8 : i32
    %c0_111 = arith.constant 0 : index
    %c0_112 = arith.constant 0 : index
    %240 = vector.load %arg6[%c0_111, %c0_112] : memref<8x128xf32, #tpu.memory_space<vmem>>, vector<8x128xf32>
    %c0_113 = arith.constant 0 : index
    %c0_114 = arith.constant 0 : index
    %241 = vector.load %arg7[%c0_113, %c0_114] : memref<8x128xf32, #tpu.memory_space<vmem>>, vector<8x128xf32>
    %242 = arith.index_cast %239 : i32 to index
    %c0_115 = arith.constant 0 : index
    %243 = vector.load %arg8[%242, %c0_115] : memref<64x512xf32, #tpu.memory_space<vmem>>, vector<8x512xf32>
    %c0_116 = arith.constant 0 : index
    %c0_117 = arith.constant 0 : index
    %244 = vector.load %arg2[%c0_116, %c0_117] : memref<128x512xf32, #tpu.memory_space<vmem>>, vector<128x512xf32>
    %cst_118 = arith.constant dense<0.000000e+00> : vector<8x512xf32>
    %245 = tpu.matmul %240, %244, %cst_118 {dimension_numbers = #tpu.dot_dimension_numbers<[1], [0], [0], [1], [0, 0, 1, 1], [], []>} : vector<8x128xf32>, vector<128x512xf32>, vector<8x512xf32> -> vector<8x512xf32>
    %246 = arith.addf %243, %245 : vector<8x512xf32>
    %247 = vector.extract_strided_slice %246 {offsets = [0, 0], sizes = [8, 128], strides = [1, 1]} : vector<8x512xf32> to vector<8x128xf32>
    %248 = arith.negf %247 : vector<8x128xf32>
    %249 = math.exp %248 : vector<8x128xf32>
    %cst_119 = arith.constant 1.000000e+00 : f32
    %250 = vector.broadcast %cst_119 : f32 to vector<8x128xf32>
    %251 = arith.addf %250, %249 : vector<8x128xf32>
    %252 = arith.divf %250, %251 : vector<8x128xf32>
    %253 = vector.extract_strided_slice %246 {offsets = [0, 128], sizes = [8, 128], strides = [1, 1]} : vector<8x512xf32> to vector<8x128xf32>
    %254 = arith.negf %253 : vector<8x128xf32>
    %255 = math.exp %254 : vector<8x128xf32>
    %cst_120 = arith.constant 1.000000e+00 : f32
    %256 = vector.broadcast %cst_120 : f32 to vector<8x128xf32>
    %257 = arith.addf %256, %255 : vector<8x128xf32>
    %258 = arith.divf %256, %257 : vector<8x128xf32>
    %259 = vector.extract_strided_slice %246 {offsets = [0, 256], sizes = [8, 128], strides = [1, 1]} : vector<8x512xf32> to vector<8x128xf32>
    %260 = math.tanh %259 : vector<8x128xf32>
    %261 = vector.extract_strided_slice %246 {offsets = [0, 384], sizes = [8, 128], strides = [1, 1]} : vector<8x512xf32> to vector<8x128xf32>
    %262 = arith.negf %261 : vector<8x128xf32>
    %263 = math.exp %262 : vector<8x128xf32>
    %cst_121 = arith.constant 1.000000e+00 : f32
    %264 = vector.broadcast %cst_121 : f32 to vector<8x128xf32>
    %265 = arith.addf %264, %263 : vector<8x128xf32>
    %266 = arith.divf %264, %265 : vector<8x128xf32>
    %267 = arith.mulf %258, %241 : vector<8x128xf32>
    %268 = arith.mulf %252, %260 : vector<8x128xf32>
    %269 = arith.addf %267, %268 : vector<8x128xf32>
    %270 = math.tanh %269 : vector<8x128xf32>
    %271 = arith.mulf %266, %270 : vector<8x128xf32>
    %c0_122 = arith.constant 0 : index
    %c0_123 = arith.constant 0 : index
    %272 = vector.load %arg7[%c0_122, %c0_123] : memref<8x128xf32, #tpu.memory_space<vmem>>, vector<8x128xf32>
    tpu.vector_store %arg7[%c0_122, %c0_123], %269 {strides = array<i32>} : memref<8x128xf32, #tpu.memory_space<vmem>>, vector<8x128xf32>,
    %c0_124 = arith.constant 0 : index
    %c0_125 = arith.constant 0 : index
    %273 = vector.load %arg6[%c0_124, %c0_125] : memref<8x128xf32, #tpu.memory_space<vmem>>, vector<8x128xf32>
    tpu.vector_store %arg6[%c0_124, %c0_125], %271 {strides = array<i32>} : memref<8x128xf32, #tpu.memory_space<vmem>>, vector<8x128xf32>,
    %274 = arith.index_cast %239 : i32 to index
    %c0_126 = arith.constant 0 : index
    %275 = vector.load %arg5[%274, %c0_126] : memref<64x128xf32, #tpu.memory_space<vmem>>, vector<8x128xf32>
    tpu.vector_store %arg5[%274, %c0_126], %271 {strides = array<i32>} : memref<64x128xf32, #tpu.memory_space<vmem>>, vector<8x128xf32>,
    %c7_i32 = arith.constant 7 : i32
    %c8_i32_127 = arith.constant 8 : i32
    %276 = arith.muli %c7_i32, %c8_i32_127 : i32
    %277 = tpu.assume_multiple %276, 8 : i32
    %c0_128 = arith.constant 0 : index
    %c0_129 = arith.constant 0 : index
    %278 = vector.load %arg6[%c0_128, %c0_129] : memref<8x128xf32, #tpu.memory_space<vmem>>, vector<8x128xf32>
    %c0_130 = arith.constant 0 : index
    %c0_131 = arith.constant 0 : index
    %279 = vector.load %arg7[%c0_130, %c0_131] : memref<8x128xf32, #tpu.memory_space<vmem>>, vector<8x128xf32>
    %280 = arith.index_cast %277 : i32 to index
    %c0_132 = arith.constant 0 : index
    %281 = vector.load %arg8[%280, %c0_132] : memref<64x512xf32, #tpu.memory_space<vmem>>, vector<8x512xf32>
    %c0_133 = arith.constant 0 : index
    %c0_134 = arith.constant 0 : index
    %282 = vector.load %arg2[%c0_133, %c0_134] : memref<128x512xf32, #tpu.memory_space<vmem>>, vector<128x512xf32>
    %cst_135 = arith.constant dense<0.000000e+00> : vector<8x512xf32>
    %283 = tpu.matmul %278, %282, %cst_135 {dimension_numbers = #tpu.dot_dimension_numbers<[1], [0], [0], [1], [0, 0, 1, 1], [], []>} : vector<8x128xf32>, vector<128x512xf32>, vector<8x512xf32> -> vector<8x512xf32>
    %284 = arith.addf %281, %283 : vector<8x512xf32>
    %285 = vector.extract_strided_slice %284 {offsets = [0, 0], sizes = [8, 128], strides = [1, 1]} : vector<8x512xf32> to vector<8x128xf32>
    %286 = arith.negf %285 : vector<8x128xf32>
    %287 = math.exp %286 : vector<8x128xf32>
    %cst_136 = arith.constant 1.000000e+00 : f32
    %288 = vector.broadcast %cst_136 : f32 to vector<8x128xf32>
    %289 = arith.addf %288, %287 : vector<8x128xf32>
    %290 = arith.divf %288, %289 : vector<8x128xf32>
    %291 = vector.extract_strided_slice %284 {offsets = [0, 128], sizes = [8, 128], strides = [1, 1]} : vector<8x512xf32> to vector<8x128xf32>
    %292 = arith.negf %291 : vector<8x128xf32>
    %293 = math.exp %292 : vector<8x128xf32>
    %cst_137 = arith.constant 1.000000e+00 : f32
    %294 = vector.broadcast %cst_137 : f32 to vector<8x128xf32>
    %295 = arith.addf %294, %293 : vector<8x128xf32>
    %296 = arith.divf %294, %295 : vector<8x128xf32>
    %297 = vector.extract_strided_slice %284 {offsets = [0, 256], sizes = [8, 128], strides = [1, 1]} : vector<8x512xf32> to vector<8x128xf32>
    %298 = math.tanh %297 : vector<8x128xf32>
    %299 = vector.extract_strided_slice %284 {offsets = [0, 384], sizes = [8, 128], strides = [1, 1]} : vector<8x512xf32> to vector<8x128xf32>
    %300 = arith.negf %299 : vector<8x128xf32>
    %301 = math.exp %300 : vector<8x128xf32>
    %cst_138 = arith.constant 1.000000e+00 : f32
    %302 = vector.broadcast %cst_138 : f32 to vector<8x128xf32>
    %303 = arith.addf %302, %301 : vector<8x128xf32>
    %304 = arith.divf %302, %303 : vector<8x128xf32>
    %305 = arith.mulf %296, %279 : vector<8x128xf32>
    %306 = arith.mulf %290, %298 : vector<8x128xf32>
    %307 = arith.addf %305, %306 : vector<8x128xf32>
    %308 = math.tanh %307 : vector<8x128xf32>
    %309 = arith.mulf %304, %308 : vector<8x128xf32>
    %c0_139 = arith.constant 0 : index
    %c0_140 = arith.constant 0 : index
    %310 = vector.load %arg7[%c0_139, %c0_140] : memref<8x128xf32, #tpu.memory_space<vmem>>, vector<8x128xf32>
    tpu.vector_store %arg7[%c0_139, %c0_140], %307 {strides = array<i32>} : memref<8x128xf32, #tpu.memory_space<vmem>>, vector<8x128xf32>,
    %c0_141 = arith.constant 0 : index
    %c0_142 = arith.constant 0 : index
    %311 = vector.load %arg6[%c0_141, %c0_142] : memref<8x128xf32, #tpu.memory_space<vmem>>, vector<8x128xf32>
    tpu.vector_store %arg6[%c0_141, %c0_142], %309 {strides = array<i32>} : memref<8x128xf32, #tpu.memory_space<vmem>>, vector<8x128xf32>,
    %312 = arith.index_cast %277 : i32 to index
    %c0_143 = arith.constant 0 : index
    %313 = vector.load %arg5[%312, %c0_143] : memref<64x128xf32, #tpu.memory_space<vmem>>, vector<8x128xf32>
    tpu.vector_store %arg5[%312, %c0_143], %309 {strides = array<i32>} : memref<64x128xf32, #tpu.memory_space<vmem>>, vector<8x128xf32>,
    %c8_i32_144 = arith.constant 8 : i32
    return
  }
  func.func @transform_0(%arg0: i32) -> (i32, i32) {
    %c0_i32 = arith.constant 0 : i32
    %c0_i32_0 = arith.constant 0 : i32
    return %arg0, %c0_i32 : i32, i32
  }
  func.func @transform_1(%arg0: i32) -> (i32, i32) {
    %c0_i32 = arith.constant 0 : i32
    %c0_i32_0 = arith.constant 0 : i32
    %c0_i32_1 = arith.constant 0 : i32
    return %c0_i32, %c0_i32_0 : i32, i32
  }
  func.func @transform_2(%arg0: i32) -> (i32, i32) {
    %c0_i32 = arith.constant 0 : i32
    %c0_i32_0 = arith.constant 0 : i32
    %c0_i32_1 = arith.constant 0 : i32
    return %c0_i32, %c0_i32_0 : i32, i32
  }
  func.func @transform_3(%arg0: i32) -> (i32, i32) {
    %c0_i32 = arith.constant 0 : i32
    %c0_i32_0 = arith.constant 0 : i32
    %c0_i32_1 = arith.constant 0 : i32
    return %c0_i32, %c0_i32_0 : i32, i32
  }
  func.func @transform_4(%arg0: i32) -> (i32, i32) {
    %c0_i32 = arith.constant 0 : i32
    %c0_i32_0 = arith.constant 0 : i32
    return %arg0, %c0_i32 : i32, i32
  }
}

</mosaic_0001>

<bundles_post_ra>
// kernel: next_character_lstm_forward.5
= control target key start
LH: loop header
LB: loop body
LE: loop exit
PB: predicated region body
PF: predicated region fallthrough
CT: control target
= control target key end

     0   :  { %s398_s1 = inlined_call_operand.vmem [shape: f32[128,128], index: 1, kind: input, shape index: {}]   ;;  %s399_s0 = inlined_call_operand.vmem [shape: f32[64,128], index: 0, kind: input, shape index: {}]   ;;  %s400_s2 = inlined_call_operand.vmem [shape: f32[1,128], index: 2, kind: input, shape index: {}]   ;;  %s401_s3 = inlined_call_operand.vmem [shape: f32[64,128], index: 3, kind: output, shape index: {}]  }
   0x1   :  { %v22_v0 = vld [vmem:[%s398_s1] sm:$0xff]  ;;  %v23_v1 = vld [vmem:[%s398_s1 + $0x8] sm:$0xff]  ;;  %v24_v2 = vld [vmem:[%s398_s1 + $0x10] sm:$0xff] }
   0x2   :  { %v231_v3 = vpack.c.bf16 %v23_v1, %v22_v0  ;;  %v25_v4 = vld [vmem:[%s398_s1 + $0x18] sm:$0xff]  ;;  %v26_v6 = vld [vmem:[%s398_s1 + $0x20] sm:$0xff]  ;;  %v27_v7 = vld [vmem:[%s398_s1 + $0x28] sm:$0xff] }
   0x3   :  { %v235_v5 = vpack.c.bf16 %v25_v4, %v24_v2  ;;  %v239_v8 = vpack.c.bf16 %v27_v7, %v26_v6  ;;  %v14_v9 = vld [vmem:[%s399_s0] sm:$0xff]  ;;  %v28_v11 = vld [vmem:[%s398_s1 + $0x30] sm:$0xff]  ;;  %v29_v12 = vld [vmem:[%s398_s1 + $0x38] sm:$0xff] }
   0x4   :  { %232 = vmatprep.subr.bf16.mxu0 %v231_v3  ;;  %263 = vmatprep.subr.bf16.mxu1 %v231_v3  ;;  %v18_v10 = vld [vmem:[%s399_s0 + $0x20] sm:$0xff]  ;;  %v243_v13 = vpack.c.bf16 %v29_v12, %v28_v11  ;;  %v31_v15 = vld [vmem:[%s398_s1 + $0x48] sm:$0xff]  ;;  %v32_v17 = vld [vmem:[%s398_s1 + $0x50] sm:$0xff] }
   0x5   :  { %234 = vmatpush3.bf16.msra.mxu0 %v231_v3  ;;  %271 = vmatpush3.bf16.msra.mxu1 %v231_v3  ;;  %v30_v14 = vld [vmem:[%s398_s1 + $0x40] sm:$0xff]  ;;  %v33_v18 = vld [vmem:[%s398_s1 + $0x58] sm:$0xff]  ;;  %v35_v21 = vld [vmem:[%s398_s1 + $0x68] sm:$0xff] }
   0x6   :  { %236 = vmatprep.subr.bf16.mxu0 %v235_v5  ;;  %264 = vmatprep.subr.bf16.mxu1 %v235_v5  ;;  %v247_v16 = vpack.c.bf16 %v31_v15, %v30_v14  ;;  %v251_v19 = vpack.c.bf16 %v33_v18, %v32_v17  ;;  %v34_v20 = vld [vmem:[%s398_s1 + $0x60] sm:$0xff]  ;;  %v36_v23 = vld [vmem:[%s398_s1 + $0x70] sm:$0xff]  ;;  %v37_v24 = vld [vmem:[%s398_s1 + $0x78] sm:$0xff] }
   0x7   :  { %219 = vmatprep.mubr.f32.mxu0 %v14_v9  ;;  %225 = vmatprep.mubr.f32.mxu1 %v18_v10  ;;  %v255_v22 = vpack.c.bf16 %v35_v21, %v34_v20  ;;  %v259_v25 = vpack.c.bf16 %v37_v24, %v36_v23  ;;  %v15_v26 = vld [vmem:[%s399_s0 + $0x8] sm:$0xff]  ;;  %v16_v28 = vld [vmem:[%s399_s0 + $0x10] sm:$0xff]  ;;  %v17_v30 = vld [vmem:[%s399_s0 + $0x18] sm:$0xff] }
   0x8   :  { %v19_v27 = vld [vmem:[%s399_s0 + $0x28] sm:$0xff]  ;;  %v20_v29 = vld [vmem:[%s399_s0 + $0x30] sm:$0xff]  ;;  %v21_v31 = vld [vmem:[%s399_s0 + $0x38] sm:$0xff] }
   0x9   :  { %238 = vmatpush3.bf16.msra.mxu0 %v235_v5  ;;  %272 = vmatpush3.bf16.msra.mxu1 %v235_v5  ;;  %v162_v32 = vld [vmem:[%s400_s2] ss:$0 sm:$0xff] }
   0xa   :  { %240 = vmatprep.subr.bf16.mxu0 %v239_v8  ;;  %265 = vmatprep.subr.bf16.mxu1 %v239_v8 }
   0xd   :  { %242 = vmatpush3.bf16.msra.mxu0 %v239_v8  ;;  %273 = vmatpush3.bf16.msra.mxu1 %v239_v8 }
   0xe   :  { %244 = vmatprep.subr.bf16.mxu0 %v243_v13  ;;  %266 = vmatprep.subr.bf16.mxu1 %v243_v13 }
  0x11   :  { %246 = vmatpush3.bf16.msra.mxu0 %v243_v13  ;;  %274 = vmatpush3.bf16.msra.mxu1 %v243_v13 }
  0x12   :  { %248 = vmatprep.subr.bf16.mxu0 %v247_v16  ;;  %267 = vmatprep.subr.bf16.mxu1 %v247_v16 }
  0x15   :  { %250 = vmatpush3.bf16.msra.mxu0 %v247_v16  ;;  %275 = vmatpush3.bf16.msra.mxu1 %v247_v16 }
  0x16   :  { %252 = vmatprep.subr.bf16.mxu0 %v251_v19  ;;  %268 = vmatprep.subr.bf16.mxu1 %v251_v19 }
  0x19   :  { %254 = vmatpush3.bf16.msra.mxu0 %v251_v19  ;;  %276 = vmatpush3.bf16.msra.mxu1 %v251_v19 }
  0x1a   :  { %256 = vmatprep.subr.bf16.mxu0 %v255_v22  ;;  %269 = vmatprep.subr.bf16.mxu1 %v255_v22 }
  0x1d   :  { %258 = vmatpush3.bf16.msra.mxu0 %v255_v22  ;;  %277 = vmatpush3.bf16.msra.mxu1 %v255_v22 }
  0x1e   :  { %260 = vmatprep.subr.bf16.mxu0 %v259_v25  ;;  %270 = vmatprep.subr.bf16.mxu1 %v259_v25 }
  0x21   :  { %262 = vmatpush3.bf16.msra.mxu0 %v259_v25  ;;  %278 = vmatpush3.bf16.msra.mxu1 %v259_v25 }
  0x24   :  { %220 = vmatmul.mubr.f32.vlgmr.msra.gmra.mrb[0].mxu0 %v15_v26  ;;  %226 = vmatmul.mubr.f32.vlgmr.msra.gmra.mrb[0].mxu1 %v19_v27 }
  0x25   :  { %222 = vmatprep.mubr.f32.mxu0 %v16_v28  ;;  %228 = vmatprep.mubr.f32.mxu1 %v20_v29 }
  0x28   :  { %223 = vmatmul.mubr.f32.gmra.mrb[2].mxu0 %v17_v30  ;;  %229 = vmatmul.mubr.f32.gmra.mrb[2].mxu1 %v21_v31 }
  0xf7   :  { %v221_v33 = vpop.f32.mrb[0].mxu0  ;;  %v227_v34 = vpop.f32.mrb[0].mxu1 }
  0xf8   :  { %v117_v35 = vadd.f32 %v221_v33, %v162_v32  ;;  %v137_v36 = vadd.f32 %v227_v34, %v162_v32  ;;  %v111_v37 = vpop.f32.mrb[1].mxu0  ;;  %v131_v38 = vpop.f32.mrb[1].mxu1 }
  0xf9   :  { %v112_v39 = vadd.f32 %v162_v32, %v111_v37  ;;  %v132_v40 = vadd.f32 %v162_v32, %v131_v38 }
  0xfa   :  { %151 = vst [vmem:[%s401_s3 + $0x8] sm:$0xff] %v117_v35  ;;  %155 = vst [vmem:[%s401_s3 + $0x28] sm:$0xff] %v137_v36 }
  0xfb   :  { %150 = vst [vmem:[%s401_s3] sm:$0xff] %v112_v39  ;;  %154 = vst [vmem:[%s401_s3 + $0x20] sm:$0xff] %v132_v40  ;;  %v224_v41 = vpop.f32.mrb[2].mxu0  ;;  %v230_v42 = vpop.f32.mrb[2].mxu1 }
  0xfc   :  { %v127_v43 = vadd.f32 %v224_v41, %v162_v32  ;;  %v147_v44 = vadd.f32 %v230_v42, %v162_v32  ;;  %v121_v45 = vpop.f32.mrb[3].mxu0  ;;  %v141_v46 = vpop.f32.mrb[3].mxu1 }
  0xfd   :  { %v122_v47 = vadd.f32 %v162_v32, %v121_v45  ;;  %v142_v48 = vadd.f32 %v162_v32, %v141_v46 }
  0xfe   :  { %153 = vst [vmem:[%s401_s3 + $0x18] sm:$0xff] %v127_v43  ;;  %157 = vst [vmem:[%s401_s3 + $0x38] sm:$0xff] %v147_v44 }
  0xff   :  { %152 = vst [vmem:[%s401_s3 + $0x10] sm:$0xff] %v122_v47  ;;  %156 = vst [vmem:[%s401_s3 + $0x30] sm:$0xff] %v142_v48 }

// kernel: next_character_lstm_forward.3
= control target key start
LH: loop header
LB: loop body
LE: loop exit
PB: predicated region body
PF: predicated region fallthrough
CT: control target
= control target key end

     0   :  { %v2703_v3 = vmov 0.0   ;;  %s3699_s1 = inlined_call_operand.vmem [shape: f32[128,512], index: 1, kind: input, shape index: {}]   ;;  %s3700_s0 = inlined_call_operand.vmem [shape: f32[64,512], index: 0, kind: input, shape index: {}]   ;;  %s3701_s2 = inlined_call_operand.vmem [shape: f32[64,128], index: 2, kind: output, shape index: {}]  }
   0x1   :  { %v27_v0 = vld [vmem:[%s3699_s1 + $0x8] sm:$0xff]  ;;  %v26_v2 = vld [vmem:[%s3699_s1] sm:$0xff]  ;;  %154 = vmatprep.mubr.f32.mxu0 %v2703_v3  ;;  %225 = vmatprep.mubr.f32.mxu1 %v2703_v3  ;;  %v29_v19 = vld [vmem:[%s3699_s1 + $0x18] sm:$0xff] }
   0x2   :  { %v31_v1 = vld [vmem:[%s3699_s1 + $0x28] sm:$0xff]  ;;  %v30_v5 = vld [vmem:[%s3699_s1 + $0x20] sm:$0xff]  ;;  %v33_v20 = vld [vmem:[%s3699_s1 + $0x38] sm:$0xff] }
   0x3   :  { %v2730_v4 = vpack.c.bf16 %v31_v1, %v27_v0  ;;  %v35_v6 = vld [vmem:[%s3699_s1 + $0x48] sm:$0xff]  ;;  %v2741_v8 = vpack.c.bf16 %v30_v5, %v26_v2  ;;  %v34_v10 = vld [vmem:[%s3699_s1 + $0x40] sm:$0xff]  ;;  %v2782_v22 = vpack.c.bf16 %v33_v20, %v29_v19  ;;  %v28_v23 = vld [vmem:[%s3699_s1 + $0x10] sm:$0xff] }
   0x4   :  { %v39_v7 = vld [vmem:[%s3699_s1 + $0x68] sm:$0xff]  ;;  %v38_v11 = vld [vmem:[%s3699_s1 + $0x60] sm:$0xff]  ;;  %v32_v24 = vld [vmem:[%s3699_s1 + $0x30] sm:$0xff] }
   0x5   :  { %v2743_v9 = vpack.c.bf16 %v39_v7, %v35_v6  ;;  %v43_v12 = vld [vmem:[%s3699_s1 + $0x88] sm:$0xff]  ;;  %2063 = vmatprep.subr.bf16.mxu0 %v2730_v4  ;;  %v2759_v14 = vpack.c.bf16 %v38_v11, %v34_v10  ;;  %v42_v15 = vld [vmem:[%s3699_s1 + $0x80] sm:$0xff]  ;;  %v2790_v25 = vpack.c.bf16 %v32_v24, %v28_v23  ;;  %2095 = vmatprep.subr.bf16.mxu1 %v2782_v22  ;;  %v37_v27 = vld [vmem:[%s3699_s1 + $0x58] sm:$0xff] }
   0x6   :  { %v47_v13 = vld [vmem:[%s3699_s1 + $0xa8] sm:$0xff]  ;;  %2065 = vmatpush1.bf16.msra.mxu0 %v2741_v8  ;;  %v46_v16 = vld [vmem:[%s3699_s1 + $0xa0] sm:$0xff]  ;;  %v41_v28 = vld [vmem:[%s3699_s1 + $0x78] sm:$0xff] }
   0x7   :  { %2067 = vmatprep.subr.bf16.mxu0 %v2743_v9  ;;  %v2768_v17 = vpack.c.bf16 %v47_v13, %v43_v12  ;;  %v51_v18 = vld [vmem:[%s3699_s1 + $0xc8] sm:$0xff]  ;;  %v2793_v26 = vpack.c.bf16 %v46_v16, %v42_v15  ;;  %v36_v29 = vld [vmem:[%s3699_s1 + $0x50] sm:$0xff]  ;;  %v50_v31 = vld [vmem:[%s3699_s1 + $0xc0] sm:$0xff]  ;;  %2097 = vmatpush1.bf16.msra.mxu1 %v2790_v25  ;;  %v2815_v33 = vpack.c.bf16 %v41_v28, %v37_v27 }
   0x8   :  { %v55_v21 = vld [vmem:[%s3699_s1 + $0xe8] sm:$0xff]  ;;  %v54_v32 = vld [vmem:[%s3699_s1 + $0xe0] sm:$0xff]  ;;  %v40_v34 = vld [vmem:[%s3699_s1 + $0x70] sm:$0xff] }
   0x9   :  { %v2806_v30 = vpack.c.bf16 %v55_v21, %v51_v18  ;;  %v59_v35 = vld [vmem:[%s3699_s1 + $0x108] sm:$0xff]  ;;  %v2826_v37 = vpack.c.bf16 %v40_v34, %v36_v29  ;;  %v45_v38 = vld [vmem:[%s3699_s1 + $0x98] sm:$0xff]  ;;  %2099 = vmatprep.subr.bf16.mxu1 %v2815_v33  ;;  %v44_v40 = vld [vmem:[%s3699_s1 + $0x90] sm:$0xff]  ;;  %v2842_v42 = vpack.c.bf16 %v54_v32, %v50_v31 }
   0xa   :  { %2069 = vmatpush1.bf16.msra.mxu0 %v2759_v14  ;;  %v63_v36 = vld [vmem:[%s3699_s1 + $0x128] sm:$0xff]  ;;  %v49_v39 = vld [vmem:[%s3699_s1 + $0xb8] sm:$0xff]  ;;  %v48_v41 = vld [vmem:[%s3699_s1 + $0xb0] sm:$0xff] }
   0xb   :  { %2071 = vmatprep.subr.bf16.mxu0 %v2768_v17  ;;  %v58_v43 = vld [vmem:[%s3699_s1 + $0x100] sm:$0xff]  ;;  %v2850_v45 = vpack.c.bf16 %v49_v39, %v45_v38  ;;  %v2853_v46 = vpack.c.bf16 %v63_v36, %v59_v35  ;;  %2101 = vmatpush1.bf16.msra.mxu1 %v2826_v37  ;;  %v67_v47 = vld [vmem:[%s3699_s1 + $0x148] sm:$0xff]  ;;  %v2859_v48 = vpack.c.bf16 %v48_v41, %v44_v40  ;;  %v53_v49 = vld [vmem:[%s3699_s1 + $0xd8] sm:$0xff] }
   0xc   :  { %v62_v44 = vld [vmem:[%s3699_s1 + $0x120] sm:$0xff]  ;;  %v57_v50 = vld [vmem:[%s3699_s1 + $0xf8] sm:$0xff]  ;;  %v71_v51 = vld [vmem:[%s3699_s1 + $0x168] sm:$0xff] }
   0xd   :  { %2103 = vmatprep.subr.bf16.mxu1 %v2850_v45  ;;  %v2871_v52 = vpack.c.bf16 %v57_v50, %v53_v49  ;;  %v52_v53 = vld [vmem:[%s3699_s1 + $0xd0] sm:$0xff]  ;;  %v2880_v55 = vpack.c.bf16 %v62_v44, %v58_v43  ;;  %v61_v56 = vld [vmem:[%s3699_s1 + $0x118] sm:$0xff]  ;;  %v2889_v58 = vpack.c.bf16 %v71_v51, %v67_v47  ;;  %v66_v59 = vld [vmem:[%s3699_s1 + $0x140] sm:$0xff] }
   0xe   :  { %2073 = vmatpush1.bf16.msra.mxu0 %v2793_v26  ;;  %v56_v54 = vld [vmem:[%s3699_s1 + $0xf0] sm:$0xff]  ;;  %v65_v57 = vld [vmem:[%s3699_s1 + $0x138] sm:$0xff]  ;;  %v70_v60 = vld [vmem:[%s3699_s1 + $0x160] sm:$0xff] }
   0xf   :  { %2075 = vmatprep.subr.bf16.mxu0 %v2806_v30  ;;  %2105 = vmatpush1.bf16.msra.mxu1 %v2859_v48  ;;  %v75_v61 = vld [vmem:[%s3699_s1 + $0x188] sm:$0xff]  ;;  %v2901_v62 = vpack.c.bf16 %v56_v54, %v52_v53  ;;  %v2907_v0 = vpack.c.bf16 %v65_v57, %v61_v56  ;;  %v60_v1 = vld [vmem:[%s3699_s1 + $0x110] sm:$0xff]  ;;  %v69_v5 = vld [vmem:[%s3699_s1 + $0x158] sm:$0xff]  ;;  %v2922_v7 = vpack.c.bf16 %v70_v60, %v66_v59 }
  0x10   :  { %v79_v63 = vld [vmem:[%s3699_s1 + $0x1a8] sm:$0xff]  ;;  %2107 = vmatprep.subr.bf16.mxu1 %v2871_v52  ;;  %v64_v2 = vld [vmem:[%s3699_s1 + $0x130] sm:$0xff]  ;;  %v73_v6 = vld [vmem:[%s3699_s1 + $0x178] sm:$0xff] }
  0x11   :  { %v2925_v10 = vpack.c.bf16 %v79_v63, %v75_v61  ;;  %v74_v11 = vld [vmem:[%s3699_s1 + $0x180] sm:$0xff]  ;;  %v83_v13 = vld [vmem:[%s3699_s1 + $0x1c8] sm:$0xff]  ;;  %v2937_v15 = vpack.c.bf16 %v64_v2, %v60_v1  ;;  %v2943_v18 = vpack.c.bf16 %v73_v6, %v69_v5  ;;  %v68_v19 = vld [vmem:[%s3699_s1 + $0x150] sm:$0xff] }
  0x12   :  { %2077 = vmatpush1.bf16.msra.mxu0 %v2842_v42  ;;  %v78_v12 = vld [vmem:[%s3699_s1 + $0x1a0] sm:$0xff]  ;;  %v87_v16 = vld [vmem:[%s3699_s1 + $0x1e8] sm:$0xff]  ;;  %v72_v20 = vld [vmem:[%s3699_s1 + $0x170] sm:$0xff] }
  0x13   :  { %2079 = vmatprep.subr.bf16.mxu0 %v2853_v46  ;;  %2109 = vmatpush1.bf16.msra.mxu1 %v2901_v62  ;;  %v77_v21 = vld [vmem:[%s3699_s1 + $0x198] sm:$0xff]  ;;  %v2958_v24 = vpack.c.bf16 %v78_v12, %v74_v11  ;;  %v2961_v27 = vpack.c.bf16 %v87_v16, %v83_v13  ;;  %v82_v28 = vld [vmem:[%s3699_s1 + $0x1c0] sm:$0xff]  ;;  %v2970_v31 = vpack.c.bf16 %v72_v20, %v68_v19  ;;  %v76_v34 = vld [vmem:[%s3699_s1 + $0x190] sm:$0xff] }
  0x14   :  { %2111 = vmatprep.subr.bf16.mxu1 %v2907_v0  ;;  %v81_v23 = vld [vmem:[%s3699_s1 + $0x1b8] sm:$0xff]  ;;  %v86_v29 = vld [vmem:[%s3699_s1 + $0x1e0] sm:$0xff]  ;;  %v80_v35 = vld [vmem:[%s3699_s1 + $0x1b0] sm:$0xff] }
  0x15   :  { %v2973_v32 = vpack.c.bf16 %v81_v23, %v77_v21  ;;  %v85_v36 = vld [vmem:[%s3699_s1 + $0x1d8] sm:$0xff]  ;;  %v2988_v39 = vpack.c.bf16 %v86_v29, %v82_v28  ;;  %v2992_v40 = vpack.c.bf16 %v80_v35, %v76_v34  ;;  %v84_v43 = vld [vmem:[%s3699_s1 + $0x1d0] sm:$0xff]  ;;  %v22_v49 = vld [vmem:[%s3700_s0] sm:$0xff] }
  0x16   :  { %2081 = vmatpush1.bf16.msra.mxu0 %v2880_v55  ;;  %v89_v38 = vld [vmem:[%s3699_s1 + $0x1f8] sm:$0xff]  ;;  %v88_v44 = vld [vmem:[%s3699_s1 + $0x1f0] sm:$0xff]  ;;  %v23_v50 = vld [vmem:[%s3700_s0 + $0x8] sm:$0xff] }
  0x17   :  { %2083 = vmatprep.subr.bf16.mxu0 %v2889_v58  ;;  %2113 = vmatpush1.bf16.msra.mxu1 %v2937_v15  ;;  %v2995_v41 = vpack.c.bf16 %v89_v38, %v85_v36  ;;  %v3005_v47 = vpack.c.bf16 %v88_v44, %v84_v43  ;;  %v25_v60 = vld [vmem:[%s3700_s0 + $0x18] sm:$0xff]  ;;  %v24_v2 = vld [vmem:[%s3700_s0 + $0x10] sm:$0xff] }
  0x18   :  { %2115 = vmatprep.subr.bf16.mxu1 %v2943_v18  ;;  %v2008_v44 = vld [vmem:[%s3700_s0 + $0x30] sm:$0xff] }
  0x1a   :  { %2085 = vmatpush1.bf16.msra.mxu0 %v2922_v7 }
  0x1b   :  { %2087 = vmatprep.subr.bf16.mxu0 %v2925_v10  ;;  %2117 = vmatpush1.bf16.msra.mxu1 %v2970_v31 }
  0x1c   :  { %2119 = vmatprep.subr.bf16.mxu1 %v2973_v32 }
  0x1e   :  { %2089 = vmatpush1.bf16.msra.mxu0 %v2958_v24 }
  0x1f   :  { %2091 = vmatprep.subr.bf16.mxu0 %v2961_v27  ;;  %2121 = vmatpush1.bf16.msra.mxu1 %v2992_v40 }
  0x20   :  { %2123 = vmatprep.subr.bf16.mxu1 %v2995_v41 }
  0x22   :  { %2093 = vmatpush1.bf16.msra.mxu0 %v2988_v39 }
  0x23   :  { %2127 = vmatprep.subr.bf16.mxu0 %v2730_v4  ;;  %2125 = vmatpush1.bf16.msra.mxu1 %v3005_v47 }
  0x24   :  { %2159 = vmatprep.subr.bf16.mxu1 %v2782_v22 }
  0x25   :  { %155 = vmatmul.mubr.f32.vlgmr.msra.gmra.mrb[0].mxu0 %v2703_v3 }
  0x26   :  { %2129 = vmatpush1.bf16.msra.mxu0 %v2741_v8  ;;  %400 = vmatprep.mubr.f32.mxu0 %v2703_v3 }
  0x27   :  { %2131 = vmatprep.subr.bf16.mxu0 %v2743_v9  ;;  %226 = vmatmul.mubr.f32.vlgmr.msra.gmra.mrb[0].mxu1 %v2703_v3 }
  0x28   :  { %2161 = vmatpush1.bf16.msra.mxu1 %v2790_v25  ;;  %471 = vmatprep.mubr.f32.mxu1 %v2703_v3 }
  0x29   :  { %2163 = vmatprep.subr.bf16.mxu1 %v2815_v33 }
  0x2a   :  { %2133 = vmatpush1.bf16.msra.mxu0 %v2759_v14 }
  0x2b   :  { %2135 = vmatprep.subr.bf16.mxu0 %v2768_v17 }
  0x2c   :  { %2165 = vmatpush1.bf16.msra.mxu1 %v2826_v37 }
  0x2d   :  { %2167 = vmatprep.subr.bf16.mxu1 %v2850_v45 }
  0x2e   :  { %2137 = vmatpush1.bf16.msra.mxu0 %v2793_v26 }
  0x2f   :  { %2139 = vmatprep.subr.bf16.mxu0 %v2806_v30 }
  0x30   :  { %2169 = vmatpush1.bf16.msra.mxu1 %v2859_v48 }
  0x31   :  { %2171 = vmatprep.subr.bf16.mxu1 %v2871_v52 }
  0x32   :  { %2141 = vmatpush1.bf16.msra.mxu0 %v2842_v42 }
  0x33   :  { %2143 = vmatprep.subr.bf16.mxu0 %v2853_v46 }
  0x34   :  { %2173 = vmatpush1.bf16.msra.mxu1 %v2901_v62 }
  0x35   :  { %2175 = vmatprep.subr.bf16.mxu1 %v2907_v0 }
  0x36   :  { %2145 = vmatpush1.bf16.msra.mxu0 %v2880_v55 }
  0x37   :  { %2147 = vmatprep.subr.bf16.mxu0 %v2889_v58 }
  0x38   :  { %2177 = vmatpush1.bf16.msra.mxu1 %v2937_v15 }
  0x39   :  { %2179 = vmatprep.subr.bf16.mxu1 %v2943_v18 }
  0x3a   :  { %2149 = vmatpush1.bf16.msra.mxu0 %v2922_v7 }
  0x3b   :  { %2151 = vmatprep.subr.bf16.mxu0 %v2925_v10 }
  0x3c   :  { %2181 = vmatpush1.bf16.msra.mxu1 %v2970_v31 }
  0x3d   :  { %2183 = vmatprep.subr.bf16.mxu1 %v2973_v32 }
  0x3e   :  { %2153 = vmatpush1.bf16.msra.mxu0 %v2958_v24 }
  0x3f   :  { %2155 = vmatprep.subr.bf16.mxu0 %v2961_v27 }
  0x40   :  { %2185 = vmatpush1.bf16.msra.mxu1 %v2992_v40 }
  0x41   :  { %2187 = vmatprep.subr.bf16.mxu1 %v2995_v41 }
  0x42   :  { %2157 = vmatpush1.bf16.msra.mxu0 %v2988_v39 }
  0x43   :  { %2191 = vmatprep.subr.bf16.mxu0 %v2730_v4 }
  0x44   :  { %2189 = vmatpush1.bf16.msra.mxu1 %v3005_v47 }
  0x45   :  { %2223 = vmatprep.subr.bf16.mxu1 %v2782_v22 }
  0xf8   :  { %v156_v51 = vpop.f32.mrb[0].mxu0 }
  0xf9   :  { %v232_v53 = vadd.f32 %v156_v51, %v22_v49  ;;  %v158_v54 = vpop.f32.mrb[1].mxu0 }
  0xfa   :  { %v233_v56 = vadd.f32 %v158_v54, %v23_v50  ;;  %v227_v61 = vpop.f32.mrb[0].mxu1 }
  0xfb   :  { %v2003_v57 = vmul.f32 -1.442695, %v232_v53  ;;  %v229_v63 = vpop.f32.mrb[1].mxu1  ;;  %v234_v6 = vadd.f32 %v227_v61, %v24_v2 }
  0xfc   :  { %v2004_v59 = vmul.f32 -1.442695, %v233_v56  ;;  %v235_v1 = vadd.f32 %v229_v63, %v25_v60 }
  0xfd   :  { %2575 = vpow2.f32 %v2003_v57 }
  0xfe   :  { %2577 = vpow2.f32 %v2004_v59  ;;  %v2005_v5 = vmul.f32 -1.442695, %v235_v1 }
 0x100   :  { %2579 = vpow2.f32 %v2005_v5 }
 0x101   :  { %2581 = vtanh.f32 %v234_v6 }
 0x107   :  { %v2576_v11 = vpop.eup %2575 }
 0x108   :  { %v2578_v12 = vpop.eup %2577  ;;  %v239_v13 = vadd.f32 1.0, %v2576_v11 }
 0x109   :  { %v245_v16 = vadd.f32 1.0, %v2578_v12 }
 0x10a   :  { %2583 = vrcp.f32 %v239_v13  ;;  %v2580_v19 = vpop.eup %2579 }
 0x10b   :  { %2585 = vrcp.f32 %v245_v16  ;;  %v2582_v20 = vpop.eup %2581  ;;  %v252_v23 = vadd.f32 1.0, %v2580_v19  ;;  %v814_v16 = vld [vmem:[%s3699_s1 + $0x180] sm:$0xff] }
 0x10c   :  { %v818_v19 = vld [vmem:[%s3699_s1 + $0x1a0] sm:$0xff] }
 0x10d   :  { %2587 = vrcp.f32 %v252_v23  ;;  %v3214_v23 = vpack.c.bf16 %v818_v19, %v814_v16  ;;  %v1021_v16 = vld [vmem:[%s3699_s1 + $0x40] sm:$0xff] }
 0x10e   :  { %v1025_v19 = vld [vmem:[%s3699_s1 + $0x60] sm:$0xff] }
 0x114   :  { %v2584_v21 = vpop.eup %2583 }
 0x115   :  { %v2586_v28 = vpop.eup %2585  ;;  %v256_v29 = vmul.f32 %v2584_v21, %v2582_v20  ;;  %v823_v20 = vld [vmem:[%s3699_s1 + $0x1c8] sm:$0xff] }
 0x116   :  { %v255_v34 = vmul.f32 0.0, %v2586_v28  ;;  %v827_v21 = vld [vmem:[%s3699_s1 + $0x1e8] sm:$0xff] }
 0x117   :  { %v2588_v36 = vpop.eup %2587  ;;  %v3217_v28 = vpack.c.bf16 %v827_v21, %v823_v20  ;;  %v3309_v21 = vpack.c.bf16 %v1025_v19, %v1021_v16  ;;  %v1075_v16 = vld [vmem:[%s3699_s1 + $0x1f0] sm:$0xff] }
 0x118   :  { %v3059_v35 = vadd.f32 %v256_v29, %v255_v34  ;;  %v822_v29 = vld [vmem:[%s3699_s1 + $0x1c0] sm:$0xff] }
 0x119   :  { %v826_v34 = vld [vmem:[%s3699_s1 + $0x1e0] sm:$0xff] }
 0x11a   :  { %2589 = vtanh.f32 %v3059_v35 }
 0x124   :  { %v2590_v38 = vpop.eup %2589 }
 0x125   :  { %v259_v43 = vmul.f32 %v2590_v38, %v2588_v36  ;;  %v2014_v36 = vld [vmem:[%s3700_s0 + $0x40] sm:$0xff]  ;;  %v2015_v38 = vld [vmem:[%s3700_s0 + $0x48] sm:$0xff] }
 0x127   :  { %262 = vst [vmem:[%s3701_s2] sm:$0xff] %v259_v43  ;;  %401 = vmatmul.mubr.f32.vlgmr.msra.gmra.mrb[2].mxu0 %v259_v43  ;;  %472 = vmatmul.mubr.f32.vlgmr.msra.gmra.mrb[2].mxu1 %v259_v43 }
 0x128   :  { %2193 = vmatpush1.bf16.msra.mxu0 %v2741_v8  ;;  %2225 = vmatpush1.bf16.msra.mxu1 %v2790_v25 }
 0x129   :  { %2195 = vmatprep.subr.bf16.mxu0 %v2743_v9  ;;  %2227 = vmatprep.subr.bf16.mxu1 %v2815_v33 }
 0x12a   :  { %647 = vmatprep.mubr.f32.mxu0 %v2703_v3  ;;  %718 = vmatprep.mubr.f32.mxu1 %v2703_v3 }
 0x12c   :  { %2197 = vmatpush1.bf16.msra.mxu0 %v2759_v14  ;;  %2229 = vmatpush1.bf16.msra.mxu1 %v2826_v37 }
 0x12d   :  { %2199 = vmatprep.subr.bf16.mxu0 %v2768_v17  ;;  %2231 = vmatprep.subr.bf16.mxu1 %v2850_v45 }
 0x130   :  { %2201 = vmatpush1.bf16.msra.mxu0 %v2793_v26  ;;  %2233 = vmatpush1.bf16.msra.mxu1 %v2859_v48 }
 0x131   :  { %2203 = vmatprep.subr.bf16.mxu0 %v2806_v30  ;;  %2235 = vmatprep.subr.bf16.mxu1 %v2871_v52  ;;  %v2006_v30 = vld [vmem:[%s3700_s0 + $0x20] sm:$0xff] }
 0x134   :  { %2205 = vmatpush1.bf16.msra.mxu0 %v2842_v42  ;;  %2237 = vmatpush1.bf16.msra.mxu1 %v2901_v62  ;;  %v2007_v42 = vld [vmem:[%s3700_s0 + $0x28] sm:$0xff] }
 0x135   :  { %2207 = vmatprep.subr.bf16.mxu0 %v2853_v46  ;;  %2239 = vmatprep.subr.bf16.mxu1 %v2907_v0 }
 0x138   :  { %2209 = vmatpush1.bf16.msra.mxu0 %v2880_v55  ;;  %2241 = vmatpush1.bf16.msra.mxu1 %v2937_v15 }
 0x139   :  { %2211 = vmatprep.subr.bf16.mxu0 %v2889_v58  ;;  %2243 = vmatprep.subr.bf16.mxu1 %v2943_v18 }
 0x13c   :  { %2213 = vmatpush1.bf16.msra.mxu0 %v2922_v7  ;;  %2245 = vmatpush1.bf16.msra.mxu1 %v2970_v31 }
 0x13d   :  { %2215 = vmatprep.subr.bf16.mxu0 %v2925_v10  ;;  %2247 = vmatprep.subr.bf16.mxu1 %v2973_v32 }
 0x140   :  { %2217 = vmatpush1.bf16.msra.mxu0 %v2958_v24  ;;  %2249 = vmatpush1.bf16.msra.mxu1 %v2992_v40 }
 0x141   :  { %2219 = vmatprep.subr.bf16.mxu0 %v2961_v27  ;;  %2251 = vmatprep.subr.bf16.mxu1 %v2995_v41 }
 0x144   :  { %2221 = vmatpush1.bf16.msra.mxu0 %v2988_v39  ;;  %2253 = vmatpush1.bf16.msra.mxu1 %v3005_v47 }
 0x145   :  { %2255 = vmatprep.subr.bf16.mxu0 %v2730_v4  ;;  %2287 = vmatprep.subr.bf16.mxu1 %v2782_v22  ;;  %v2009_v4 = vld [vmem:[%s3700_s0 + $0x38] sm:$0xff] }
 0x1fa   :  { %v402_v46 = vpop.f32.mrb[2].mxu0  ;;  %v473_v55 = vpop.f32.mrb[2].mxu1 }
 0x1fb   :  { %v478_v58 = vadd.f32 %v2006_v30, %v402_v46  ;;  %v404_v7 = vpop.f32.mrb[3].mxu0  ;;  %v475_v10 = vpop.f32.mrb[3].mxu1  ;;  %v480_v50 = vadd.f32 %v2008_v44, %v473_v55 }
 0x1fc   :  { %v479_v24 = vadd.f32 %v2007_v42, %v404_v7  ;;  %v481_v22 = vadd.f32 %v2009_v4, %v475_v10 }
 0x1fd   :  { %v2010_v27 = vmul.f32 -1.442695, %v478_v58 }
 0x1fe   :  { %v2011_v39 = vmul.f32 -1.442695, %v479_v24  ;;  %v2012_v49 = vmul.f32 -1.442695, %v481_v22  ;;  %v2017_v24 = vld [vmem:[%s3700_s0 + $0x58] sm:$0xff] }
 0x1ff   :  { %2591 = vpow2.f32 %v2010_v27 }
 0x200   :  { %2593 = vpow2.f32 %v2011_v39  ;;  %v2016_v39 = vld [vmem:[%s3700_s0 + $0x50] sm:$0xff] }
 0x201   :  { %2595 = vpow2.f32 %v2012_v49 }
 0x202   :  { %2597 = vtanh.f32 %v480_v50 }
 0x209   :  { %v2592_v51 = vpop.eup %2591 }
 0x20a   :  { %v2594_v53 = vpop.eup %2593  ;;  %v485_v54 = vadd.f32 1.0, %v2592_v51 }
 0x20b   :  { %v491_v56 = vadd.f32 1.0, %v2594_v53  ;;  %v2596_v57 = vpop.eup %2595 }
 0x20c   :  { %2599 = vrcp.f32 %v485_v54  ;;  %v2598_v59 = vpop.eup %2597  ;;  %v498_v1 = vadd.f32 1.0, %v2596_v57 }
 0x20d   :  { %2601 = vrcp.f32 %v491_v56 }
 0x20e   :  { %2603 = vrcp.f32 %v498_v1 }
 0x216   :  { %v2600_v60 = vpop.eup %2599 }
 0x217   :  { %v2602_v61 = vpop.eup %2601  ;;  %v502_v63 = vmul.f32 %v2600_v60, %v2598_v59 }
 0x218   :  { %v501_v2 = vmul.f32 %v2602_v61, %v3059_v35  ;;  %v2604_v6 = vpop.eup %2603  ;;  %v3226_v35 = vpack.c.bf16 %v826_v34, %v822_v29  ;;  %v1023_v29 = vld [vmem:[%s3699_s1 + $0x50] sm:$0xff] }
 0x219   :  { %v1027_v34 = vld [vmem:[%s3699_s1 + $0x70] sm:$0xff] }
 0x21a   :  { %v3112_v5 = vadd.f32 %v502_v63, %v501_v2 }
 0x21c   :  { %2605 = vtanh.f32 %v3112_v5 }
 0x226   :  { %v2606_v11 = vpop.eup %2605 }
 0x227   :  { %v505_v12 = vmul.f32 %v2606_v11, %v2604_v6  ;;  %v1018_v11 = vld [vmem:[%s3699_s1 + $0x28] sm:$0xff] }
 0x229   :  { %2013 = vst [vmem:[%s3701_s2 + $0x8] sm:$0xff] %v505_v12  ;;  %648 = vmatmul.mubr.f32.vlgmr.msra.gmra.mrb[4].mxu0 %v505_v12  ;;  %719 = vmatmul.mubr.f32.vlgmr.msra.gmra.mrb[4].mxu1 %v505_v12  ;;  %v1016_v12 = vld [vmem:[%s3699_s1 + $0x18] sm:$0xff] }
 0x22a   :  { %2257 = vmatpush1.bf16.msra.mxu0 %v2741_v8  ;;  %2289 = vmatpush1.bf16.msra.mxu1 %v2790_v25  ;;  %v791_v8 = vld [vmem:[%s3699_s1 + $0xc8] sm:$0xff]  ;;  %v794_v25 = vld [vmem:[%s3699_s1 + $0xe0] sm:$0xff] }
 0x22b   :  { %2259 = vmatprep.subr.bf16.mxu0 %v2743_v9  ;;  %2291 = vmatprep.subr.bf16.mxu1 %v2815_v33  ;;  %v795_v9 = vld [vmem:[%s3699_s1 + $0xe8] sm:$0xff] }
 0x22c   :  { %894 = vmatprep.mubr.f32.mxu0 %v2703_v3  ;;  %965 = vmatprep.mubr.f32.mxu1 %v2703_v3  ;;  %v799_v33 = vld [vmem:[%s3699_s1 + $0x108] sm:$0xff] }
 0x22e   :  { %2261 = vmatpush1.bf16.msra.mxu0 %v2759_v14  ;;  %2293 = vmatpush1.bf16.msra.mxu1 %v2826_v37  ;;  %v3146_v14 = vpack.c.bf16 %v795_v9, %v791_v8  ;;  %v803_v37 = vld [vmem:[%s3699_s1 + $0x128] sm:$0xff]  ;;  %v1020_v9 = vld [vmem:[%s3699_s1 + $0x38] sm:$0xff] }
 0x22f   :  { %2263 = vmatprep.subr.bf16.mxu0 %v2768_v17  ;;  %2295 = vmatprep.subr.bf16.mxu1 %v2850_v45  ;;  %v790_v17 = vld [vmem:[%s3699_s1 + $0xc0] sm:$0xff]  ;;  %v3164_v45 = vpack.c.bf16 %v803_v37, %v799_v33  ;;  %v3271_v33 = vpack.c.bf16 %v1020_v9, %v1016_v12  ;;  %v1068_v12 = vld [vmem:[%s3699_s1 + $0x1b8] sm:$0xff] }
 0x232   :  { %2265 = vmatpush1.bf16.msra.mxu0 %v2793_v26  ;;  %2297 = vmatpush1.bf16.msra.mxu1 %v2859_v48  ;;  %v3154_v26 = vpack.c.bf16 %v794_v25, %v790_v17  ;;  %v798_v48 = vld [vmem:[%s3699_s1 + $0x100] sm:$0xff] }
 0x233   :  { %2299 = vmatprep.subr.bf16.mxu1 %v2871_v52  ;;  %2267 = vmatprep.subr.bf16.mxu0 %v3146_v14  ;;  %v802_v52 = vld [vmem:[%s3699_s1 + $0x120] sm:$0xff] }
 0x234   :  { %v1013_v17 = vld [vmem:[%s3699_s1] sm:$0xff] }
 0x235   :  { %v1017_v25 = vld [vmem:[%s3699_s1 + $0x20] sm:$0xff] }
 0x236   :  { %2301 = vmatpush1.bf16.msra.mxu1 %v2901_v62  ;;  %2269 = vmatpush1.bf16.msra.mxu0 %v3154_v26  ;;  %v3172_v62 = vpack.c.bf16 %v802_v52, %v798_v48  ;;  %v3273_v37 = vpack.c.bf16 %v1017_v25, %v1013_v17  ;;  %v1015_v48 = vld [vmem:[%s3699_s1 + $0x10] sm:$0xff] }
 0x237   :  { %2303 = vmatprep.subr.bf16.mxu1 %v2907_v0  ;;  %2271 = vmatprep.subr.bf16.mxu0 %v3164_v45  ;;  %v807_v0 = vld [vmem:[%s3699_s1 + $0x148] sm:$0xff]  ;;  %v1019_v52 = vld [vmem:[%s3699_s1 + $0x30] sm:$0xff] }
 0x238   :  { %v1063_v25 = vld [vmem:[%s3699_s1 + $0x190] sm:$0xff] }
 0x23a   :  { %2305 = vmatpush1.bf16.msra.mxu1 %v2937_v15  ;;  %v811_v15 = vld [vmem:[%s3699_s1 + $0x168] sm:$0xff]  ;;  %2273 = vmatpush1.bf16.msra.mxu0 %v3172_v62 }
 0x23b   :  { %2307 = vmatprep.subr.bf16.mxu1 %v2943_v18  ;;  %v806_v18 = vld [vmem:[%s3699_s1 + $0x140] sm:$0xff] }
 0x23e   :  { %2309 = vmatpush1.bf16.msra.mxu1 %v2970_v31  ;;  %v3185_v31 = vpack.c.bf16 %v811_v15, %v807_v0  ;;  %v3282_v0 = vpack.c.bf16 %v1019_v52, %v1015_v48  ;;  %v1022_v15 = vld [vmem:[%s3699_s1 + $0x48] sm:$0xff]  ;;  %v1067_v48 = vld [vmem:[%s3699_s1 + $0x1b0] sm:$0xff]  ;;  %v1072_v52 = vld [vmem:[%s3699_s1 + $0x1d8] sm:$0xff] }
 0x23f   :  { %2311 = vmatprep.subr.bf16.mxu1 %v2973_v32  ;;  %v810_v32 = vld [vmem:[%s3699_s1 + $0x160] sm:$0xff] }
 0x240   :  { %2275 = vmatprep.subr.bf16.mxu0 %v3185_v31 }
 0x242   :  { %2313 = vmatpush1.bf16.msra.mxu1 %v2992_v40  ;;  %v815_v40 = vld [vmem:[%s3699_s1 + $0x188] sm:$0xff] }
 0x243   :  { %2315 = vmatprep.subr.bf16.mxu1 %v2995_v41  ;;  %v819_v41 = vld [vmem:[%s3699_s1 + $0x1a8] sm:$0xff] }
 0x244   :  { %v3198_v13 = vpack.c.bf16 %v819_v41, %v815_v40  ;;  %v1028_v41 = vld [vmem:[%s3699_s1 + $0x78] sm:$0xff] }
 0x246   :  { %2317 = vmatpush1.bf16.msra.mxu1 %v3005_v47  ;;  %v3196_v47 = vpack.c.bf16 %v810_v32, %v806_v18  ;;  %v1026_v18 = vld [vmem:[%s3699_s1 + $0x68] sm:$0xff]  ;;  %v1024_v32 = vld [vmem:[%s3699_s1 + $0x58] sm:$0xff] }
 0x247   :  { %2351 = vmatprep.subr.bf16.mxu1 %v3271_v33  ;;  %v3296_v40 = vpack.c.bf16 %v1026_v18, %v1022_v15  ;;  %v3307_v20 = vpack.c.bf16 %v1028_v41, %v1024_v32  ;;  %v1076_v15 = vld [vmem:[%s3699_s1 + $0x1f8] sm:$0xff]  ;;  %v3440_v18 = vpack.c.bf16 %v1067_v48, %v1063_v25  ;;  %v1071_v41 = vld [vmem:[%s3699_s1 + $0x1d0] sm:$0xff] }
 0x248   :  { %2277 = vmatpush1.bf16.msra.mxu0 %v3196_v47  ;;  %v3443_v32 = vpack.c.bf16 %v1076_v15, %v1072_v52  ;;  %v3454_v19 = vpack.c.bf16 %v1075_v16, %v1071_v41 }
 0x249   :  { %2279 = vmatprep.subr.bf16.mxu0 %v3198_v13 }
 0x24c   :  { %2281 = vmatpush1.bf16.msra.mxu0 %v3214_v23 }
 0x24d   :  { %2283 = vmatprep.subr.bf16.mxu0 %v3217_v28 }
 0x250   :  { %2285 = vmatpush1.bf16.msra.mxu0 %v3226_v35 }
 0x2fc   :  { %v649_v43 = vpop.f32.mrb[4].mxu0  ;;  %v720_v30 = vpop.f32.mrb[4].mxu1 }
 0x2fd   :  { %v725_v42 = vadd.f32 %v2014_v36, %v649_v43  ;;  %v651_v46 = vpop.f32.mrb[5].mxu0  ;;  %v722_v55 = vpop.f32.mrb[5].mxu1  ;;  %v727_v22 = vadd.f32 %v2016_v39, %v720_v30  ;;  %v3318_v36 = vpack.c.bf16 %v1027_v34, %v1023_v29  ;;  %v1034_v43 = vld [vmem:[%s3699_s1 + $0xa8] sm:$0xff]  ;;  %v1032_v30 = vld [vmem:[%s3699_s1 + $0x98] sm:$0xff]  ;;  %v2022_v29 = vld [vmem:[%s3700_s0 + $0x60] sm:$0xff] }
 0x2fe   :  { %v726_v58 = vadd.f32 %v2015_v38, %v651_v46  ;;  %v728_v27 = vadd.f32 %v2017_v24, %v722_v55  ;;  %v1030_v38 = vld [vmem:[%s3699_s1 + $0x88] sm:$0xff]  ;;  %v1036_v46 = vld [vmem:[%s3699_s1 + $0xb8] sm:$0xff]  ;;  %v1029_v55 = vld [vmem:[%s3699_s1 + $0x80] sm:$0xff] }
 0x2ff   :  { %v2018_v7 = vmul.f32 -1.442695, %v725_v42  ;;  %v3332_v42 = vpack.c.bf16 %v1034_v43, %v1030_v38  ;;  %v1031_v24 = vld [vmem:[%s3699_s1 + $0x90] sm:$0xff]  ;;  %v2023_v34 = vld [vmem:[%s3700_s0 + $0x68] sm:$0xff] }
 0x300   :  { %v2019_v10 = vmul.f32 -1.442695, %v726_v58  ;;  %v2020_v4 = vmul.f32 -1.442695, %v728_v27  ;;  %v1033_v58 = vld [vmem:[%s3699_s1 + $0xa0] sm:$0xff]  ;;  %v1035_v27 = vld [vmem:[%s3699_s1 + $0xb0] sm:$0xff] }
 0x301   :  { %2607 = vpow2.f32 %v2018_v7  ;;  %v3343_v7 = vpack.c.bf16 %v1036_v46, %v1032_v30  ;;  %v3354_v39 = vpack.c.bf16 %v1035_v27, %v1031_v24 }
 0x302   :  { %2609 = vpow2.f32 %v2019_v10  ;;  %v3345_v10 = vpack.c.bf16 %v1033_v58, %v1029_v55 }
 0x303   :  { %2611 = vpow2.f32 %v2020_v4  ;;  %v1040_v4 = vld [vmem:[%s3699_s1 + $0xd8] sm:$0xff] }
 0x304   :  { %2613 = vtanh.f32 %v727_v22  ;;  %v1044_v22 = vld [vmem:[%s3699_s1 + $0xf8] sm:$0xff] }
 0x30b   :  { %v2608_v44 = vpop.eup %2607 }
 0x30c   :  { %v2610_v49 = vpop.eup %2609  ;;  %v732_v50 = vadd.f32 1.0, %v2608_v44  ;;  %v3366_v44 = vpack.c.bf16 %v1044_v22, %v1040_v4  ;;  %v2025_v4 = vld [vmem:[%s3700_s0 + $0x78] sm:$0xff] }
 0x30d   :  { %v738_v51 = vadd.f32 1.0, %v2610_v49  ;;  %v2612_v53 = vpop.eup %2611  ;;  %v1039_v49 = vld [vmem:[%s3699_s1 + $0xd0] sm:$0xff] }
 0x30e   :  { %2615 = vrcp.f32 %v732_v50  ;;  %v2614_v54 = vpop.eup %2613  ;;  %v745_v60 = vadd.f32 1.0, %v2612_v53  ;;  %v1043_v50 = vld [vmem:[%s3699_s1 + $0xf0] sm:$0xff]  ;;  %v1048_v53 = vld [vmem:[%s3699_s1 + $0x118] sm:$0xff] }
 0x30f   :  { %2617 = vrcp.f32 %v738_v51  ;;  %v3374_v51 = vpack.c.bf16 %v1043_v50, %v1039_v49  ;;  %v2024_v49 = vld [vmem:[%s3700_s0 + $0x70] sm:$0xff] }
 0x310   :  { %2619 = vrcp.f32 %v745_v60 }
 0x318   :  { %v2616_v56 = vpop.eup %2615 }
 0x319   :  { %v2618_v57 = vpop.eup %2617  ;;  %v749_v59 = vmul.f32 %v2616_v56, %v2614_v54  ;;  %v1052_v54 = vld [vmem:[%s3699_s1 + $0x138] sm:$0xff] }
 0x31a   :  { %v748_v61 = vmul.f32 %v2618_v57, %v3112_v5  ;;  %v2620_v1 = vpop.eup %2619  ;;  %v1014_v5 = vld [vmem:[%s3699_s1 + $0x8] sm:$0xff]  ;;  %v3386_v56 = vpack.c.bf16 %v1052_v54, %v1048_v53  ;;  %v1047_v57 = vld [vmem:[%s3699_s1 + $0x110] sm:$0xff] }
 0x31b   :  { %v3260_v8 = vpack.c.bf16 %v1018_v11, %v1014_v5  ;;  %v1059_v5 = vld [vmem:[%s3699_s1 + $0x170] sm:$0xff]  ;;  %v1064_v11 = vld [vmem:[%s3699_s1 + $0x198] sm:$0xff] }
 0x31c   :  { %v3243_v63 = vadd.f32 %v749_v59, %v748_v61  ;;  %v1051_v59 = vld [vmem:[%s3699_s1 + $0x130] sm:$0xff]  ;;  %v1056_v61 = vld [vmem:[%s3699_s1 + $0x158] sm:$0xff]  ;;  %v3423_v17 = vpack.c.bf16 %v1068_v12, %v1064_v11 }
 0x31d   :  { %2319 = vmatprep.subr.bf16.mxu0 %v3260_v8  ;;  %v3394_v60 = vpack.c.bf16 %v1051_v59, %v1047_v57 }
 0x31e   :  { %2621 = vtanh.f32 %v3243_v63 }
 0x328   :  { %v2622_v2 = vpop.eup %2621 }
 0x329   :  { %v752_v6 = vmul.f32 %v2622_v2, %v2620_v1  ;;  %v1060_v1 = vld [vmem:[%s3699_s1 + $0x178] sm:$0xff]  ;;  %v1055_v2 = vld [vmem:[%s3699_s1 + $0x150] sm:$0xff] }
 0x32a   :  { %v3420_v9 = vpack.c.bf16 %v1059_v5, %v1055_v2 }
 0x32b   :  { %2021 = vst [vmem:[%s3701_s2 + $0x10] sm:$0xff] %v752_v6  ;;  %895 = vmatmul.mubr.f32.vlgmr.msra.gmra.mrb[6].mxu0 %v752_v6  ;;  %966 = vmatmul.mubr.f32.vlgmr.msra.gmra.mrb[6].mxu1 %v752_v6  ;;  %v3407_v6 = vpack.c.bf16 %v1060_v1, %v1056_v61 }
 0x32c   :  { %1141 = vmatprep.mubr.f32.mxu0 %v2703_v3  ;;  %1212 = vmatprep.mubr.f32.mxu1 %v2703_v3 }
 0x32d   :  { %2321 = vmatpush1.bf16.msra.mxu0 %v3273_v37  ;;  %2353 = vmatpush1.bf16.msra.mxu1 %v3282_v0 }
 0x32e   :  { %2323 = vmatprep.subr.bf16.mxu0 %v3296_v40  ;;  %2355 = vmatprep.subr.bf16.mxu1 %v3307_v20 }
 0x331   :  { %2325 = vmatpush1.bf16.msra.mxu0 %v3309_v21  ;;  %2357 = vmatpush1.bf16.msra.mxu1 %v3318_v36 }
 0x332   :  { %2327 = vmatprep.subr.bf16.mxu0 %v3332_v42  ;;  %2359 = vmatprep.subr.bf16.mxu1 %v3343_v7 }
 0x335   :  { %2329 = vmatpush1.bf16.msra.mxu0 %v3345_v10  ;;  %2361 = vmatpush1.bf16.msra.mxu1 %v3354_v39 }
 0x336   :  { %2331 = vmatprep.subr.bf16.mxu0 %v3146_v14  ;;  %2363 = vmatprep.subr.bf16.mxu1 %v3366_v44 }
 0x339   :  { %2333 = vmatpush1.bf16.msra.mxu0 %v3154_v26  ;;  %2365 = vmatpush1.bf16.msra.mxu1 %v3374_v51 }
 0x33a   :  { %2335 = vmatprep.subr.bf16.mxu0 %v3164_v45  ;;  %2367 = vmatprep.subr.bf16.mxu1 %v3386_v56 }
 0x33d   :  { %2337 = vmatpush1.bf16.msra.mxu0 %v3172_v62  ;;  %2369 = vmatpush1.bf16.msra.mxu1 %v3394_v60 }
 0x33e   :  { %2339 = vmatprep.subr.bf16.mxu0 %v3185_v31  ;;  %2371 = vmatprep.subr.bf16.mxu1 %v3407_v6 }
 0x341   :  { %2341 = vmatpush1.bf16.msra.mxu0 %v3196_v47  ;;  %2373 = vmatpush1.bf16.msra.mxu1 %v3420_v9 }
 0x342   :  { %2343 = vmatprep.subr.bf16.mxu0 %v3198_v13  ;;  %2375 = vmatprep.subr.bf16.mxu1 %v3423_v17 }
 0x345   :  { %2345 = vmatpush1.bf16.msra.mxu0 %v3214_v23  ;;  %2377 = vmatpush1.bf16.msra.mxu1 %v3440_v18 }
 0x346   :  { %2347 = vmatprep.subr.bf16.mxu0 %v3217_v28  ;;  %2379 = vmatprep.subr.bf16.mxu1 %v3443_v32 }
 0x349   :  { %2349 = vmatpush1.bf16.msra.mxu0 %v3226_v35  ;;  %2381 = vmatpush1.bf16.msra.mxu1 %v3454_v19 }
 0x34a   :  { %2383 = vmatprep.subr.bf16.mxu0 %v3260_v8  ;;  %2415 = vmatprep.subr.bf16.mxu1 %v3271_v33 }
 0x3fe   :  { %v896_v38 = vpop.f32.mrb[6].mxu0  ;;  %v967_v43 = vpop.f32.mrb[6].mxu1 }
 0x3ff   :  { %v972_v30 = vadd.f32 %v2022_v29, %v896_v38  ;;  %v898_v46 = vpop.f32.mrb[7].mxu0  ;;  %v969_v55 = vpop.f32.mrb[7].mxu1  ;;  %v974_v53 = vadd.f32 %v2024_v49, %v967_v43  ;;  %v2031_v29 = vld [vmem:[%s3700_s0 + $0x88] sm:$0xff] }
 0x400   :  { %v973_v58 = vadd.f32 %v2023_v34, %v898_v46  ;;  %v975_v22 = vadd.f32 %v2025_v4, %v969_v55 }
 0x401   :  { %v2026_v24 = vmul.f32 -1.442695, %v972_v30 }
 0x402   :  { %v2027_v27 = vmul.f32 -1.442695, %v973_v58  ;;  %v2028_v50 = vmul.f32 -1.442695, %v975_v22  ;;  %v2032_v22 = vld [vmem:[%s3700_s0 + $0x90] sm:$0xff] }
 0x403   :  { %2623 = vpow2.f32 %v2026_v24 }
 0x404   :  { %2625 = vpow2.f32 %v2027_v27  ;;  %v2033_v27 = vld [vmem:[%s3700_s0 + $0x98] sm:$0xff] }
 0x405   :  { %2627 = vpow2.f32 %v2028_v50 }
 0x406   :  { %2629 = vtanh.f32 %v974_v53 }
 0x40d   :  { %v2624_v54 = vpop.eup %2623 }
 0x40e   :  { %v2626_v57 = vpop.eup %2625  ;;  %v979_v59 = vadd.f32 1.0, %v2624_v54 }
 0x40f   :  { %v985_v61 = vadd.f32 1.0, %v2626_v57  ;;  %v2628_v1 = vpop.eup %2627 }
 0x410   :  { %2631 = vrcp.f32 %v979_v59  ;;  %v2630_v2 = vpop.eup %2629  ;;  %v992_v25 = vadd.f32 1.0, %v2628_v1 }
 0x411   :  { %2633 = vrcp.f32 %v985_v61 }
 0x412   :  { %2635 = vrcp.f32 %v992_v25 }
 0x41a   :  { %v2632_v5 = vpop.eup %2631 }
 0x41b   :  { %v2634_v11 = vpop.eup %2633  ;;  %v996_v12 = vmul.f32 %v2632_v5, %v2630_v2 }
 0x41c   :  { %v995_v48 = vmul.f32 %v2634_v11, %v3243_v63  ;;  %v2636_v15 = vpop.eup %2635  ;;  %v2030_v63 = vld [vmem:[%s3700_s0 + $0x80] sm:$0xff] }
 0x41e   :  { %v3474_v52 = vadd.f32 %v996_v12, %v995_v48 }
 0x420   :  { %2637 = vtanh.f32 %v3474_v52 }
 0x42a   :  { %v2638_v41 = vpop.eup %2637 }
 0x42b   :  { %v999_v16 = vmul.f32 %v2638_v41, %v2636_v15 }
 0x42d   :  { %2029 = vst [vmem:[%s3701_s2 + $0x18] sm:$0xff] %v999_v16  ;;  %1142 = vmatmul.mubr.f32.vlgmr.msra.gmra.mrb[8].mxu0 %v999_v16  ;;  %1213 = vmatmul.mubr.f32.vlgmr.msra.gmra.mrb[8].mxu1 %v999_v16 }
 0x42e   :  { %2385 = vmatpush1.bf16.msra.mxu0 %v3273_v37  ;;  %2417 = vmatpush1.bf16.msra.mxu1 %v3282_v0 }
 0x42f   :  { %2387 = vmatprep.subr.bf16.mxu0 %v3296_v40  ;;  %2419 = vmatprep.subr.bf16.mxu1 %v3307_v20 }
 0x430   :  { %1388 = vmatprep.mubr.f32.mxu0 %v2703_v3  ;;  %1459 = vmatprep.mubr.f32.mxu1 %v2703_v3 }
 0x432   :  { %2389 = vmatpush1.bf16.msra.mxu0 %v3309_v21  ;;  %2421 = vmatpush1.bf16.msra.mxu1 %v3318_v36 }
 0x433   :  { %2391 = vmatprep.subr.bf16.mxu0 %v3332_v42  ;;  %2423 = vmatprep.subr.bf16.mxu1 %v3343_v7 }
 0x436   :  { %2393 = vmatpush1.bf16.msra.mxu0 %v3345_v10  ;;  %2425 = vmatpush1.bf16.msra.mxu1 %v3354_v39 }
 0x437   :  { %2395 = vmatprep.subr.bf16.mxu0 %v3146_v14  ;;  %2427 = vmatprep.subr.bf16.mxu1 %v3366_v44 }
 0x43a   :  { %2397 = vmatpush1.bf16.msra.mxu0 %v3154_v26  ;;  %2429 = vmatpush1.bf16.msra.mxu1 %v3374_v51 }
 0x43b   :  { %2399 = vmatprep.subr.bf16.mxu0 %v3164_v45  ;;  %2431 = vmatprep.subr.bf16.mxu1 %v3386_v56 }
 0x43e   :  { %2401 = vmatpush1.bf16.msra.mxu0 %v3172_v62  ;;  %2433 = vmatpush1.bf16.msra.mxu1 %v3394_v60 }
 0x43f   :  { %2403 = vmatprep.subr.bf16.mxu0 %v3185_v31  ;;  %2435 = vmatprep.subr.bf16.mxu1 %v3407_v6 }
 0x442   :  { %2405 = vmatpush1.bf16.msra.mxu0 %v3196_v47  ;;  %2437 = vmatpush1.bf16.msra.mxu1 %v3420_v9 }
 0x443   :  { %2407 = vmatprep.subr.bf16.mxu0 %v3198_v13  ;;  %2439 = vmatprep.subr.bf16.mxu1 %v3423_v17 }
 0x446   :  { %2409 = vmatpush1.bf16.msra.mxu0 %v3214_v23  ;;  %2441 = vmatpush1.bf16.msra.mxu1 %v3440_v18 }
 0x447   :  { %2411 = vmatprep.subr.bf16.mxu0 %v3217_v28  ;;  %2443 = vmatprep.subr.bf16.mxu1 %v3443_v32 }
 0x44a   :  { %2413 = vmatpush1.bf16.msra.mxu0 %v3226_v35  ;;  %2445 = vmatpush1.bf16.msra.mxu1 %v3454_v19 }
 0x44b   :  { %2447 = vmatprep.subr.bf16.mxu0 %v3260_v8  ;;  %2479 = vmatprep.subr.bf16.mxu1 %v3271_v33 }
 0x500   :  { %v1143_v34 = vpop.f32.mrb[8].mxu0  ;;  %v1214_v38 = vpop.f32.mrb[8].mxu1 }
 0x501   :  { %v1219_v43 = vadd.f32 %v2030_v63, %v1143_v34  ;;  %v1145_v30 = vpop.f32.mrb[9].mxu0  ;;  %v1216_v46 = vpop.f32.mrb[9].mxu1  ;;  %v1221_v50 = vadd.f32 %v2032_v22, %v1214_v38 }
 0x502   :  { %v1220_v55 = vadd.f32 %v2031_v29, %v1145_v30  ;;  %v1222_v4 = vadd.f32 %v2033_v27, %v1216_v46 }
 0x503   :  { %v2034_v58 = vmul.f32 -1.442695, %v1219_v43 }
 0x504   :  { %v2035_v24 = vmul.f32 -1.442695, %v1220_v55  ;;  %v2036_v49 = vmul.f32 -1.442695, %v1222_v4 }
 0x505   :  { %2639 = vpow2.f32 %v2034_v58 }
 0x506   :  { %2641 = vpow2.f32 %v2035_v24 }
 0x507   :  { %2643 = vpow2.f32 %v2036_v49 }
 0x508   :  { %2645 = vtanh.f32 %v1221_v50 }
 0x50f   :  { %v2640_v53 = vpop.eup %2639 }
 0x510   :  { %v2642_v54 = vpop.eup %2641  ;;  %v1226_v57 = vadd.f32 1.0, %v2640_v53 }
 0x511   :  { %v1232_v59 = vadd.f32 1.0, %v2642_v54  ;;  %v2644_v61 = vpop.eup %2643 }
 0x512   :  { %2647 = vrcp.f32 %v1226_v57  ;;  %v2646_v1 = vpop.eup %2645  ;;  %v1239_v12 = vadd.f32 1.0, %v2644_v61  ;;  %v1802_v57 = vld [vmem:[%s3699_s1 + $0x180] sm:$0xff]  ;;  %v1811_v61 = vld [vmem:[%s3699_s1 + $0x1c8] sm:$0xff] }
 0x513   :  { %2649 = vrcp.f32 %v1232_v59  ;;  %v1806_v59 = vld [vmem:[%s3699_s1 + $0x1a0] sm:$0xff] }
 0x514   :  { %2651 = vrcp.f32 %v1239_v12  ;;  %v1814_v12 = vld [vmem:[%s3699_s1 + $0x1e0] sm:$0xff] }
 0x51c   :  { %v2648_v2 = vpop.eup %2647 }
 0x51d   :  { %v2650_v5 = vpop.eup %2649  ;;  %v1243_v11 = vmul.f32 %v2648_v2, %v2646_v1  ;;  %v1815_v1 = vld [vmem:[%s3699_s1 + $0x1e8] sm:$0xff]  ;;  %v2536_v2 = vpack.c.bf16 %v1806_v59, %v1802_v57 }
 0x51e   :  { %v1242_v25 = vmul.f32 %v2650_v5, %v3474_v52  ;;  %v2652_v15 = vpop.eup %2651  ;;  %v2040_v52 = vld [vmem:[%s3700_s0 + $0xb0] sm:$0xff]  ;;  %v2538_v5 = vpack.c.bf16 %v1815_v1, %v1811_v61 }
 0x520   :  { %v3527_v48 = vadd.f32 %v1243_v11, %v1242_v25  ;;  %v1810_v11 = vld [vmem:[%s3699_s1 + $0x1c0] sm:$0xff] }
 0x521   :  { %v2540_v25 = vpack.c.bf16 %v1814_v12, %v1810_v11 }
 0x522   :  { %2653 = vtanh.f32 %v3527_v48 }
 0x52c   :  { %v2654_v41 = vpop.eup %2653 }
 0x52d   :  { %v1246_v16 = vmul.f32 %v2654_v41, %v2652_v15  ;;  %v2047_v15 = vld [vmem:[%s3700_s0 + $0xc8] sm:$0xff] }
 0x52f   :  { %2037 = vst [vmem:[%s3701_s2 + $0x20] sm:$0xff] %v1246_v16  ;;  %1389 = vmatmul.mubr.f32.vlgmr.msra.gmra.mrb[10].mxu0 %v1246_v16  ;;  %1460 = vmatmul.mubr.f32.vlgmr.msra.gmra.mrb[10].mxu1 %v1246_v16 }
 0x530   :  { %2449 = vmatpush1.bf16.msra.mxu0 %v3273_v37  ;;  %2481 = vmatpush1.bf16.msra.mxu1 %v3282_v0 }
 0x531   :  { %2451 = vmatprep.subr.bf16.mxu0 %v3296_v40  ;;  %2483 = vmatprep.subr.bf16.mxu1 %v3307_v20 }
 0x532   :  { %1635 = vmatprep.mubr.f32.mxu0 %v2703_v3  ;;  %1706 = vmatprep.mubr.f32.mxu1 %v2703_v3 }
 0x534   :  { %2453 = vmatpush1.bf16.msra.mxu0 %v3309_v21  ;;  %2485 = vmatpush1.bf16.msra.mxu1 %v3318_v36 }
 0x535   :  { %2455 = vmatprep.subr.bf16.mxu0 %v3332_v42  ;;  %2487 = vmatprep.subr.bf16.mxu1 %v3343_v7 }
 0x538   :  { %2457 = vmatpush1.bf16.msra.mxu0 %v3345_v10  ;;  %2489 = vmatpush1.bf16.msra.mxu1 %v3354_v39 }
 0x539   :  { %2459 = vmatprep.subr.bf16.mxu0 %v3146_v14  ;;  %2491 = vmatprep.subr.bf16.mxu1 %v3366_v44  ;;  %v2038_v14 = vld [vmem:[%s3700_s0 + $0xa0] sm:$0xff] }
 0x53c   :  { %2461 = vmatpush1.bf16.msra.mxu0 %v3154_v26  ;;  %2493 = vmatpush1.bf16.msra.mxu1 %v3374_v51  ;;  %v2039_v26 = vld [vmem:[%s3700_s0 + $0xa8] sm:$0xff] }
 0x53d   :  { %2463 = vmatprep.subr.bf16.mxu0 %v3164_v45  ;;  %2495 = vmatprep.subr.bf16.mxu1 %v3386_v56 }
 0x540   :  { %2465 = vmatpush1.bf16.msra.mxu0 %v3172_v62  ;;  %2497 = vmatpush1.bf16.msra.mxu1 %v3394_v60 }
 0x541   :  { %2467 = vmatprep.subr.bf16.mxu0 %v3185_v31  ;;  %2499 = vmatprep.subr.bf16.mxu1 %v3407_v6 }
 0x544   :  { %2469 = vmatpush1.bf16.msra.mxu0 %v3196_v47  ;;  %2501 = vmatpush1.bf16.msra.mxu1 %v3420_v9 }
 0x545   :  { %2471 = vmatprep.subr.bf16.mxu0 %v3198_v13  ;;  %2503 = vmatprep.subr.bf16.mxu1 %v3423_v17 }
 0x548   :  { %2473 = vmatpush1.bf16.msra.mxu0 %v3214_v23  ;;  %2505 = vmatpush1.bf16.msra.mxu1 %v3440_v18 }
 0x549   :  { %2475 = vmatprep.subr.bf16.mxu0 %v3217_v28  ;;  %2507 = vmatprep.subr.bf16.mxu1 %v3443_v32 }
 0x54c   :  { %2477 = vmatpush1.bf16.msra.mxu0 %v3226_v35  ;;  %2509 = vmatpush1.bf16.msra.mxu1 %v3454_v19 }
 0x54d   :  { %2511 = vmatprep.subr.bf16.mxu0 %v3260_v8  ;;  %2543 = vmatprep.subr.bf16.mxu1 %v3271_v33  ;;  %v2041_v8 = vld [vmem:[%s3700_s0 + $0xb8] sm:$0xff] }
 0x602   :  { %v1390_v45 = vpop.f32.mrb[10].mxu0  ;;  %v1461_v62 = vpop.f32.mrb[10].mxu1 }
 0x603   :  { %v1466_v31 = vadd.f32 %v2038_v14, %v1390_v45  ;;  %v1392_v47 = vpop.f32.mrb[11].mxu0  ;;  %v1463_v13 = vpop.f32.mrb[11].mxu1  ;;  %v1468_v29 = vadd.f32 %v2040_v52, %v1461_v62 }
 0x604   :  { %v1467_v23 = vadd.f32 %v2039_v26, %v1392_v47  ;;  %v1469_v33 = vadd.f32 %v2041_v8, %v1463_v13  ;;  %v2049_v13 = vld [vmem:[%s3700_s0 + $0xd8] sm:$0xff] }
 0x605   :  { %v2042_v28 = vmul.f32 -1.442695, %v1466_v31 }
 0x606   :  { %v2043_v35 = vmul.f32 -1.442695, %v1467_v23  ;;  %v2044_v63 = vmul.f32 -1.442695, %v1469_v33 }
 0x607   :  { %2655 = vpow2.f32 %v2042_v28  ;;  %v2048_v28 = vld [vmem:[%s3700_s0 + $0xd0] sm:$0xff] }
 0x608   :  { %2657 = vpow2.f32 %v2043_v35 }
 0x609   :  { %2659 = vpow2.f32 %v2044_v63 }
 0x60a   :  { %2661 = vtanh.f32 %v1468_v29 }
 0x611   :  { %v2656_v34 = vpop.eup %2655 }
 0x612   :  { %v2658_v38 = vpop.eup %2657  ;;  %v1473_v43 = vadd.f32 1.0, %v2656_v34 }
 0x613   :  { %v1479_v30 = vadd.f32 1.0, %v2658_v38  ;;  %v2660_v46 = vpop.eup %2659 }
 0x614   :  { %2663 = vrcp.f32 %v1473_v43  ;;  %v2662_v55 = vpop.eup %2661  ;;  %v1486_v4 = vadd.f32 1.0, %v2660_v46 }
 0x615   :  { %2665 = vrcp.f32 %v1479_v30 }
 0x616   :  { %2667 = vrcp.f32 %v1486_v4 }
 0x61e   :  { %v2664_v58 = vpop.eup %2663 }
 0x61f   :  { %v2666_v24 = vpop.eup %2665  ;;  %v1490_v27 = vmul.f32 %v2664_v58, %v2662_v55 }
 0x620   :  { %v1489_v22 = vmul.f32 %v2666_v24, %v3527_v48  ;;  %v2668_v50 = vpop.eup %2667  ;;  %v2046_v48 = vld [vmem:[%s3700_s0 + $0xc0] sm:$0xff] }
 0x622   :  { %v3580_v49 = vadd.f32 %v1490_v27, %v1489_v22 }
 0x624   :  { %2669 = vtanh.f32 %v3580_v49 }
 0x62e   :  { %v2670_v53 = vpop.eup %2669 }
 0x62f   :  { %v1493_v54 = vmul.f32 %v2670_v53, %v2668_v50  ;;  %v2054_v50 = vld [vmem:[%s3700_s0 + $0xe0] sm:$0xff] }
 0x631   :  { %2045 = vst [vmem:[%s3701_s2 + $0x28] sm:$0xff] %v1493_v54  ;;  %1636 = vmatmul.mubr.f32.vlgmr.msra.gmra.mrb[12].mxu0 %v1493_v54  ;;  %1707 = vmatmul.mubr.f32.vlgmr.msra.gmra.mrb[12].mxu1 %v1493_v54 }
 0x632   :  { %2513 = vmatpush1.bf16.msra.mxu0 %v3273_v37  ;;  %2545 = vmatpush1.bf16.msra.mxu1 %v3282_v0  ;;  %v1783_v37 = vld [vmem:[%s3699_s1 + $0xe8] sm:$0xff] }
 0x633   :  { %2515 = vmatprep.subr.bf16.mxu0 %v3296_v40  ;;  %2547 = vmatprep.subr.bf16.mxu1 %v3307_v20  ;;  %v1778_v40 = vld [vmem:[%s3699_s1 + $0xc0] sm:$0xff] }
 0x634   :  { %1882 = vmatprep.mubr.f32.mxu0 %v2703_v3  ;;  %1953 = vmatprep.mubr.f32.mxu1 %v2703_v3  ;;  %v1779_v3 = vld [vmem:[%s3699_s1 + $0xc8] sm:$0xff]  ;;  %v1782_v20 = vld [vmem:[%s3699_s1 + $0xe0] sm:$0xff] }
 0x635   :  { %v2522_v0 = vpack.c.bf16 %v1783_v37, %v1779_v3 }
 0x636   :  { %2517 = vmatpush1.bf16.msra.mxu0 %v3309_v21  ;;  %2549 = vmatpush1.bf16.msra.mxu1 %v3318_v36  ;;  %v2524_v21 = vpack.c.bf16 %v1782_v20, %v1778_v40  ;;  %v1787_v36 = vld [vmem:[%s3699_s1 + $0x108] sm:$0xff] }
 0x637   :  { %2519 = vmatprep.subr.bf16.mxu0 %v3332_v42  ;;  %2551 = vmatprep.subr.bf16.mxu1 %v3343_v7  ;;  %v1791_v42 = vld [vmem:[%s3699_s1 + $0x128] sm:$0xff] }
 0x638   :  { %v2526_v7 = vpack.c.bf16 %v1791_v42, %v1787_v36  ;;  %v2057_v36 = vld [vmem:[%s3700_s0 + $0xf8] sm:$0xff] }
 0x63a   :  { %2521 = vmatpush1.bf16.msra.mxu0 %v3345_v10  ;;  %2553 = vmatpush1.bf16.msra.mxu1 %v3354_v39  ;;  %v1786_v10 = vld [vmem:[%s3699_s1 + $0x100] sm:$0xff] }
 0x63b   :  { %2555 = vmatprep.subr.bf16.mxu1 %v3366_v44  ;;  %2523 = vmatprep.subr.bf16.mxu0 %v2522_v0  ;;  %v1790_v39 = vld [vmem:[%s3699_s1 + $0x120] sm:$0xff] }
 0x63c   :  { %v2528_v44 = vpack.c.bf16 %v1790_v39, %v1786_v10 }
 0x63e   :  { %2557 = vmatpush1.bf16.msra.mxu1 %v3374_v51  ;;  %2525 = vmatpush1.bf16.msra.mxu0 %v2524_v21  ;;  %v1795_v51 = vld [vmem:[%s3699_s1 + $0x148] sm:$0xff] }
 0x63f   :  { %2559 = vmatprep.subr.bf16.mxu1 %v3386_v56  ;;  %2527 = vmatprep.subr.bf16.mxu0 %v2526_v7  ;;  %v1799_v56 = vld [vmem:[%s3699_s1 + $0x168] sm:$0xff]  ;;  %v2056_v7 = vld [vmem:[%s3700_s0 + $0xf0] sm:$0xff] }
 0x642   :  { %2561 = vmatpush1.bf16.msra.mxu1 %v3394_v60  ;;  %v1794_v60 = vld [vmem:[%s3699_s1 + $0x140] sm:$0xff]  ;;  %2529 = vmatpush1.bf16.msra.mxu0 %v2528_v44 }
 0x643   :  { %2563 = vmatprep.subr.bf16.mxu1 %v3407_v6  ;;  %v2530_v6 = vpack.c.bf16 %v1799_v56, %v1795_v51 }
 0x645   :  { %2531 = vmatprep.subr.bf16.mxu0 %v2530_v6 }
 0x646   :  { %2565 = vmatpush1.bf16.msra.mxu1 %v3420_v9  ;;  %v1798_v9 = vld [vmem:[%s3699_s1 + $0x160] sm:$0xff] }
 0x647   :  { %2567 = vmatprep.subr.bf16.mxu1 %v3423_v17  ;;  %v1803_v17 = vld [vmem:[%s3699_s1 + $0x188] sm:$0xff] }
 0x64a   :  { %2569 = vmatpush1.bf16.msra.mxu1 %v3440_v18  ;;  %v1807_v18 = vld [vmem:[%s3699_s1 + $0x1a8] sm:$0xff] }
 0x64b   :  { %2571 = vmatprep.subr.bf16.mxu1 %v3443_v32  ;;  %v2532_v32 = vpack.c.bf16 %v1798_v9, %v1794_v60 }
 0x64d   :  { %2533 = vmatpush1.bf16.msra.mxu0 %v2532_v32 }
 0x64e   :  { %2573 = vmatpush1.bf16.msra.mxu1 %v3454_v19  ;;  %v2534_v19 = vpack.c.bf16 %v1807_v18, %v1803_v17 }
 0x650   :  { %2535 = vmatprep.subr.bf16.mxu0 %v2534_v19 }
 0x651   :  { %2537 = vmatpush1.bf16.msra.mxu0 %v2536_v2 }
 0x652   :  { %2539 = vmatprep.subr.bf16.mxu0 %v2538_v5 }
 0x655   :  { %2541 = vmatpush1.bf16.msra.mxu0 %v2540_v25 }
 0x704   :  { %v1637_v41 = vpop.f32.mrb[12].mxu0  ;;  %v1708_v16 = vpop.f32.mrb[12].mxu1 }
 0x705   :  { %v1713_v14 = vadd.f32 %v2046_v48, %v1637_v41  ;;  %v1639_v26 = vpop.f32.mrb[13].mxu0  ;;  %v1710_v45 = vpop.f32.mrb[13].mxu1  ;;  %v1715_v8 = vadd.f32 %v2048_v28, %v1708_v16 }
 0x706   :  { %v1714_v62 = vadd.f32 %v2047_v15, %v1639_v26  ;;  %v1716_v23 = vadd.f32 %v2049_v13, %v1710_v45 }
 0x707   :  { %v2050_v31 = vmul.f32 -1.442695, %v1713_v14 }
 0x708   :  { %v2051_v47 = vmul.f32 -1.442695, %v1714_v62  ;;  %v2052_v35 = vmul.f32 -1.442695, %v1716_v23 }
 0x709   :  { %2671 = vpow2.f32 %v2050_v31 }
 0x70a   :  { %2673 = vpow2.f32 %v2051_v47 }
 0x70b   :  { %2675 = vpow2.f32 %v2052_v35 }
 0x70c   :  { %2677 = vtanh.f32 %v1715_v8 }
 0x713   :  { %v2672_v33 = vpop.eup %2671 }
 0x714   :  { %v2674_v52 = vpop.eup %2673  ;;  %v1720_v63 = vadd.f32 1.0, %v2672_v33 }
 0x715   :  { %v1726_v29 = vadd.f32 1.0, %v2674_v52  ;;  %v2676_v34 = vpop.eup %2675 }
 0x716   :  { %2679 = vrcp.f32 %v1720_v63  ;;  %v2678_v38 = vpop.eup %2677  ;;  %v1733_v55 = vadd.f32 1.0, %v2676_v34 }
 0x717   :  { %2681 = vrcp.f32 %v1726_v29 }
 0x718   :  { %2683 = vrcp.f32 %v1733_v55 }
 0x720   :  { %v2680_v43 = vpop.eup %2679 }
 0x721   :  { %v2682_v30 = vpop.eup %2681  ;;  %v1737_v46 = vmul.f32 %v2680_v43, %v2678_v38 }
 0x722   :  { %v1736_v58 = vmul.f32 %v2682_v30, %v3580_v49  ;;  %v2684_v27 = vpop.eup %2683  ;;  %v2055_v49 = vld [vmem:[%s3700_s0 + $0xe8] sm:$0xff] }
 0x724   :  { %v1738_v24 = vadd.f32 %v1737_v46, %v1736_v58 }
 0x726   :  { %2685 = vtanh.f32 %v1738_v24 }
 0x730   :  { %v2686_v4 = vpop.eup %2685 }
 0x731   :  { %v1740_v22 = vmul.f32 %v2686_v4, %v2684_v27 }
 0x733   :  { %2053 = vst [vmem:[%s3701_s2 + $0x30] sm:$0xff] %v1740_v22  ;;  %1883 = vmatmul.mubr.f32.vlgmr.msra.gmra.mrb[14].mxu0 %v1740_v22  ;;  %1954 = vmatmul.mubr.f32.vlgmr.msra.gmra.mrb[14].mxu1 %v1740_v22 }
 0x806   :  { %v1884_v53 = vpop.f32.mrb[14].mxu0  ;;  %v1955_v54 = vpop.f32.mrb[14].mxu1 }
 0x807   :  { %v1960_v3 = vadd.f32 %v2054_v50, %v1884_v53  ;;  %v1886_v37 = vpop.f32.mrb[15].mxu0  ;;  %v1957_v0 = vpop.f32.mrb[15].mxu1  ;;  %v1962_v39 = vadd.f32 %v2056_v7, %v1955_v54 }
 0x808   :  { %v1961_v40 = vadd.f32 %v2055_v49, %v1886_v37  ;;  %v1963_v42 = vadd.f32 %v2057_v36, %v1957_v0 }
 0x809   :  { %v2058_v20 = vmul.f32 -1.442695, %v1960_v3 }
 0x80a   :  { %v2059_v21 = vmul.f32 -1.442695, %v1961_v40  ;;  %v2060_v10 = vmul.f32 -1.442695, %v1963_v42 }
 0x80b   :  { %2687 = vpow2.f32 %v2058_v20 }
 0x80c   :  { %2689 = vpow2.f32 %v2059_v21 }
 0x80d   :  { %2691 = vpow2.f32 %v2060_v10 }
 0x80e   :  { %2693 = vtanh.f32 %v1962_v39 }
 0x815   :  { %v2688_v44 = vpop.eup %2687 }
 0x816   :  { %v2690_v51 = vpop.eup %2689  ;;  %v1967_v56 = vadd.f32 1.0, %v2688_v44 }
 0x817   :  { %v1973_v60 = vadd.f32 1.0, %v2690_v51  ;;  %v2692_v6 = vpop.eup %2691 }
 0x818   :  { %2695 = vrcp.f32 %v1967_v56  ;;  %v2694_v9 = vpop.eup %2693  ;;  %v1980_v19 = vadd.f32 1.0, %v2692_v6 }
 0x819   :  { %2697 = vrcp.f32 %v1973_v60 }
 0x81a   :  { %2699 = vrcp.f32 %v1980_v19 }
 0x822   :  { %v2696_v17 = vpop.eup %2695 }
 0x823   :  { %v2698_v18 = vpop.eup %2697  ;;  %v1984_v32 = vmul.f32 %v2696_v17, %v2694_v9 }
 0x824   :  { %v1983_v57 = vmul.f32 %v2698_v18, %v1738_v24  ;;  %v2700_v61 = vpop.eup %2699 }
 0x826   :  { %v1985_v59 = vadd.f32 %v1984_v32, %v1983_v57 }
 0x828   :  { %2701 = vtanh.f32 %v1985_v59 }
 0x832   :  { %v2702_v1 = vpop.eup %2701 }
 0x833   :  { %v1987_v2 = vmul.f32 %v2702_v1, %v2700_v61 }
 0x835   :  { %2061 = vst [vmem:[%s3701_s2 + $0x38] sm:$0xff] %v1987_v2 }

// kernel: next_character_lstm_forward.4
= control target key start
LH: loop header
LB: loop body
LE: loop exit
PB: predicated region body
PF: predicated region fallthrough
CT: control target
= control target key end

     0   :  { %v3161_v3 = vmov 0.0   ;;  %s4336_s2 = inlined_call_operand.vmem [shape: f32[128,512], index: 2, kind: input, shape index: {}]   ;;  %s4337_s1 = inlined_call_operand.vmem [shape: f32[128,512], index: 1, kind: input, shape index: {}]   ;;  %s4338_s0 = inlined_call_operand.vmem [shape: f32[64,128], index: 0, kind: input, shape index: {}]   ;;  %s4339_s3 = inlined_call_operand.vmem [shape: f32[1,512], index: 3, kind: input, shape index: {}]   ;;  %s4340_s4 = inlined_call_operand.vmem [shape: f32[64,128], index: 4, kind: output, shape index: {}]  }
   0x1   :  { %v32_v0 = vld [vmem:[%s4336_s2 + $0x8] sm:$0xff]  ;;  %v34_v2 = vld [vmem:[%s4336_s2 + $0x18] sm:$0xff]  ;;  %181 = vmatprep.mubr.f32.mxu0 %v3161_v3  ;;  %294 = vmatprep.mubr.f32.mxu1 %v3161_v3  ;;  %v31_v6 = vld [vmem:[%s4336_s2] sm:$0xff] }
   0x2   :  { %v36_v1 = vld [vmem:[%s4336_s2 + $0x28] sm:$0xff]  ;;  %v38_v5 = vld [vmem:[%s4336_s2 + $0x38] sm:$0xff]  ;;  %v35_v7 = vld [vmem:[%s4336_s2 + $0x20] sm:$0xff] }
   0x3   :  { %v2392_v4 = vpack.c.bf16 %v36_v1, %v32_v0  ;;  %v2424_v8 = vpack.c.bf16 %v38_v5, %v34_v2  ;;  %v2394_v9 = vpack.c.bf16 %v35_v7, %v31_v6  ;;  %v33_v10 = vld [vmem:[%s4336_s2 + $0x10] sm:$0xff]  ;;  %v40_v12 = vld [vmem:[%s4336_s2 + $0x48] sm:$0xff]  ;;  %v42_v15 = vld [vmem:[%s4336_s2 + $0x58] sm:$0xff] }
   0x4   :  { %v37_v11 = vld [vmem:[%s4336_s2 + $0x30] sm:$0xff]  ;;  %v44_v14 = vld [vmem:[%s4336_s2 + $0x68] sm:$0xff]  ;;  %v46_v16 = vld [vmem:[%s4336_s2 + $0x78] sm:$0xff] }
   0x5   :  { %2393 = vmatprep.subr.bf16.mxu0 %v2392_v4  ;;  %v2426_v13 = vpack.c.bf16 %v37_v11, %v33_v10  ;;  %2425 = vmatprep.subr.bf16.mxu1 %v2424_v8  ;;  %v2396_v17 = vpack.c.bf16 %v44_v14, %v40_v12  ;;  %v2428_v18 = vpack.c.bf16 %v46_v16, %v42_v15  ;;  %v39_v19 = vld [vmem:[%s4336_s2 + $0x40] sm:$0xff]  ;;  %v41_v21 = vld [vmem:[%s4336_s2 + $0x50] sm:$0xff]  ;;  %v48_v24 = vld [vmem:[%s4336_s2 + $0x88] sm:$0xff] }
   0x6   :  { %2395 = vmatpush1.bf16.msra.mxu0 %v2394_v9  ;;  %v43_v20 = vld [vmem:[%s4336_s2 + $0x60] sm:$0xff]  ;;  %v45_v23 = vld [vmem:[%s4336_s2 + $0x70] sm:$0xff]  ;;  %v52_v25 = vld [vmem:[%s4336_s2 + $0xa8] sm:$0xff] }
   0x7   :  { %2427 = vmatpush1.bf16.msra.mxu1 %v2426_v13  ;;  %v2398_v22 = vpack.c.bf16 %v43_v20, %v39_v19  ;;  %2397 = vmatprep.subr.bf16.mxu0 %v2396_v17  ;;  %v2430_v26 = vpack.c.bf16 %v45_v23, %v41_v21  ;;  %v2400_v27 = vpack.c.bf16 %v52_v25, %v48_v24  ;;  %v50_v28 = vld [vmem:[%s4336_s2 + $0x98] sm:$0xff]  ;;  %v47_v30 = vld [vmem:[%s4336_s2 + $0x80] sm:$0xff]  ;;  %v49_v33 = vld [vmem:[%s4336_s2 + $0x90] sm:$0xff] }
   0x8   :  { %2429 = vmatprep.subr.bf16.mxu1 %v2428_v18  ;;  %v54_v29 = vld [vmem:[%s4336_s2 + $0xb8] sm:$0xff]  ;;  %v51_v32 = vld [vmem:[%s4336_s2 + $0xa0] sm:$0xff]  ;;  %v53_v34 = vld [vmem:[%s4336_s2 + $0xb0] sm:$0xff] }
   0x9   :  { %v2432_v31 = vpack.c.bf16 %v54_v29, %v50_v28  ;;  %v2402_v35 = vpack.c.bf16 %v51_v32, %v47_v30  ;;  %v56_v36 = vld [vmem:[%s4336_s2 + $0xc8] sm:$0xff]  ;;  %v58_v38 = vld [vmem:[%s4336_s2 + $0xd8] sm:$0xff]  ;;  %v2434_v39 = vpack.c.bf16 %v53_v34, %v49_v33  ;;  %v55_v42 = vld [vmem:[%s4336_s2 + $0xc0] sm:$0xff] }
   0xa   :  { %2399 = vmatpush1.bf16.msra.mxu0 %v2398_v22  ;;  %v60_v37 = vld [vmem:[%s4336_s2 + $0xe8] sm:$0xff]  ;;  %v62_v41 = vld [vmem:[%s4336_s2 + $0xf8] sm:$0xff]  ;;  %v59_v43 = vld [vmem:[%s4336_s2 + $0xe0] sm:$0xff] }
   0xb   :  { %2431 = vmatpush1.bf16.msra.mxu1 %v2430_v26  ;;  %2401 = vmatprep.subr.bf16.mxu0 %v2400_v27  ;;  %v2404_v40 = vpack.c.bf16 %v60_v37, %v56_v36  ;;  %v2436_v44 = vpack.c.bf16 %v62_v41, %v58_v38  ;;  %v57_v45 = vld [vmem:[%s4336_s2 + $0xd0] sm:$0xff]  ;;  %v64_v47 = vld [vmem:[%s4336_s2 + $0x108] sm:$0xff]  ;;  %v66_v49 = vld [vmem:[%s4336_s2 + $0x118] sm:$0xff]  ;;  %v2406_v51 = vpack.c.bf16 %v59_v43, %v55_v42 }
   0xc   :  { %2433 = vmatprep.subr.bf16.mxu1 %v2432_v31  ;;  %v61_v46 = vld [vmem:[%s4336_s2 + $0xf0] sm:$0xff]  ;;  %v68_v48 = vld [vmem:[%s4336_s2 + $0x128] sm:$0xff]  ;;  %v70_v50 = vld [vmem:[%s4336_s2 + $0x138] sm:$0xff] }
   0xd   :  { %v2438_v52 = vpack.c.bf16 %v61_v46, %v57_v45  ;;  %v2408_v53 = vpack.c.bf16 %v68_v48, %v64_v47  ;;  %v63_v54 = vld [vmem:[%s4336_s2 + $0x100] sm:$0xff]  ;;  %v65_v56 = vld [vmem:[%s4336_s2 + $0x110] sm:$0xff]  ;;  %v2440_v57 = vpack.c.bf16 %v70_v50, %v66_v49  ;;  %v72_v59 = vld [vmem:[%s4336_s2 + $0x148] sm:$0xff] }
   0xe   :  { %2403 = vmatpush1.bf16.msra.mxu0 %v2402_v35  ;;  %v67_v55 = vld [vmem:[%s4336_s2 + $0x120] sm:$0xff]  ;;  %v69_v58 = vld [vmem:[%s4336_s2 + $0x130] sm:$0xff]  ;;  %v76_v60 = vld [vmem:[%s4336_s2 + $0x168] sm:$0xff] }
   0xf   :  { %2435 = vmatpush1.bf16.msra.mxu1 %v2434_v39  ;;  %2405 = vmatprep.subr.bf16.mxu0 %v2404_v40  ;;  %v74_v61 = vld [vmem:[%s4336_s2 + $0x158] sm:$0xff]  ;;  %v2410_v63 = vpack.c.bf16 %v67_v55, %v63_v54  ;;  %v2442_v0 = vpack.c.bf16 %v69_v58, %v65_v56  ;;  %v2412_v1 = vpack.c.bf16 %v76_v60, %v72_v59  ;;  %v71_v2 = vld [vmem:[%s4336_s2 + $0x140] sm:$0xff]  ;;  %v73_v5 = vld [vmem:[%s4336_s2 + $0x150] sm:$0xff] }
  0x10   :  { %2437 = vmatprep.subr.bf16.mxu1 %v2436_v44  ;;  %v78_v62 = vld [vmem:[%s4336_s2 + $0x178] sm:$0xff]  ;;  %v75_v4 = vld [vmem:[%s4336_s2 + $0x160] sm:$0xff]  ;;  %v77_v7 = vld [vmem:[%s4336_s2 + $0x170] sm:$0xff] }
  0x11   :  { %v2444_v6 = vpack.c.bf16 %v78_v62, %v74_v61  ;;  %v80_v8 = vld [vmem:[%s4336_s2 + $0x188] sm:$0xff]  ;;  %v82_v10 = vld [vmem:[%s4336_s2 + $0x198] sm:$0xff]  ;;  %v2414_v12 = vpack.c.bf16 %v75_v4, %v71_v2  ;;  %v2446_v13 = vpack.c.bf16 %v77_v7, %v73_v5  ;;  %v79_v15 = vld [vmem:[%s4336_s2 + $0x180] sm:$0xff] }
  0x12   :  { %2407 = vmatpush1.bf16.msra.mxu0 %v2406_v51  ;;  %v84_v9 = vld [vmem:[%s4336_s2 + $0x1a8] sm:$0xff]  ;;  %v86_v11 = vld [vmem:[%s4336_s2 + $0x1b8] sm:$0xff]  ;;  %v83_v16 = vld [vmem:[%s4336_s2 + $0x1a0] sm:$0xff] }
  0x13   :  { %2439 = vmatpush1.bf16.msra.mxu1 %v2438_v52  ;;  %2409 = vmatprep.subr.bf16.mxu0 %v2408_v53  ;;  %v2416_v14 = vpack.c.bf16 %v84_v9, %v80_v8  ;;  %v81_v17 = vld [vmem:[%s4336_s2 + $0x190] sm:$0xff]  ;;  %v2448_v18 = vpack.c.bf16 %v86_v11, %v82_v10  ;;  %v88_v20 = vld [vmem:[%s4336_s2 + $0x1c8] sm:$0xff]  ;;  %v90_v22 = vld [vmem:[%s4336_s2 + $0x1d8] sm:$0xff]  ;;  %v2418_v24 = vpack.c.bf16 %v83_v16, %v79_v15 }
  0x14   :  { %2441 = vmatprep.subr.bf16.mxu1 %v2440_v57  ;;  %v85_v19 = vld [vmem:[%s4336_s2 + $0x1b0] sm:$0xff]  ;;  %v92_v21 = vld [vmem:[%s4336_s2 + $0x1e8] sm:$0xff]  ;;  %v94_v23 = vld [vmem:[%s4336_s2 + $0x1f8] sm:$0xff] }
  0x15   :  { %v2450_v25 = vpack.c.bf16 %v85_v19, %v81_v17  ;;  %v2420_v26 = vpack.c.bf16 %v92_v21, %v88_v20  ;;  %v87_v27 = vld [vmem:[%s4336_s2 + $0x1c0] sm:$0xff]  ;;  %v89_v29 = vld [vmem:[%s4336_s2 + $0x1d0] sm:$0xff]  ;;  %v2452_v30 = vpack.c.bf16 %v94_v23, %v90_v22  ;;  %v385_v32 = vld [vmem:[%s4337_s1 + $0x8] sm:$0xff] }
  0x16   :  { %2411 = vmatpush1.bf16.msra.mxu0 %v2410_v63  ;;  %v91_v28 = vld [vmem:[%s4336_s2 + $0x1e0] sm:$0xff]  ;;  %v93_v31 = vld [vmem:[%s4336_s2 + $0x1f0] sm:$0xff]  ;;  %v389_v33 = vld [vmem:[%s4337_s1 + $0x28] sm:$0xff] }
  0x17   :  { %2443 = vmatpush1.bf16.msra.mxu1 %v2442_v0  ;;  %2413 = vmatprep.subr.bf16.mxu0 %v2412_v1  ;;  %v387_v34 = vld [vmem:[%s4337_s1 + $0x18] sm:$0xff]  ;;  %v2422_v36 = vpack.c.bf16 %v91_v28, %v87_v27  ;;  %v2454_v37 = vpack.c.bf16 %v93_v31, %v89_v29  ;;  %v3393_v38 = vpack.c.bf16 %v389_v33, %v385_v32  ;;  %v384_v39 = vld [vmem:[%s4337_s1] sm:$0xff]  ;;  %v386_v42 = vld [vmem:[%s4337_s1 + $0x10] sm:$0xff] }
  0x18   :  { %2445 = vmatprep.subr.bf16.mxu1 %v2444_v6  ;;  %v391_v35 = vld [vmem:[%s4337_s1 + $0x38] sm:$0xff]  ;;  %v388_v40 = vld [vmem:[%s4337_s1 + $0x20] sm:$0xff]  ;;  %v390_v43 = vld [vmem:[%s4337_s1 + $0x30] sm:$0xff] }
  0x19   :  { %v3401_v41 = vpack.c.bf16 %v391_v35, %v387_v34  ;;  %v393_v44 = vld [vmem:[%s4337_s1 + $0x48] sm:$0xff]  ;;  %v23_v46 = vld [vmem:[%s4338_s0] sm:$0xff]  ;;  %v3418_v47 = vpack.c.bf16 %v388_v40, %v384_v39  ;;  %v395_v48 = vld [vmem:[%s4337_s1 + $0x58] sm:$0xff]  ;;  %v3427_v50 = vpack.c.bf16 %v390_v43, %v386_v42 }
  0x1a   :  { %2415 = vmatpush1.bf16.msra.mxu0 %v2414_v12  ;;  %v397_v45 = vld [vmem:[%s4337_s1 + $0x68] sm:$0xff]  ;;  %v399_v49 = vld [vmem:[%s4337_s1 + $0x78] sm:$0xff]  ;;  %v392_v51 = vld [vmem:[%s4337_s1 + $0x40] sm:$0xff] }
  0x1b   :  { %2447 = vmatpush1.bf16.msra.mxu1 %v2446_v13  ;;  %2417 = vmatprep.subr.bf16.mxu0 %v2416_v14  ;;  %v396_v52 = vld [vmem:[%s4337_s1 + $0x60] sm:$0xff]  ;;  %v3436_v53 = vpack.c.bf16 %v397_v45, %v393_v44  ;;  %v394_v54 = vld [vmem:[%s4337_s1 + $0x50] sm:$0xff]  ;;  %v3444_v56 = vpack.c.bf16 %v399_v49, %v395_v48  ;;  %v401_v57 = vld [vmem:[%s4337_s1 + $0x88] sm:$0xff] }
  0x1c   :  { %2449 = vmatprep.subr.bf16.mxu1 %v2448_v18  ;;  %v398_v55 = vld [vmem:[%s4337_s1 + $0x70] sm:$0xff]  ;;  %v405_v58 = vld [vmem:[%s4337_s1 + $0xa8] sm:$0xff]  ;;  %v3456_v60 = vpack.c.bf16 %v396_v52, %v392_v51  ;;  %v403_v61 = vld [vmem:[%s4337_s1 + $0x98] sm:$0xff] }
  0x1d   :  { %v24_v59 = vld [vmem:[%s4338_s0 + $0x8] sm:$0xff]  ;;  %v407_v62 = vld [vmem:[%s4337_s1 + $0xb8] sm:$0xff]  ;;  %v3466_v63 = vpack.c.bf16 %v398_v55, %v394_v54  ;;  %v400_v0 = vld [vmem:[%s4337_s1 + $0x80] sm:$0xff]  ;;  %v3476_v2 = vpack.c.bf16 %v405_v58, %v401_v57 }
  0x1e   :  { %2419 = vmatpush1.bf16.msra.mxu0 %v2418_v24  ;;  %v404_v1 = vld [vmem:[%s4337_s1 + $0xa0] sm:$0xff]  ;;  %v402_v4 = vld [vmem:[%s4337_s1 + $0x90] sm:$0xff]  ;;  %v3485_v6 = vpack.c.bf16 %v407_v62, %v403_v61  ;;  %v409_v7 = vld [vmem:[%s4337_s1 + $0xc8] sm:$0xff] }
  0x1f   :  { %2451 = vmatpush1.bf16.msra.mxu1 %v2450_v25  ;;  %2421 = vmatprep.subr.bf16.mxu0 %v2420_v26  ;;  %v406_v5 = vld [vmem:[%s4337_s1 + $0xb0] sm:$0xff]  ;;  %v413_v8 = vld [vmem:[%s4337_s1 + $0xe8] sm:$0xff]  ;;  %v3497_v10 = vpack.c.bf16 %v404_v1, %v400_v0  ;;  %v411_v11 = vld [vmem:[%s4337_s1 + $0xd8] sm:$0xff] }
  0x20   :  { %2453 = vmatprep.subr.bf16.mxu1 %v2452_v30  ;;  %v25_v9 = vld [vmem:[%s4338_s0 + $0x10] sm:$0xff]  ;;  %v415_v12 = vld [vmem:[%s4337_s1 + $0xf8] sm:$0xff]  ;;  %v3507_v13 = vpack.c.bf16 %v406_v5, %v402_v4  ;;  %v408_v14 = vld [vmem:[%s4337_s1 + $0xc0] sm:$0xff]  ;;  %v3517_v16 = vpack.c.bf16 %v413_v8, %v409_v7 }
  0x21   :  { %v412_v15 = vld [vmem:[%s4337_s1 + $0xe0] sm:$0xff]  ;;  %v410_v17 = vld [vmem:[%s4337_s1 + $0xd0] sm:$0xff]  ;;  %v3526_v19 = vpack.c.bf16 %v415_v12, %v411_v11  ;;  %v417_v20 = vld [vmem:[%s4337_s1 + $0x108] sm:$0xff] }
  0x22   :  { %2423 = vmatpush1.bf16.msra.mxu0 %v2422_v36  ;;  %v414_v18 = vld [vmem:[%s4337_s1 + $0xf0] sm:$0xff]  ;;  %v421_v21 = vld [vmem:[%s4337_s1 + $0x128] sm:$0xff]  ;;  %v26_v22 = vld [vmem:[%s4338_s0 + $0x18] sm:$0xff]  ;;  %v3538_v23 = vpack.c.bf16 %v412_v15, %v408_v14 }
  0x23   :  { %2455 = vmatpush1.bf16.msra.mxu1 %v2454_v37  ;;  %2457 = vmatprep.subr.bf16.mxu0 %v3393_v38  ;;  %v419_v24 = vld [vmem:[%s4337_s1 + $0x118] sm:$0xff]  ;;  %v3548_v26 = vpack.c.bf16 %v414_v18, %v410_v17  ;;  %v416_v27 = vld [vmem:[%s4337_s1 + $0x100] sm:$0xff]  ;;  %v3558_v29 = vpack.c.bf16 %v421_v21, %v417_v20  ;;  %v418_v30 = vld [vmem:[%s4337_s1 + $0x110] sm:$0xff] }
  0x24   :  { %2489 = vmatprep.subr.bf16.mxu1 %v3401_v41  ;;  %v423_v25 = vld [vmem:[%s4337_s1 + $0x138] sm:$0xff]  ;;  %v420_v28 = vld [vmem:[%s4337_s1 + $0x120] sm:$0xff]  ;;  %v422_v31 = vld [vmem:[%s4337_s1 + $0x130] sm:$0xff] }
  0x25   :  { %182 = vmatmul.mubr.f32.vlgmr.msra.gmra.mrb[0].mxu0 %v23_v46  ;;  %v3567_v32 = vpack.c.bf16 %v423_v25, %v419_v24  ;;  %v425_v33 = vld [vmem:[%s4337_s1 + $0x148] sm:$0xff]  ;;  %v27_v35 = vld [vmem:[%s4338_s0 + $0x20] sm:$0xff]  ;;  %v3579_v36 = vpack.c.bf16 %v420_v28, %v416_v27  ;;  %v427_v37 = vld [vmem:[%s4337_s1 + $0x158] sm:$0xff]  ;;  %v3589_v40 = vpack.c.bf16 %v422_v31, %v418_v30  ;;  %v97_v28 = vlaneseq }
  0x26   :  { %295 = vmatmul.mubr.f32.vlgmr.msra.gmra.mrb[0].mxu1 %v23_v46  ;;  %2459 = vmatpush1.bf16.msra.mxu0 %v3418_v47  ;;  %v429_v34 = vld [vmem:[%s4337_s1 + $0x168] sm:$0xff]  ;;  %v431_v39 = vld [vmem:[%s4337_s1 + $0x178] sm:$0xff]  ;;  %v424_v42 = vld [vmem:[%s4337_s1 + $0x140] sm:$0xff] }
  0x27   :  { %2491 = vmatpush1.bf16.msra.mxu1 %v3427_v50  ;;  %187 = vmatprep.mubr.f32.mxu0 %v3161_v3  ;;  %v428_v43 = vld [vmem:[%s4337_s1 + $0x160] sm:$0xff]  ;;  %v3599_v44 = vpack.c.bf16 %v429_v34, %v425_v33  ;;  %v426_v45 = vld [vmem:[%s4337_s1 + $0x150] sm:$0xff]  ;;  %v3608_v48 = vpack.c.bf16 %v431_v39, %v427_v37  ;;  %v433_v49 = vld [vmem:[%s4337_s1 + $0x188] sm:$0xff]  ;;  %v98_v30 = vshrl.u32 %v97_v28, 7 }
  0x28   :  { %300 = vmatprep.mubr.f32.mxu1 %v3161_v3  ;;  %2461 = vmatprep.subr.bf16.mxu0 %v3436_v53  ;;  %v430_v46 = vld [vmem:[%s4337_s1 + $0x170] sm:$0xff]  ;;  %v437_v51 = vld [vmem:[%s4337_s1 + $0x1a8] sm:$0xff]  ;;  %v3620_v54 = vpack.c.bf16 %v428_v43, %v424_v42  ;;  %v435_v55 = vld [vmem:[%s4337_s1 + $0x198] sm:$0xff] }
  0x29   :  { %188 = vmatmul.mubr.f32.gmra.mrb[2].mxu0 %v24_v59  ;;  %2493 = vmatprep.subr.bf16.mxu1 %v3444_v56  ;;  %v28_v52 = vld [vmem:[%s4338_s0 + $0x28] sm:$0xff]  ;;  %v439_v57 = vld [vmem:[%s4337_s1 + $0x1b8] sm:$0xff]  ;;  %v3630_v58 = vpack.c.bf16 %v430_v46, %v426_v45  ;;  %v436_v61 = vld [vmem:[%s4337_s1 + $0x1a0] sm:$0xff]  ;;  %v3640_v62 = vpack.c.bf16 %v437_v51, %v433_v49  ;;  %v99_v31 = vsub.s32 0, %v98_v30  ;;  %v103_v34 = vsub.s32 1, %v98_v30 }
  0x2a   :  { %301 = vmatmul.mubr.f32.gmra.mrb[2].mxu1 %v24_v59  ;;  %2463 = vmatpush1.bf16.msra.mxu0 %v3456_v60  ;;  %v432_v59 = vld [vmem:[%s4337_s1 + $0x180] sm:$0xff]  ;;  %v434_v0 = vld [vmem:[%s4337_s1 + $0x190] sm:$0xff]  ;;  %v3649_v4 = vpack.c.bf16 %v439_v57, %v435_v55  ;;  %v441_v5 = vld [vmem:[%s4337_s1 + $0x1c8] sm:$0xff]  ;;  %v111_v42 = vsub.s32 3, %v98_v30  ;;  %v107_v55 = vsub.s32 2, %v98_v30 }
  0x2b   :  { %2495 = vmatpush1.bf16.msra.mxu1 %v3466_v63  ;;  %193 = vmatprep.mubr.f32.mxu0 %v3161_v3  ;;  %v438_v1 = vld [vmem:[%s4337_s1 + $0x1b0] sm:$0xff]  ;;  %v445_v7 = vld [vmem:[%s4337_s1 + $0x1e8] sm:$0xff]  ;;  %v443_v11 = vld [vmem:[%s4337_s1 + $0x1d8] sm:$0xff] }
  0x2c   :  { %306 = vmatprep.mubr.f32.mxu1 %v3161_v3  ;;  %2465 = vmatprep.subr.bf16.mxu0 %v3476_v2  ;;  %v29_v8 = vld [vmem:[%s4338_s0 + $0x30] sm:$0xff]  ;;  %v447_v12 = vld [vmem:[%s4337_s1 + $0x1f8] sm:$0xff]  ;;  %v3671_v14 = vpack.c.bf16 %v438_v1, %v434_v0  ;;  %v440_v15 = vld [vmem:[%s4337_s1 + $0x1c0] sm:$0xff]  ;;  %v3681_v18 = vpack.c.bf16 %v445_v7, %v441_v5 }
  0x2d   :  { %194 = vmatmul.mubr.f32.gmra.mrb[4].mxu0 %v25_v9  ;;  %2497 = vmatprep.subr.bf16.mxu1 %v3485_v6  ;;  %v444_v17 = vld [vmem:[%s4337_s1 + $0x1e0] sm:$0xff]  ;;  %v442_v20 = vld [vmem:[%s4337_s1 + $0x1d0] sm:$0xff]  ;;  %v30_v24 = vld [vmem:[%s4338_s0 + $0x38] sm:$0xff] }
  0x2e   :  { %307 = vmatmul.mubr.f32.gmra.mrb[4].mxu1 %v25_v9  ;;  %2467 = vmatpush1.bf16.msra.mxu0 %v3497_v10  ;;  %v3661_v9 = vpack.c.bf16 %v436_v61, %v432_v59  ;;  %v446_v21 = vld [vmem:[%s4337_s1 + $0x1f0] sm:$0xff]  ;;  %v3696_v25 = vpack.c.bf16 %v444_v17, %v440_v15  ;;  %v95_v33 = vld [vmem:[%s4339_s3] sm:$0xf] }
  0x2f   :  { %2499 = vmatpush1.bf16.msra.mxu1 %v3507_v13  ;;  %199 = vmatprep.mubr.f32.mxu0 %v3161_v3  ;;  %v3700_v27 = vpack.c.bf16 %v446_v21, %v442_v20  ;;  %v3752_v37 = vrot.slane %v95_v33, %v103_v34  ;;  %v3759_v59 = vrot.slane %v95_v33, %v107_v55 }
  0x30   :  { %312 = vmatprep.mubr.f32.mxu1 %v3161_v3  ;;  %2469 = vmatprep.subr.bf16.mxu0 %v3517_v16 }
  0x31   :  { %200 = vmatmul.mubr.f32.gmra.mrb[6].mxu0 %v26_v22  ;;  %2501 = vmatprep.subr.bf16.mxu1 %v3526_v19 }
  0x32   :  { %313 = vmatmul.mubr.f32.gmra.mrb[6].mxu1 %v26_v22  ;;  %2471 = vmatpush1.bf16.msra.mxu0 %v3538_v23  ;;  %v3690_v22 = vpack.c.bf16 %v447_v12, %v443_v11 }
  0x33   :  { %2503 = vmatpush1.bf16.msra.mxu1 %v3548_v26  ;;  %205 = vmatprep.mubr.f32.mxu0 %v3161_v3 }
  0x34   :  { %318 = vmatprep.mubr.f32.mxu1 %v3161_v3  ;;  %2473 = vmatprep.subr.bf16.mxu0 %v3558_v29 }
  0x35   :  { %206 = vmatmul.mubr.f32.gmra.mrb[8].mxu0 %v27_v35  ;;  %2505 = vmatprep.subr.bf16.mxu1 %v3567_v32 }
  0x36   :  { %319 = vmatmul.mubr.f32.gmra.mrb[8].mxu1 %v27_v35  ;;  %2475 = vmatpush1.bf16.msra.mxu0 %v3579_v36  ;;  %v3750_v35 = vrot.slane %v95_v33, %v99_v31 }
  0x37   :  { %2507 = vmatpush1.bf16.msra.mxu1 %v3589_v40  ;;  %211 = vmatprep.mubr.f32.mxu0 %v3161_v3 }
  0x38   :  { %324 = vmatprep.mubr.f32.mxu1 %v3161_v3  ;;  %2477 = vmatprep.subr.bf16.mxu0 %v3599_v44 }
  0x39   :  { %212 = vmatmul.mubr.f32.gmra.mrb[10].mxu0 %v28_v52  ;;  %2509 = vmatprep.subr.bf16.mxu1 %v3608_v48 }
  0x3a   :  { %325 = vmatmul.mubr.f32.gmra.mrb[10].mxu1 %v28_v52  ;;  %2479 = vmatpush1.bf16.msra.mxu0 %v3620_v54  ;;  %v3756_v52 = vrot.slane %v95_v33, %v111_v42 }
  0x3b   :  { %2511 = vmatpush1.bf16.msra.mxu1 %v3630_v58  ;;  %217 = vmatprep.mubr.f32.mxu0 %v3161_v3 }
  0x3c   :  { %330 = vmatprep.mubr.f32.mxu1 %v3161_v3  ;;  %2481 = vmatprep.subr.bf16.mxu0 %v3640_v62 }
  0x3d   :  { %218 = vmatmul.mubr.f32.gmra.mrb[12].mxu0 %v29_v8  ;;  %2513 = vmatprep.subr.bf16.mxu1 %v3649_v4 }
  0x3e   :  { %331 = vmatmul.mubr.f32.gmra.mrb[12].mxu1 %v29_v8  ;;  %2483 = vmatpush1.bf16.msra.mxu0 %v3661_v9 }
  0x3f   :  { %2515 = vmatpush1.bf16.msra.mxu1 %v3671_v14  ;;  %223 = vmatprep.mubr.f32.mxu0 %v3161_v3 }
  0x40   :  { %336 = vmatprep.mubr.f32.mxu1 %v3161_v3  ;;  %2485 = vmatprep.subr.bf16.mxu0 %v3681_v18 }
  0x41   :  { %224 = vmatmul.mubr.f32.gmra.mrb[14].mxu0 %v30_v24  ;;  %2517 = vmatprep.subr.bf16.mxu1 %v3690_v22 }
  0x42   :  { %337 = vmatmul.mubr.f32.gmra.mrb[14].mxu1 %v30_v24  ;;  %2487 = vmatpush1.bf16.msra.mxu0 %v3696_v25 }
  0x43   :  { %2519 = vmatpush1.bf16.msra.mxu1 %v3700_v27  ;;  %512 = vmatprep.mubr.f32.mxu0 %v3161_v3 }
  0x44   :  { %583 = vmatprep.mubr.f32.mxu1 %v3161_v3  ;;  %2521 = vmatprep.subr.bf16.mxu0 %v3393_v38 }
  0x45   :  { %513 = vmatmul.mubr.f32.vlgmr.msra.gmra.mrb[0].mxu0 %v3161_v3  ;;  %2553 = vmatprep.subr.bf16.mxu1 %v3401_v41 }
  0x46   :  { %584 = vmatmul.mubr.f32.vlgmr.msra.gmra.mrb[0].mxu1 %v3161_v3  ;;  %2523 = vmatpush1.bf16.msra.mxu0 %v3418_v47 }
  0x47   :  { %2555 = vmatpush1.bf16.msra.mxu1 %v3427_v50  ;;  %2525 = vmatprep.subr.bf16.mxu0 %v3436_v53 }
  0x48   :  { %2557 = vmatprep.subr.bf16.mxu1 %v3444_v56  ;;  %758 = vmatprep.mubr.f32.mxu0 %v3161_v3 }
  0x49   :  { %829 = vmatprep.mubr.f32.mxu1 %v3161_v3 }
  0x4a   :  { %2527 = vmatpush1.bf16.msra.mxu0 %v3456_v60 }
  0x4b   :  { %2559 = vmatpush1.bf16.msra.mxu1 %v3466_v63  ;;  %2529 = vmatprep.subr.bf16.mxu0 %v3476_v2 }
  0x4c   :  { %2561 = vmatprep.subr.bf16.mxu1 %v3485_v6 }
  0x4e   :  { %2531 = vmatpush1.bf16.msra.mxu0 %v3497_v10 }
  0x4f   :  { %2563 = vmatpush1.bf16.msra.mxu1 %v3507_v13  ;;  %2533 = vmatprep.subr.bf16.mxu0 %v3517_v16 }
  0x50   :  { %2565 = vmatprep.subr.bf16.mxu1 %v3526_v19 }
  0x52   :  { %2535 = vmatpush1.bf16.msra.mxu0 %v3538_v23 }
  0x53   :  { %2567 = vmatpush1.bf16.msra.mxu1 %v3548_v26  ;;  %2537 = vmatprep.subr.bf16.mxu0 %v3558_v29 }
  0x54   :  { %2569 = vmatprep.subr.bf16.mxu1 %v3567_v32 }
  0x56   :  { %2539 = vmatpush1.bf16.msra.mxu0 %v3579_v36 }
  0x57   :  { %2571 = vmatpush1.bf16.msra.mxu1 %v3589_v40  ;;  %2541 = vmatprep.subr.bf16.mxu0 %v3599_v44 }
  0x58   :  { %2573 = vmatprep.subr.bf16.mxu1 %v3608_v48 }
  0x5a   :  { %2543 = vmatpush1.bf16.msra.mxu0 %v3620_v54 }
  0x5b   :  { %2575 = vmatpush1.bf16.msra.mxu1 %v3630_v58  ;;  %2545 = vmatprep.subr.bf16.mxu0 %v3640_v62 }
  0x5c   :  { %2577 = vmatprep.subr.bf16.mxu1 %v3649_v4 }
  0x5e   :  { %2547 = vmatpush1.bf16.msra.mxu0 %v3661_v9 }
  0x5f   :  { %2579 = vmatpush1.bf16.msra.mxu1 %v3671_v14  ;;  %2549 = vmatprep.subr.bf16.mxu0 %v3681_v18 }
  0x60   :  { %2581 = vmatprep.subr.bf16.mxu1 %v3690_v22 }
  0x62   :  { %2551 = vmatpush1.bf16.msra.mxu0 %v3696_v25 }
  0x63   :  { %2583 = vmatpush1.bf16.msra.mxu1 %v3700_v27  ;;  %2585 = vmatprep.subr.bf16.mxu0 %v3393_v38 }
  0x64   :  { %2617 = vmatprep.subr.bf16.mxu1 %v3401_v41 }
 0x118   :  { %v514_v39 = vpop.f32.mrb[0].mxu0 }
 0x119   :  { %v2968_v43 = vadd.f32 %v514_v39, %v3750_v35  ;;  %v585_v45 = vpop.f32.mrb[0].mxu1  ;;  %v516_v38 = vpop.f32.mrb[1].mxu0 }
 0x11a   :  { %v2969_v41 = vadd.f32 %v516_v38, %v3752_v37  ;;  %v587_v46 = vpop.f32.mrb[1].mxu1  ;;  %v2984_v0 = vadd.f32 %v585_v45, %v3759_v59 }
 0x11b   :  { %v2361_v49 = vmul.f32 -1.442695, %v2968_v43  ;;  %v2985_v57 = vadd.f32 %v587_v46, %v3756_v52 }
 0x11c   :  { %v2362_v51 = vmul.f32 -1.442695, %v2969_v41 }
 0x11d   :  { %3033 = vpow2.f32 %v2361_v49  ;;  %v2363_v61 = vmul.f32 -1.442695, %v2985_v57 }
 0x11e   :  { %3035 = vpow2.f32 %v2362_v51 }
 0x11f   :  { %3037 = vpow2.f32 %v2363_v61 }
 0x120   :  { %3039 = vtanh.f32 %v2984_v0 }
 0x127   :  { %v3034_v1 = vpop.eup %3033 }
 0x128   :  { %v3036_v5 = vpop.eup %3035  ;;  %v597_v7 = vadd.f32 1.0, %v3034_v1 }
 0x129   :  { %v603_v8 = vadd.f32 1.0, %v3036_v5  ;;  %v3038_v11 = vpop.eup %3037 }
 0x12a   :  { %3041 = vrcp.f32 %v597_v7  ;;  %v3040_v12 = vpop.eup %3039  ;;  %v610_v21 = vadd.f32 1.0, %v3038_v11 }
 0x12b   :  { %3043 = vrcp.f32 %v603_v8 }
 0x12c   :  { %3045 = vrcp.f32 %v610_v21 }
 0x134   :  { %v3042_v15 = vpop.eup %3041 }
 0x135   :  { %v3044_v17 = vpop.eup %3043  ;;  %v614_v20 = vmul.f32 %v3042_v15, %v3040_v12  ;;  %v1125_v15 = vld [vmem:[%s4337_s1 + $0x8] sm:$0xff] }
 0x136   :  { %v613_v24 = vmul.f32 0.0, %v3044_v17  ;;  %v3046_v30 = vpop.eup %3045  ;;  %v1129_v17 = vld [vmem:[%s4337_s1 + $0x28] sm:$0xff] }
 0x137   :  { %v3822_v21 = vpack.c.bf16 %v1129_v17, %v1125_v15  ;;  %v1389_v15 = vld [vmem:[%s4337_s1 + $0x90] sm:$0xff] }
 0x138   :  { %v3762_v28 = vadd.f32 %v614_v20, %v613_v24  ;;  %v1127_v20 = vld [vmem:[%s4337_s1 + $0x18] sm:$0xff]  ;;  %v1393_v17 = vld [vmem:[%s4337_s1 + $0xb0] sm:$0xff] }
 0x139   :  { %v1131_v24 = vld [vmem:[%s4337_s1 + $0x38] sm:$0xff] }
 0x13a   :  { %3047 = vtanh.f32 %v3762_v28 }
 0x144   :  { %v3048_v31 = vpop.eup %3047 }
 0x145   :  { %v617_v33 = vmul.f32 %v3048_v31, %v3046_v30  ;;  %v1128_v30 = vld [vmem:[%s4337_s1 + $0x20] sm:$0xff]  ;;  %v3833_v31 = vpack.c.bf16 %v1131_v24, %v1127_v20  ;;  %v3961_v20 = vpack.c.bf16 %v1393_v17, %v1389_v15  ;;  %v1396_v24 = vld [vmem:[%s4337_s1 + $0xc8] sm:$0xff]  ;;  %v1421_v15 = vld [vmem:[%s4337_s1 + $0x190] sm:$0xff] }
 0x147   :  { %620 = vst [vmem:[%s4340_s4] sm:$0xff] %v617_v33  ;;  %759 = vmatmul.mubr.f32.vlgmr.msra.gmra.mrb[2].mxu0 %v617_v33  ;;  %830 = vmatmul.mubr.f32.vlgmr.msra.gmra.mrb[2].mxu1 %v617_v33 }
 0x148   :  { %2587 = vmatpush1.bf16.msra.mxu0 %v3418_v47  ;;  %2619 = vmatpush1.bf16.msra.mxu1 %v3427_v50 }
 0x149   :  { %2589 = vmatprep.subr.bf16.mxu0 %v3436_v53  ;;  %2621 = vmatprep.subr.bf16.mxu1 %v3444_v56 }
 0x14a   :  { %1005 = vmatprep.mubr.f32.mxu0 %v3161_v3  ;;  %1076 = vmatprep.mubr.f32.mxu1 %v3161_v3 }
 0x14c   :  { %2591 = vmatpush1.bf16.msra.mxu0 %v3456_v60  ;;  %2623 = vmatpush1.bf16.msra.mxu1 %v3466_v63 }
 0x14d   :  { %2593 = vmatprep.subr.bf16.mxu0 %v3476_v2  ;;  %2625 = vmatprep.subr.bf16.mxu1 %v3485_v6 }
 0x150   :  { %2595 = vmatpush1.bf16.msra.mxu0 %v3497_v10  ;;  %2627 = vmatpush1.bf16.msra.mxu1 %v3507_v13 }
 0x151   :  { %2597 = vmatprep.subr.bf16.mxu0 %v3517_v16  ;;  %2629 = vmatprep.subr.bf16.mxu1 %v3526_v19 }
 0x154   :  { %2599 = vmatpush1.bf16.msra.mxu0 %v3538_v23  ;;  %2631 = vmatpush1.bf16.msra.mxu1 %v3548_v26 }
 0x155   :  { %2601 = vmatprep.subr.bf16.mxu0 %v3558_v29  ;;  %2633 = vmatprep.subr.bf16.mxu1 %v3567_v32 }
 0x158   :  { %2603 = vmatpush1.bf16.msra.mxu0 %v3579_v36  ;;  %2635 = vmatpush1.bf16.msra.mxu1 %v3589_v40 }
 0x159   :  { %2605 = vmatprep.subr.bf16.mxu0 %v3599_v44  ;;  %2637 = vmatprep.subr.bf16.mxu1 %v3608_v48 }
 0x15c   :  { %2607 = vmatpush1.bf16.msra.mxu0 %v3620_v54  ;;  %2639 = vmatpush1.bf16.msra.mxu1 %v3630_v58 }
 0x15d   :  { %2609 = vmatprep.subr.bf16.mxu0 %v3640_v62  ;;  %2641 = vmatprep.subr.bf16.mxu1 %v3649_v4 }
 0x160   :  { %2611 = vmatpush1.bf16.msra.mxu0 %v3661_v9  ;;  %2643 = vmatpush1.bf16.msra.mxu1 %v3671_v14 }
 0x161   :  { %2613 = vmatprep.subr.bf16.mxu0 %v3681_v18  ;;  %2645 = vmatprep.subr.bf16.mxu1 %v3690_v22 }
 0x164   :  { %2615 = vmatpush1.bf16.msra.mxu0 %v3696_v25  ;;  %2647 = vmatpush1.bf16.msra.mxu1 %v3700_v27 }
 0x165   :  { %2649 = vmatprep.subr.bf16.mxu0 %v3822_v21  ;;  %2681 = vmatprep.subr.bf16.mxu1 %v3833_v31 }
 0x21a   :  { %v760_v47 = vpop.f32.mrb[2].mxu0  ;;  %v831_v50 = vpop.f32.mrb[2].mxu1 }
 0x21b   :  { %v2970_v53 = vadd.f32 %v760_v47, %v3750_v35  ;;  %v762_v56 = vpop.f32.mrb[3].mxu0  ;;  %v833_v60 = vpop.f32.mrb[3].mxu1  ;;  %v2986_v45 = vadd.f32 %v831_v50, %v3759_v59  ;;  %v1126_v47 = vld [vmem:[%s4337_s1 + $0x10] sm:$0xff] }
 0x21c   :  { %v2971_v63 = vadd.f32 %v762_v56, %v3752_v37  ;;  %v2987_v42 = vadd.f32 %v833_v60, %v3756_v52  ;;  %v1130_v50 = vld [vmem:[%s4337_s1 + $0x30] sm:$0xff]  ;;  %v1133_v56 = vld [vmem:[%s4337_s1 + $0x48] sm:$0xff] }
 0x21d   :  { %v2364_v34 = vmul.f32 -1.442695, %v2970_v53  ;;  %v3844_v53 = vpack.c.bf16 %v1130_v50, %v1126_v47  ;;  %v1137_v60 = vld [vmem:[%s4337_s1 + $0x68] sm:$0xff]  ;;  %v1402_v50 = vld [vmem:[%s4337_s1 + $0xf8] sm:$0xff] }
 0x21e   :  { %v2365_v39 = vmul.f32 -1.442695, %v2971_v63  ;;  %v2366_v43 = vmul.f32 -1.442695, %v2987_v42  ;;  %v1135_v63 = vld [vmem:[%s4337_s1 + $0x58] sm:$0xff]  ;;  %v1132_v42 = vld [vmem:[%s4337_s1 + $0x40] sm:$0xff] }
 0x21f   :  { %3049 = vpow2.f32 %v2364_v34  ;;  %v3858_v34 = vpack.c.bf16 %v1137_v60, %v1133_v56  ;;  %v1395_v56 = vld [vmem:[%s4337_s1 + $0xc0] sm:$0xff] }
 0x220   :  { %3051 = vpow2.f32 %v2365_v39  ;;  %v1139_v39 = vld [vmem:[%s4337_s1 + $0x78] sm:$0xff]  ;;  %v1399_v60 = vld [vmem:[%s4337_s1 + $0xe0] sm:$0xff] }
 0x221   :  { %3053 = vpow2.f32 %v2366_v43  ;;  %v1136_v43 = vld [vmem:[%s4337_s1 + $0x60] sm:$0xff] }
 0x222   :  { %3055 = vtanh.f32 %v2986_v45  ;;  %v3869_v45 = vpack.c.bf16 %v1139_v39, %v1135_v63  ;;  %v3988_v39 = vpack.c.bf16 %v1399_v60, %v1395_v56  ;;  %v1430_v60 = vld [vmem:[%s4337_s1 + $0x1d8] sm:$0xff] }
 0x229   :  { %v3050_v38 = vpop.eup %3049 }
 0x22a   :  { %v3052_v41 = vpop.eup %3051  ;;  %v843_v46 = vadd.f32 1.0, %v3050_v38  ;;  %v3871_v38 = vpack.c.bf16 %v1136_v43, %v1132_v42  ;;  %v1397_v42 = vld [vmem:[%s4337_s1 + $0xd0] sm:$0xff] }
 0x22b   :  { %v849_v49 = vadd.f32 1.0, %v3052_v41  ;;  %v3054_v51 = vpop.eup %3053  ;;  %v1134_v41 = vld [vmem:[%s4337_s1 + $0x50] sm:$0xff] }
 0x22c   :  { %3057 = vrcp.f32 %v843_v46  ;;  %v3056_v55 = vpop.eup %3055  ;;  %v856_v1 = vadd.f32 1.0, %v3054_v51  ;;  %v1138_v46 = vld [vmem:[%s4337_s1 + $0x70] sm:$0xff] }
 0x22d   :  { %3059 = vrcp.f32 %v849_v49  ;;  %v3880_v49 = vpack.c.bf16 %v1138_v46, %v1134_v41  ;;  %v1401_v43 = vld [vmem:[%s4337_s1 + $0xf0] sm:$0xff]  ;;  %v1404_v46 = vld [vmem:[%s4337_s1 + $0x108] sm:$0xff] }
 0x22e   :  { %3061 = vrcp.f32 %v856_v1  ;;  %v3997_v41 = vpack.c.bf16 %v1401_v43, %v1397_v42  ;;  %v1434_v42 = vld [vmem:[%s4337_s1 + $0x1f8] sm:$0xff]  ;;  %v1427_v43 = vld [vmem:[%s4337_s1 + $0x1c0] sm:$0xff] }
 0x236   :  { %v3058_v57 = vpop.eup %3057 }
 0x237   :  { %v3060_v61 = vpop.eup %3059  ;;  %v860_v0 = vmul.f32 %v3058_v57, %v3056_v55  ;;  %v1388_v57 = vld [vmem:[%s4337_s1 + $0x88] sm:$0xff] }
 0x238   :  { %v859_v5 = vmul.f32 %v3060_v61, %v3762_v28  ;;  %v3062_v8 = vpop.eup %3061  ;;  %v1124_v28 = vld [vmem:[%s4337_s1] sm:$0xff]  ;;  %v1392_v61 = vld [vmem:[%s4337_s1 + $0xa8] sm:$0xff] }
 0x239   :  { %v3835_v33 = vpack.c.bf16 %v1128_v30, %v1124_v28  ;;  %v3939_v1 = vpack.c.bf16 %v1392_v61, %v1388_v57  ;;  %v1400_v28 = vld [vmem:[%s4337_s1 + $0xe8] sm:$0xff]  ;;  %v1398_v30 = vld [vmem:[%s4337_s1 + $0xd8] sm:$0xff] }
 0x23a   :  { %v3805_v7 = vadd.f32 %v860_v0, %v859_v5  ;;  %v1390_v0 = vld [vmem:[%s4337_s1 + $0x98] sm:$0xff]  ;;  %v3975_v47 = vpack.c.bf16 %v1400_v28, %v1396_v24  ;;  %v3986_v63 = vpack.c.bf16 %v1402_v50, %v1398_v30  ;;  %v1425_v24 = vld [vmem:[%s4337_s1 + $0x1b0] sm:$0xff]  ;;  %v1428_v28 = vld [vmem:[%s4337_s1 + $0x1c8] sm:$0xff] }
 0x23b   :  { %v1394_v5 = vld [vmem:[%s4337_s1 + $0xb8] sm:$0xff]  ;;  %v1432_v30 = vld [vmem:[%s4337_s1 + $0x1e8] sm:$0xff]  ;;  %v4111_v50 = vpack.c.bf16 %v1425_v24, %v1421_v15 }
 0x23c   :  { %3063 = vtanh.f32 %v3805_v7  ;;  %v1422_v57 = vld [vmem:[%s4337_s1 + $0x198] sm:$0xff]  ;;  %v4113_v56 = vpack.c.bf16 %v1432_v30, %v1428_v28 }
 0x23d   :  { %v1426_v61 = vld [vmem:[%s4337_s1 + $0x1b8] sm:$0xff] }
 0x246   :  { %v3064_v11 = vpop.eup %3063 }
 0x247   :  { %v863_v12 = vmul.f32 %v3064_v11, %v3062_v8  ;;  %v1391_v8 = vld [vmem:[%s4337_s1 + $0xa0] sm:$0xff]  ;;  %v3950_v11 = vpack.c.bf16 %v1394_v5, %v1390_v0  ;;  %v4086_v5 = vpack.c.bf16 %v1426_v61, %v1422_v57 }
 0x249   :  { %2367 = vst [vmem:[%s4340_s4 + $0x8] sm:$0xff] %v863_v12  ;;  %1006 = vmatmul.mubr.f32.vlgmr.msra.gmra.mrb[4].mxu0 %v863_v12  ;;  %1077 = vmatmul.mubr.f32.vlgmr.msra.gmra.mrb[4].mxu1 %v863_v12 }
 0x24a   :  { %1252 = vmatprep.mubr.f32.mxu0 %v3161_v3  ;;  %1323 = vmatprep.mubr.f32.mxu1 %v3161_v3 }
 0x24b   :  { %2651 = vmatpush1.bf16.msra.mxu0 %v3835_v33  ;;  %2683 = vmatpush1.bf16.msra.mxu1 %v3844_v53 }
 0x24c   :  { %2653 = vmatprep.subr.bf16.mxu0 %v3858_v34  ;;  %2685 = vmatprep.subr.bf16.mxu1 %v3869_v45 }
 0x24f   :  { %2655 = vmatpush1.bf16.msra.mxu0 %v3871_v38  ;;  %2687 = vmatpush1.bf16.msra.mxu1 %v3880_v49 }
 0x250   :  { %2657 = vmatprep.subr.bf16.mxu0 %v3476_v2  ;;  %2689 = vmatprep.subr.bf16.mxu1 %v3485_v6 }
 0x253   :  { %2659 = vmatpush1.bf16.msra.mxu0 %v3497_v10  ;;  %2691 = vmatpush1.bf16.msra.mxu1 %v3507_v13 }
 0x254   :  { %2661 = vmatprep.subr.bf16.mxu0 %v3517_v16  ;;  %2693 = vmatprep.subr.bf16.mxu1 %v3526_v19 }
 0x257   :  { %2663 = vmatpush1.bf16.msra.mxu0 %v3538_v23  ;;  %2695 = vmatpush1.bf16.msra.mxu1 %v3548_v26 }
 0x258   :  { %2665 = vmatprep.subr.bf16.mxu0 %v3558_v29  ;;  %2697 = vmatprep.subr.bf16.mxu1 %v3567_v32 }
 0x25b   :  { %2667 = vmatpush1.bf16.msra.mxu0 %v3579_v36  ;;  %2699 = vmatpush1.bf16.msra.mxu1 %v3589_v40 }
 0x25c   :  { %2669 = vmatprep.subr.bf16.mxu0 %v3599_v44  ;;  %2701 = vmatprep.subr.bf16.mxu1 %v3608_v48 }
 0x25f   :  { %2671 = vmatpush1.bf16.msra.mxu0 %v3620_v54  ;;  %2703 = vmatpush1.bf16.msra.mxu1 %v3630_v58 }
 0x260   :  { %2673 = vmatprep.subr.bf16.mxu0 %v3640_v62  ;;  %2705 = vmatprep.subr.bf16.mxu1 %v3649_v4 }
 0x263   :  { %2675 = vmatpush1.bf16.msra.mxu0 %v3661_v9  ;;  %2707 = vmatpush1.bf16.msra.mxu1 %v3671_v14 }
 0x264   :  { %2677 = vmatprep.subr.bf16.mxu0 %v3681_v18  ;;  %2709 = vmatprep.subr.bf16.mxu1 %v3690_v22 }
 0x267   :  { %2679 = vmatpush1.bf16.msra.mxu0 %v3696_v25  ;;  %2711 = vmatpush1.bf16.msra.mxu1 %v3700_v27 }
 0x268   :  { %2713 = vmatprep.subr.bf16.mxu0 %v3822_v21  ;;  %2745 = vmatprep.subr.bf16.mxu1 %v3833_v31 }
 0x31c   :  { %v1007_v2 = vpop.f32.mrb[4].mxu0  ;;  %v1078_v6 = vpop.f32.mrb[4].mxu1 }
 0x31d   :  { %v2972_v10 = vadd.f32 %v1007_v2, %v3750_v35  ;;  %v1009_v13 = vpop.f32.mrb[5].mxu0  ;;  %v1080_v16 = vpop.f32.mrb[5].mxu1  ;;  %v2988_v36 = vadd.f32 %v1078_v6, %v3759_v59  ;;  %v1408_v2 = vld [vmem:[%s4337_s1 + $0x128] sm:$0xff]  ;;  %v1406_v6 = vld [vmem:[%s4337_s1 + $0x118] sm:$0xff] }
 0x31e   :  { %v2973_v19 = vadd.f32 %v1009_v13, %v3752_v37  ;;  %v2989_v29 = vadd.f32 %v1080_v16, %v3756_v52  ;;  %v1410_v13 = vld [vmem:[%s4337_s1 + $0x138] sm:$0xff]  ;;  %v1403_v16 = vld [vmem:[%s4337_s1 + $0x100] sm:$0xff] }
 0x31f   :  { %v2368_v23 = vmul.f32 -1.442695, %v2972_v10  ;;  %v4011_v10 = vpack.c.bf16 %v1408_v2, %v1404_v46  ;;  %v4125_v46 = vpack.c.bf16 %v1434_v42, %v1430_v60  ;;  %v1431_v2 = vld [vmem:[%s4337_s1 + $0x1e0] sm:$0xff] }
 0x320   :  { %v2369_v26 = vmul.f32 -1.442695, %v2973_v19  ;;  %v2370_v32 = vmul.f32 -1.442695, %v2989_v29  ;;  %v1407_v19 = vld [vmem:[%s4337_s1 + $0x120] sm:$0xff]  ;;  %v1405_v29 = vld [vmem:[%s4337_s1 + $0x110] sm:$0xff] }
 0x321   :  { %3065 = vpow2.f32 %v2368_v23  ;;  %v4022_v23 = vpack.c.bf16 %v1410_v13, %v1406_v6  ;;  %v1429_v6 = vld [vmem:[%s4337_s1 + $0x1d0] sm:$0xff] }
 0x322   :  { %3067 = vpow2.f32 %v2369_v26  ;;  %v4024_v26 = vpack.c.bf16 %v1407_v19, %v1403_v16  ;;  %v1433_v13 = vld [vmem:[%s4337_s1 + $0x1f0] sm:$0xff]  ;;  %v4137_v16 = vpack.c.bf16 %v1431_v2, %v1427_v43 }
 0x323   :  { %3069 = vpow2.f32 %v2370_v32  ;;  %v1409_v32 = vld [vmem:[%s4337_s1 + $0x130] sm:$0xff]  ;;  %v4141_v19 = vpack.c.bf16 %v1433_v13, %v1429_v6 }
 0x324   :  { %3071 = vtanh.f32 %v2988_v36  ;;  %v4033_v36 = vpack.c.bf16 %v1409_v32, %v1405_v29 }
 0x32b   :  { %v3066_v40 = vpop.eup %3065 }
 0x32c   :  { %v3068_v44 = vpop.eup %3067  ;;  %v1090_v48 = vadd.f32 1.0, %v3066_v40  ;;  %v1412_v40 = vld [vmem:[%s4337_s1 + $0x148] sm:$0xff] }
 0x32d   :  { %v1096_v54 = vadd.f32 1.0, %v3068_v44  ;;  %v3070_v58 = vpop.eup %3069  ;;  %v1416_v44 = vld [vmem:[%s4337_s1 + $0x168] sm:$0xff] }
 0x32e   :  { %3073 = vrcp.f32 %v1090_v48  ;;  %v3072_v62 = vpop.eup %3071  ;;  %v1103_v18 = vadd.f32 1.0, %v3070_v58  ;;  %v1414_v48 = vld [vmem:[%s4337_s1 + $0x158] sm:$0xff] }
 0x32f   :  { %3075 = vrcp.f32 %v1096_v54  ;;  %v4046_v54 = vpack.c.bf16 %v1416_v44, %v1412_v40  ;;  %v1418_v58 = vld [vmem:[%s4337_s1 + $0x178] sm:$0xff] }
 0x330   :  { %3077 = vrcp.f32 %v1103_v18  ;;  %v1413_v18 = vld [vmem:[%s4337_s1 + $0x150] sm:$0xff] }
 0x338   :  { %v3074_v4 = vpop.eup %3073 }
 0x339   :  { %v3076_v9 = vpop.eup %3075  ;;  %v1107_v14 = vmul.f32 %v3074_v4, %v3072_v62  ;;  %v1411_v62 = vld [vmem:[%s4337_s1 + $0x140] sm:$0xff] }
 0x33a   :  { %v1106_v22 = vmul.f32 %v3076_v9, %v3805_v7  ;;  %v3078_v27 = vpop.eup %3077  ;;  %v1387_v7 = vld [vmem:[%s4337_s1 + $0x80] sm:$0xff]  ;;  %v4058_v9 = vpack.c.bf16 %v1418_v58, %v1414_v48 }
 0x33b   :  { %v3952_v12 = vpack.c.bf16 %v1391_v8, %v1387_v7  ;;  %v1415_v4 = vld [vmem:[%s4337_s1 + $0x160] sm:$0xff] }
 0x33c   :  { %v3916_v25 = vadd.f32 %v1107_v14, %v1106_v22  ;;  %v4060_v14 = vpack.c.bf16 %v1415_v4, %v1411_v62  ;;  %v1417_v22 = vld [vmem:[%s4337_s1 + $0x170] sm:$0xff]  ;;  %v1419_v7 = vld [vmem:[%s4337_s1 + $0x180] sm:$0xff] }
 0x33d   :  { %v1423_v8 = vld [vmem:[%s4337_s1 + $0x1a0] sm:$0xff] }
 0x33e   :  { %3079 = vtanh.f32 %v3916_v25  ;;  %v4098_v17 = vpack.c.bf16 %v1423_v8, %v1419_v7 }
 0x348   :  { %v3080_v51 = vpop.eup %3079 }
 0x349   :  { %v1110_v55 = vmul.f32 %v3080_v51, %v3078_v27  ;;  %v1420_v27 = vld [vmem:[%s4337_s1 + $0x188] sm:$0xff]  ;;  %v4072_v51 = vpack.c.bf16 %v1417_v22, %v1413_v18 }
 0x34b   :  { %2371 = vst [vmem:[%s4340_s4 + $0x10] sm:$0xff] %v1110_v55  ;;  %1253 = vmatmul.mubr.f32.vlgmr.msra.gmra.mrb[6].mxu0 %v1110_v55  ;;  %1324 = vmatmul.mubr.f32.vlgmr.msra.gmra.mrb[6].mxu1 %v1110_v55  ;;  %v1424_v55 = vld [vmem:[%s4337_s1 + $0x1a8] sm:$0xff] }
 0x34c   :  { %2715 = vmatpush1.bf16.msra.mxu0 %v3835_v33  ;;  %2747 = vmatpush1.bf16.msra.mxu1 %v3844_v53  ;;  %v4084_v0 = vpack.c.bf16 %v1424_v55, %v1420_v27 }
 0x34d   :  { %2717 = vmatprep.subr.bf16.mxu0 %v3858_v34  ;;  %2749 = vmatprep.subr.bf16.mxu1 %v3869_v45 }
 0x34e   :  { %1499 = vmatprep.mubr.f32.mxu0 %v3161_v3  ;;  %1570 = vmatprep.mubr.f32.mxu1 %v3161_v3 }
 0x350   :  { %2719 = vmatpush1.bf16.msra.mxu0 %v3871_v38  ;;  %2751 = vmatpush1.bf16.msra.mxu1 %v3880_v49 }
 0x351   :  { %2721 = vmatprep.subr.bf16.mxu0 %v3939_v1  ;;  %2753 = vmatprep.subr.bf16.mxu1 %v3950_v11 }
 0x354   :  { %2723 = vmatpush1.bf16.msra.mxu0 %v3952_v12  ;;  %2755 = vmatpush1.bf16.msra.mxu1 %v3961_v20 }
 0x355   :  { %2725 = vmatprep.subr.bf16.mxu0 %v3975_v47  ;;  %2757 = vmatprep.subr.bf16.mxu1 %v3986_v63 }
 0x358   :  { %2727 = vmatpush1.bf16.msra.mxu0 %v3988_v39  ;;  %2759 = vmatpush1.bf16.msra.mxu1 %v3997_v41 }
 0x359   :  { %2729 = vmatprep.subr.bf16.mxu0 %v4011_v10  ;;  %2761 = vmatprep.subr.bf16.mxu1 %v4022_v23 }
 0x35c   :  { %2731 = vmatpush1.bf16.msra.mxu0 %v4024_v26  ;;  %2763 = vmatpush1.bf16.msra.mxu1 %v4033_v36 }
 0x35d   :  { %2733 = vmatprep.subr.bf16.mxu0 %v4046_v54  ;;  %2765 = vmatprep.subr.bf16.mxu1 %v4058_v9 }
 0x360   :  { %2735 = vmatpush1.bf16.msra.mxu0 %v4060_v14  ;;  %2767 = vmatpush1.bf16.msra.mxu1 %v4072_v51 }
 0x361   :  { %2737 = vmatprep.subr.bf16.mxu0 %v4084_v0  ;;  %2769 = vmatprep.subr.bf16.mxu1 %v4086_v5 }
 0x364   :  { %2739 = vmatpush1.bf16.msra.mxu0 %v4098_v17  ;;  %2771 = vmatpush1.bf16.msra.mxu1 %v4111_v50 }
 0x365   :  { %2741 = vmatprep.subr.bf16.mxu0 %v4113_v56  ;;  %2773 = vmatprep.subr.bf16.mxu1 %v4125_v46 }
 0x368   :  { %2743 = vmatpush1.bf16.msra.mxu0 %v4137_v16  ;;  %2775 = vmatpush1.bf16.msra.mxu1 %v4141_v19 }
 0x369   :  { %2777 = vmatprep.subr.bf16.mxu0 %v3822_v21  ;;  %2809 = vmatprep.subr.bf16.mxu1 %v3833_v31 }
 0x41e   :  { %v1254_v29 = vpop.f32.mrb[6].mxu0  ;;  %v1325_v32 = vpop.f32.mrb[6].mxu1 }
 0x41f   :  { %v2974_v40 = vadd.f32 %v1254_v29, %v3750_v35  ;;  %v1256_v44 = vpop.f32.mrb[7].mxu0  ;;  %v1327_v48 = vpop.f32.mrb[7].mxu1  ;;  %v2990_v27 = vadd.f32 %v1325_v32, %v3759_v59 }
 0x420   :  { %v2975_v58 = vadd.f32 %v1256_v44, %v3752_v37  ;;  %v2991_v18 = vadd.f32 %v1327_v48, %v3756_v52 }
 0x421   :  { %v2372_v62 = vmul.f32 -1.442695, %v2974_v40 }
 0x422   :  { %v2373_v4 = vmul.f32 -1.442695, %v2975_v58  ;;  %v2374_v22 = vmul.f32 -1.442695, %v2991_v18 }
 0x423   :  { %3081 = vpow2.f32 %v2372_v62 }
 0x424   :  { %3083 = vpow2.f32 %v2373_v4 }
 0x425   :  { %3085 = vpow2.f32 %v2374_v22 }
 0x426   :  { %3087 = vtanh.f32 %v2990_v27 }
 0x42d   :  { %v3082_v55 = vpop.eup %3081 }
 0x42e   :  { %v3084_v57 = vpop.eup %3083  ;;  %v1337_v61 = vadd.f32 1.0, %v3082_v55 }
 0x42f   :  { %v1343_v7 = vadd.f32 1.0, %v3084_v57  ;;  %v3086_v8 = vpop.eup %3085 }
 0x430   :  { %3089 = vrcp.f32 %v1337_v61  ;;  %v3088_v15 = vpop.eup %3087  ;;  %v1350_v60 = vadd.f32 1.0, %v3086_v8 }
 0x431   :  { %3091 = vrcp.f32 %v1343_v7 }
 0x432   :  { %3093 = vrcp.f32 %v1350_v60 }
 0x43a   :  { %v3090_v24 = vpop.eup %3089 }
 0x43b   :  { %v3092_v28 = vpop.eup %3091  ;;  %v1354_v30 = vmul.f32 %v3090_v24, %v3088_v15 }
 0x43c   :  { %v1353_v42 = vmul.f32 %v3092_v28, %v3916_v25  ;;  %v3094_v2 = vpop.eup %3093 }
 0x43e   :  { %v4153_v43 = vadd.f32 %v1354_v30, %v1353_v42 }
 0x440   :  { %3095 = vtanh.f32 %v4153_v43 }
 0x44a   :  { %v3096_v6 = vpop.eup %3095 }
 0x44b   :  { %v1357_v13 = vmul.f32 %v3096_v6, %v3094_v2 }
 0x44d   :  { %2375 = vst [vmem:[%s4340_s4 + $0x18] sm:$0xff] %v1357_v13  ;;  %1500 = vmatmul.mubr.f32.vlgmr.msra.gmra.mrb[8].mxu0 %v1357_v13  ;;  %1571 = vmatmul.mubr.f32.vlgmr.msra.gmra.mrb[8].mxu1 %v1357_v13 }
 0x44e   :  { %2779 = vmatpush1.bf16.msra.mxu0 %v3835_v33  ;;  %2811 = vmatpush1.bf16.msra.mxu1 %v3844_v53 }
 0x44f   :  { %2781 = vmatprep.subr.bf16.mxu0 %v3858_v34  ;;  %2813 = vmatprep.subr.bf16.mxu1 %v3869_v45 }
 0x450   :  { %1746 = vmatprep.mubr.f32.mxu0 %v3161_v3  ;;  %1817 = vmatprep.mubr.f32.mxu1 %v3161_v3 }
 0x452   :  { %2783 = vmatpush1.bf16.msra.mxu0 %v3871_v38  ;;  %2815 = vmatpush1.bf16.msra.mxu1 %v3880_v49 }
 0x453   :  { %2785 = vmatprep.subr.bf16.mxu0 %v3939_v1  ;;  %2817 = vmatprep.subr.bf16.mxu1 %v3950_v11 }
 0x456   :  { %2787 = vmatpush1.bf16.msra.mxu0 %v3952_v12  ;;  %2819 = vmatpush1.bf16.msra.mxu1 %v3961_v20 }
 0x457   :  { %2789 = vmatprep.subr.bf16.mxu0 %v3975_v47  ;;  %2821 = vmatprep.subr.bf16.mxu1 %v3986_v63 }
 0x45a   :  { %2791 = vmatpush1.bf16.msra.mxu0 %v3988_v39  ;;  %2823 = vmatpush1.bf16.msra.mxu1 %v3997_v41 }
 0x45b   :  { %2793 = vmatprep.subr.bf16.mxu0 %v4011_v10  ;;  %2825 = vmatprep.subr.bf16.mxu1 %v4022_v23 }
 0x45e   :  { %2795 = vmatpush1.bf16.msra.mxu0 %v4024_v26  ;;  %2827 = vmatpush1.bf16.msra.mxu1 %v4033_v36 }
 0x45f   :  { %2797 = vmatprep.subr.bf16.mxu0 %v4046_v54  ;;  %2829 = vmatprep.subr.bf16.mxu1 %v4058_v9 }
 0x462   :  { %2799 = vmatpush1.bf16.msra.mxu0 %v4060_v14  ;;  %2831 = vmatpush1.bf16.msra.mxu1 %v4072_v51 }
 0x463   :  { %2801 = vmatprep.subr.bf16.mxu0 %v4084_v0  ;;  %2833 = vmatprep.subr.bf16.mxu1 %v4086_v5 }
 0x466   :  { %2803 = vmatpush1.bf16.msra.mxu0 %v4098_v17  ;;  %2835 = vmatpush1.bf16.msra.mxu1 %v4111_v50 }
 0x467   :  { %2805 = vmatprep.subr.bf16.mxu0 %v4113_v56  ;;  %2837 = vmatprep.subr.bf16.mxu1 %v4125_v46 }
 0x46a   :  { %2807 = vmatpush1.bf16.msra.mxu0 %v4137_v16  ;;  %2839 = vmatpush1.bf16.msra.mxu1 %v4141_v19 }
 0x46b   :  { %2841 = vmatprep.subr.bf16.mxu0 %v3822_v21  ;;  %2873 = vmatprep.subr.bf16.mxu1 %v3833_v31 }
 0x520   :  { %v1501_v25 = vpop.f32.mrb[8].mxu0  ;;  %v1572_v29 = vpop.f32.mrb[8].mxu1 }
 0x521   :  { %v2976_v32 = vadd.f32 %v1501_v25, %v3750_v35  ;;  %v1503_v40 = vpop.f32.mrb[9].mxu0  ;;  %v1574_v44 = vpop.f32.mrb[9].mxu1  ;;  %v2992_v22 = vadd.f32 %v1572_v29, %v3759_v59 }
 0x522   :  { %v2977_v48 = vadd.f32 %v1503_v40, %v3752_v37  ;;  %v2993_v4 = vadd.f32 %v1574_v44, %v3756_v52 }
 0x523   :  { %v2376_v58 = vmul.f32 -1.442695, %v2976_v32 }
 0x524   :  { %v2377_v62 = vmul.f32 -1.442695, %v2977_v48  ;;  %v2378_v18 = vmul.f32 -1.442695, %v2993_v4 }
 0x525   :  { %3097 = vpow2.f32 %v2376_v58 }
 0x526   :  { %3099 = vpow2.f32 %v2377_v62 }
 0x527   :  { %3101 = vpow2.f32 %v2378_v18 }
 0x528   :  { %3103 = vtanh.f32 %v2992_v22 }
 0x52f   :  { %v3098_v21 = vpop.eup %3097 }
 0x530   :  { %v3100_v27 = vpop.eup %3099  ;;  %v1584_v31 = vadd.f32 1.0, %v3098_v21 }
 0x531   :  { %v1590_v55 = vadd.f32 1.0, %v3100_v27  ;;  %v3102_v57 = vpop.eup %3101 }
 0x532   :  { %3105 = vrcp.f32 %v1584_v31  ;;  %v3104_v61 = vpop.eup %3103  ;;  %v1597_v24 = vadd.f32 1.0, %v3102_v57 }
 0x533   :  { %3107 = vrcp.f32 %v1590_v55 }
 0x534   :  { %3109 = vrcp.f32 %v1597_v24 }
 0x53c   :  { %v3106_v7 = vpop.eup %3105 }
 0x53d   :  { %v3108_v8 = vpop.eup %3107  ;;  %v1601_v15 = vmul.f32 %v3106_v7, %v3104_v61  ;;  %v2113_v7 = vld [vmem:[%s4337_s1 + $0x8] sm:$0xff] }
 0x53e   :  { %v1600_v28 = vmul.f32 %v3108_v8, %v4153_v43  ;;  %v3110_v60 = vpop.eup %3109  ;;  %v2117_v8 = vld [vmem:[%s4337_s1 + $0x28] sm:$0xff] }
 0x53f   :  { %v2904_v24 = vpack.c.bf16 %v2117_v8, %v2113_v7 }
 0x540   :  { %v4198_v30 = vadd.f32 %v1601_v15, %v1600_v28  ;;  %v2115_v15 = vld [vmem:[%s4337_s1 + $0x18] sm:$0xff] }
 0x541   :  { %v2119_v28 = vld [vmem:[%s4337_s1 + $0x38] sm:$0xff] }
 0x542   :  { %3111 = vtanh.f32 %v4198_v30 }
 0x54c   :  { %v3112_v42 = vpop.eup %3111 }
 0x54d   :  { %v1604_v2 = vmul.f32 %v3112_v42, %v3110_v60  ;;  %v2936_v60 = vpack.c.bf16 %v2119_v28, %v2115_v15 }
 0x54f   :  { %2379 = vst [vmem:[%s4340_s4 + $0x20] sm:$0xff] %v1604_v2  ;;  %1747 = vmatmul.mubr.f32.vlgmr.msra.gmra.mrb[10].mxu0 %v1604_v2  ;;  %1818 = vmatmul.mubr.f32.vlgmr.msra.gmra.mrb[10].mxu1 %v1604_v2  ;;  %v2114_v2 = vld [vmem:[%s4337_s1 + $0x10] sm:$0xff] }
 0x550   :  { %2843 = vmatpush1.bf16.msra.mxu0 %v3835_v33  ;;  %2875 = vmatpush1.bf16.msra.mxu1 %v3844_v53 }
 0x551   :  { %2845 = vmatprep.subr.bf16.mxu0 %v3858_v34  ;;  %2877 = vmatprep.subr.bf16.mxu1 %v3869_v45 }
 0x552   :  { %1993 = vmatprep.mubr.f32.mxu0 %v3161_v3  ;;  %2064 = vmatprep.mubr.f32.mxu1 %v3161_v3 }
 0x554   :  { %2847 = vmatpush1.bf16.msra.mxu0 %v3871_v38  ;;  %2879 = vmatpush1.bf16.msra.mxu1 %v3880_v49 }
 0x555   :  { %2849 = vmatprep.subr.bf16.mxu0 %v3939_v1  ;;  %2881 = vmatprep.subr.bf16.mxu1 %v3950_v11 }
 0x558   :  { %2851 = vmatpush1.bf16.msra.mxu0 %v3952_v12  ;;  %2883 = vmatpush1.bf16.msra.mxu1 %v3961_v20 }
 0x559   :  { %2853 = vmatprep.subr.bf16.mxu0 %v3975_v47  ;;  %2885 = vmatprep.subr.bf16.mxu1 %v3986_v63 }
 0x55c   :  { %2855 = vmatpush1.bf16.msra.mxu0 %v3988_v39  ;;  %2887 = vmatpush1.bf16.msra.mxu1 %v3997_v41 }
 0x55d   :  { %2857 = vmatprep.subr.bf16.mxu0 %v4011_v10  ;;  %2889 = vmatprep.subr.bf16.mxu1 %v4022_v23 }
 0x560   :  { %2859 = vmatpush1.bf16.msra.mxu0 %v4024_v26  ;;  %2891 = vmatpush1.bf16.msra.mxu1 %v4033_v36 }
 0x561   :  { %2861 = vmatprep.subr.bf16.mxu0 %v4046_v54  ;;  %2893 = vmatprep.subr.bf16.mxu1 %v4058_v9 }
 0x564   :  { %2863 = vmatpush1.bf16.msra.mxu0 %v4060_v14  ;;  %2895 = vmatpush1.bf16.msra.mxu1 %v4072_v51 }
 0x565   :  { %2865 = vmatprep.subr.bf16.mxu0 %v4084_v0  ;;  %2897 = vmatprep.subr.bf16.mxu1 %v4086_v5 }
 0x568   :  { %2867 = vmatpush1.bf16.msra.mxu0 %v4098_v17  ;;  %2899 = vmatpush1.bf16.msra.mxu1 %v4111_v50 }
 0x569   :  { %2869 = vmatprep.subr.bf16.mxu0 %v4113_v56  ;;  %2901 = vmatprep.subr.bf16.mxu1 %v4125_v46 }
 0x56c   :  { %2871 = vmatpush1.bf16.msra.mxu0 %v4137_v16  ;;  %2903 = vmatpush1.bf16.msra.mxu1 %v4141_v19 }
 0x56d   :  { %2905 = vmatprep.subr.bf16.mxu0 %v2904_v24  ;;  %2937 = vmatprep.subr.bf16.mxu1 %v2936_v60 }
 0x622   :  { %v1748_v33 = vpop.f32.mrb[10].mxu0  ;;  %v1819_v53 = vpop.f32.mrb[10].mxu1 }
 0x623   :  { %v2978_v34 = vadd.f32 %v1748_v33, %v3750_v35  ;;  %v1750_v45 = vpop.f32.mrb[11].mxu0  ;;  %v1821_v38 = vpop.f32.mrb[11].mxu1  ;;  %v2994_v29 = vadd.f32 %v1819_v53, %v3759_v59  ;;  %v2118_v33 = vld [vmem:[%s4337_s1 + $0x30] sm:$0xff] }
 0x624   :  { %v2979_v49 = vadd.f32 %v1750_v45, %v3752_v37  ;;  %v2995_v13 = vadd.f32 %v1821_v38, %v3756_v52  ;;  %v2938_v53 = vpack.c.bf16 %v2118_v33, %v2114_v2  ;;  %v2125_v45 = vld [vmem:[%s4337_s1 + $0x68] sm:$0xff]  ;;  %v2123_v38 = vld [vmem:[%s4337_s1 + $0x58] sm:$0xff] }
 0x625   :  { %v2380_v43 = vmul.f32 -1.442695, %v2978_v34  ;;  %v2121_v34 = vld [vmem:[%s4337_s1 + $0x48] sm:$0xff] }
 0x626   :  { %v2381_v6 = vmul.f32 -1.442695, %v2979_v49  ;;  %v2382_v25 = vmul.f32 -1.442695, %v2995_v13  ;;  %v2908_v49 = vpack.c.bf16 %v2125_v45, %v2121_v34  ;;  %v2124_v13 = vld [vmem:[%s4337_s1 + $0x60] sm:$0xff] }
 0x627   :  { %3113 = vpow2.f32 %v2380_v43  ;;  %v2127_v43 = vld [vmem:[%s4337_s1 + $0x78] sm:$0xff] }
 0x628   :  { %3115 = vpow2.f32 %v2381_v6  ;;  %v2120_v6 = vld [vmem:[%s4337_s1 + $0x40] sm:$0xff] }
 0x629   :  { %3117 = vpow2.f32 %v2382_v25  ;;  %v2940_v25 = vpack.c.bf16 %v2127_v43, %v2123_v38 }
 0x62a   :  { %3119 = vtanh.f32 %v2994_v29  ;;  %v2910_v29 = vpack.c.bf16 %v2124_v13, %v2120_v6 }
 0x631   :  { %v3114_v32 = vpop.eup %3113 }
 0x632   :  { %v3116_v40 = vpop.eup %3115  ;;  %v1831_v44 = vadd.f32 1.0, %v3114_v32  ;;  %v2122_v32 = vld [vmem:[%s4337_s1 + $0x50] sm:$0xff] }
 0x633   :  { %v1837_v48 = vadd.f32 1.0, %v3116_v40  ;;  %v3118_v58 = vpop.eup %3117  ;;  %v2126_v40 = vld [vmem:[%s4337_s1 + $0x70] sm:$0xff] }
 0x634   :  { %3121 = vrcp.f32 %v1831_v44  ;;  %v3120_v62 = vpop.eup %3119  ;;  %v1844_v21 = vadd.f32 1.0, %v3118_v58  ;;  %v2942_v44 = vpack.c.bf16 %v2126_v40, %v2122_v32 }
 0x635   :  { %3123 = vrcp.f32 %v1837_v48 }
 0x636   :  { %3125 = vrcp.f32 %v1844_v21 }
 0x63e   :  { %v3122_v4 = vpop.eup %3121 }
 0x63f   :  { %v3124_v18 = vpop.eup %3123  ;;  %v1848_v22 = vmul.f32 %v3122_v4, %v3120_v62 }
 0x640   :  { %v1847_v27 = vmul.f32 %v3124_v18, %v4198_v30  ;;  %v3126_v55 = vpop.eup %3125  ;;  %v2116_v30 = vld [vmem:[%s4337_s1 + $0x20] sm:$0xff] }
 0x642   :  { %v4241_v31 = vadd.f32 %v1848_v22, %v1847_v27 }
 0x644   :  { %3127 = vtanh.f32 %v4241_v31 }
 0x64e   :  { %v3128_v57 = vpop.eup %3127 }
 0x64f   :  { %v1851_v61 = vmul.f32 %v3128_v57, %v3126_v55 }
 0x651   :  { %2383 = vst [vmem:[%s4340_s4 + $0x28] sm:$0xff] %v1851_v61  ;;  %1994 = vmatmul.mubr.f32.vlgmr.msra.gmra.mrb[12].mxu0 %v1851_v61  ;;  %2065 = vmatmul.mubr.f32.vlgmr.msra.gmra.mrb[12].mxu1 %v1851_v61 }
 0x652   :  { %2240 = vmatprep.mubr.f32.mxu0 %v3161_v3  ;;  %2311 = vmatprep.mubr.f32.mxu1 %v3161_v3  ;;  %v2112_v3 = vld [vmem:[%s4337_s1] sm:$0xff] }
 0x653   :  { %v2906_v42 = vpack.c.bf16 %v2116_v30, %v2112_v3  ;;  %2939 = vmatpush1.bf16.msra.mxu1 %v2938_v53 }
 0x654   :  { %2941 = vmatprep.subr.bf16.mxu1 %v2940_v25 }
 0x655   :  { %2907 = vmatpush1.bf16.msra.mxu0 %v2906_v42 }
 0x656   :  { %2909 = vmatprep.subr.bf16.mxu0 %v2908_v49 }
 0x657   :  { %2943 = vmatpush1.bf16.msra.mxu1 %v2942_v44 }
 0x658   :  { %2945 = vmatprep.subr.bf16.mxu1 %v3950_v11 }
 0x659   :  { %2911 = vmatpush1.bf16.msra.mxu0 %v2910_v29 }
 0x65a   :  { %2913 = vmatprep.subr.bf16.mxu0 %v3939_v1 }
 0x65b   :  { %2947 = vmatpush1.bf16.msra.mxu1 %v3961_v20 }
 0x65c   :  { %2949 = vmatprep.subr.bf16.mxu1 %v3986_v63 }
 0x65d   :  { %2915 = vmatpush1.bf16.msra.mxu0 %v3952_v12 }
 0x65e   :  { %2917 = vmatprep.subr.bf16.mxu0 %v3975_v47 }
 0x65f   :  { %2951 = vmatpush1.bf16.msra.mxu1 %v3997_v41 }
 0x660   :  { %2953 = vmatprep.subr.bf16.mxu1 %v4022_v23 }
 0x661   :  { %2919 = vmatpush1.bf16.msra.mxu0 %v3988_v39 }
 0x662   :  { %2921 = vmatprep.subr.bf16.mxu0 %v4011_v10 }
 0x663   :  { %2955 = vmatpush1.bf16.msra.mxu1 %v4033_v36 }
 0x664   :  { %2957 = vmatprep.subr.bf16.mxu1 %v4058_v9 }
 0x665   :  { %2923 = vmatpush1.bf16.msra.mxu0 %v4024_v26 }
 0x666   :  { %2925 = vmatprep.subr.bf16.mxu0 %v4046_v54 }
 0x667   :  { %2959 = vmatpush1.bf16.msra.mxu1 %v4072_v51 }
 0x668   :  { %2961 = vmatprep.subr.bf16.mxu1 %v4086_v5 }
 0x669   :  { %2927 = vmatpush1.bf16.msra.mxu0 %v4060_v14 }
 0x66a   :  { %2929 = vmatprep.subr.bf16.mxu0 %v4084_v0 }
 0x66b   :  { %2963 = vmatpush1.bf16.msra.mxu1 %v4111_v50 }
 0x66c   :  { %2965 = vmatprep.subr.bf16.mxu1 %v4125_v46 }
 0x66d   :  { %2931 = vmatpush1.bf16.msra.mxu0 %v4098_v17 }
 0x66e   :  { %2933 = vmatprep.subr.bf16.mxu0 %v4113_v56 }
 0x66f   :  { %2967 = vmatpush1.bf16.msra.mxu1 %v4141_v19 }
 0x671   :  { %2935 = vmatpush1.bf16.msra.mxu0 %v4137_v16 }
 0x724   :  { %v1995_v1 = vpop.f32.mrb[12].mxu0  ;;  %v2066_v11 = vpop.f32.mrb[12].mxu1 }
 0x725   :  { %v2980_v12 = vadd.f32 %v1995_v1, %v3750_v35  ;;  %v1997_v20 = vpop.f32.mrb[13].mxu0  ;;  %v2068_v47 = vpop.f32.mrb[13].mxu1  ;;  %v2996_v26 = vadd.f32 %v2066_v11, %v3759_v59 }
 0x726   :  { %v2981_v63 = vadd.f32 %v1997_v20, %v3752_v37  ;;  %v2997_v10 = vadd.f32 %v2068_v47, %v3756_v52 }
 0x727   :  { %v2384_v39 = vmul.f32 -1.442695, %v2980_v12 }
 0x728   :  { %v2385_v41 = vmul.f32 -1.442695, %v2981_v63  ;;  %v2386_v23 = vmul.f32 -1.442695, %v2997_v10 }
 0x729   :  { %3129 = vpow2.f32 %v2384_v39 }
 0x72a   :  { %3131 = vpow2.f32 %v2385_v41 }
 0x72b   :  { %3133 = vpow2.f32 %v2386_v23 }
 0x72c   :  { %3135 = vtanh.f32 %v2996_v26 }
 0x733   :  { %v3130_v36 = vpop.eup %3129 }
 0x734   :  { %v3132_v54 = vpop.eup %3131  ;;  %v2078_v9 = vadd.f32 1.0, %v3130_v36 }
 0x735   :  { %v2084_v14 = vadd.f32 1.0, %v3132_v54  ;;  %v3134_v51 = vpop.eup %3133 }
 0x736   :  { %3137 = vrcp.f32 %v2078_v9  ;;  %v3136_v0 = vpop.eup %3135  ;;  %v2091_v56 = vadd.f32 1.0, %v3134_v51 }
 0x737   :  { %3139 = vrcp.f32 %v2084_v14 }
 0x738   :  { %3141 = vrcp.f32 %v2091_v56 }
 0x740   :  { %v3138_v5 = vpop.eup %3137 }
 0x741   :  { %v3140_v17 = vpop.eup %3139  ;;  %v2095_v50 = vmul.f32 %v3138_v5, %v3136_v0 }
 0x742   :  { %v2094_v46 = vmul.f32 %v3140_v17, %v4241_v31  ;;  %v3142_v19 = vpop.eup %3141 }
 0x744   :  { %v2096_v16 = vadd.f32 %v2095_v50, %v2094_v46 }
 0x746   :  { %3143 = vtanh.f32 %v2096_v16 }
 0x750   :  { %v3144_v48 = vpop.eup %3143 }
 0x751   :  { %v2098_v58 = vmul.f32 %v3144_v48, %v3142_v19 }
 0x753   :  { %2387 = vst [vmem:[%s4340_s4 + $0x30] sm:$0xff] %v2098_v58  ;;  %2241 = vmatmul.mubr.f32.vlgmr.msra.gmra.mrb[14].mxu0 %v2098_v58  ;;  %2312 = vmatmul.mubr.f32.vlgmr.msra.gmra.mrb[14].mxu1 %v2098_v58 }
 0x826   :  { %v2242_v62 = vpop.f32.mrb[14].mxu0  ;;  %v2313_v4 = vpop.f32.mrb[14].mxu1 }
 0x827   :  { %v2982_v18 = vadd.f32 %v2242_v62, %v3750_v35  ;;  %v2244_v22 = vpop.f32.mrb[15].mxu0  ;;  %v2315_v21 = vpop.f32.mrb[15].mxu1  ;;  %v2998_v7 = vadd.f32 %v2313_v4, %v3759_v59 }
 0x828   :  { %v2983_v27 = vadd.f32 %v2244_v22, %v3752_v37  ;;  %v2999_v57 = vadd.f32 %v2315_v21, %v3756_v52 }
 0x829   :  { %v2388_v31 = vmul.f32 -1.442695, %v2982_v18 }
 0x82a   :  { %v2389_v55 = vmul.f32 -1.442695, %v2983_v27  ;;  %v2390_v61 = vmul.f32 -1.442695, %v2999_v57 }
 0x82b   :  { %3145 = vpow2.f32 %v2388_v31 }
 0x82c   :  { %3147 = vpow2.f32 %v2389_v55 }
 0x82d   :  { %3149 = vpow2.f32 %v2390_v61 }
 0x82e   :  { %3151 = vtanh.f32 %v2998_v7 }
 0x835   :  { %v3146_v8 = vpop.eup %3145 }
 0x836   :  { %v3148_v15 = vpop.eup %3147  ;;  %v2325_v24 = vadd.f32 1.0, %v3146_v8 }
 0x837   :  { %v2331_v28 = vadd.f32 1.0, %v3148_v15  ;;  %v3150_v35 = vpop.eup %3149 }
 0x838   :  { %3153 = vrcp.f32 %v2325_v24  ;;  %v3152_v3 = vpop.eup %3151  ;;  %v2338_v42 = vadd.f32 1.0, %v3150_v35 }
 0x839   :  { %3155 = vrcp.f32 %v2331_v28 }
 0x83a   :  { %3157 = vrcp.f32 %v2338_v42 }
 0x842   :  { %v3154_v37 = vpop.eup %3153 }
 0x843   :  { %v3156_v30 = vpop.eup %3155  ;;  %v2342_v60 = vmul.f32 %v3154_v37, %v3152_v3 }
 0x844   :  { %v2341_v2 = vmul.f32 %v3156_v30, %v2096_v16  ;;  %v3158_v52 = vpop.eup %3157 }
 0x846   :  { %v2343_v33 = vadd.f32 %v2342_v60, %v2341_v2 }
 0x848   :  { %3159 = vtanh.f32 %v2343_v33 }
 0x852   :  { %v3160_v59 = vpop.eup %3159 }
 0x853   :  { %v2345_v53 = vmul.f32 %v3160_v59, %v3158_v52 }
 0x855   :  { %2391 = vst [vmem:[%s4340_s4 + $0x38] sm:$0xff] %v2345_v53 }

</bundles_post_ra>
